<compile_context>
chip_gen: v6e
topology: v6e:2x2x1
jax: 0.10.0
libtpu: 0.0.40
codegen_flags: <defaults>
</compile_context>

<pallas_src>
import functools

import numpy as np
import jax
import jax.numpy as jnp
from jax import lax
from jax.experimental import pallas as pl
from jax.experimental.pallas import tpu as pltpu

CH = [2, 4, 8, 16, 32, 32, 2]
_BN_EPS = 1e-5
_COMPILER_PARAMS = pltpu.CompilerParams(
    dimension_semantics=("arbitrary",),
    vmem_limit_bytes=32 * 1024 * 1024,   # tiny per-call footprint; safe on v7x
)


# ----------------------------- Pallas kernel ---------------------------------

def _fused_conv_kernel(*refs, act, mode, eps):
    """{pre-activation -> one MXU matmul -> conv bias | training BatchNorm}.

    w_ref : (Co, K)  effective conv weight, K = k*k*Ci, cols ordered (kh,kw,ci)
    x_ref : (K,  M)  im2col'd channel-major input, M = N*OH*OW (lane-dense)
    o_ref : (Co, M)
    """
    if mode == "bn":
        w_ref, x_ref, g_ref, b_ref, o_ref = refs
    elif mode == "bias":
        w_ref, x_ref, bias_ref, o_ref = refs
    else:
        w_ref, x_ref, o_ref = refs

    x = x_ref[...]
    if act == "leaky":
        x = jnp.where(x > 0, x, 0.2 * x)
    elif act == "relu":
        x = jnp.maximum(x, 0.0)

    y = jnp.dot(w_ref[...], x, preferred_element_type=jnp.float32)

    if mode == "bias":
        y = y + bias_ref[...]
    elif mode == "bn":
        mean = jnp.mean(y, axis=1, keepdims=True)
        var = jnp.mean(jnp.square(y - mean), axis=1, keepdims=True)
        y = (y - mean) * (lax.rsqrt(var + eps) * g_ref[...]) + b_ref[...]
    o_ref[...] = y


def fused_conv_pallas(wT, xT, extras, *, act, mode):
    Co, K = wT.shape
    K2, M = xT.shape
    assert K == K2
    kern = functools.partial(_fused_conv_kernel, act=act, mode=mode, eps=_BN_EPS)
    in_specs = [
        pl.BlockSpec((Co, K), lambda i: (0, 0)),
        pl.BlockSpec((K, M), lambda i: (0, 0)),
    ]
    operands = [wT.astype(jnp.float32), xT.astype(jnp.float32)]
    for e in extras:
        in_specs.append(pl.BlockSpec((Co, 1), lambda i: (0, 0)))
        operands.append(jnp.asarray(e, jnp.float32).reshape(Co, 1))
    return pl.pallas_call(
        kern,
        out_shape=jax.ShapeDtypeStruct((Co, M), jnp.float32),
        grid=(1,),
        in_specs=in_specs,
        out_specs=pl.BlockSpec((Co, M), lambda i: (0, 0)),
        compiler_params=_COMPILER_PARAMS,
    )(*operands)


# ------------------------------ conv plumbing --------------------------------

def _im2col_T(x, k, stride, OH, OW):
    """x: (Ci, N, Hp, Wp) padded, channel-major -> (k*k*Ci, N*OH*OW).

    Row order is (kh, kw, ci); column order is (n, oh, ow).  Pure XLA slice /
    concat / reshape on tiny tensors (one fusion), no transposes.
    """
    Ci, N = x.shape[0], x.shape[1]
    blocks = []
    for a in range(k):
        for b in range(k):
            blocks.append(x[:, :,
                            a:a + stride * (OH - 1) + 1:stride,
                            b:b + stride * (OW - 1) + 1:stride])
    cols = jnp.concatenate(blocks, axis=0)            # (k*k*Ci, N, OH, OW)
    return cols.reshape(k * k * Ci, N * OH * OW)


def conv_block(x, wT, extras, *, k, stride, pad, act, mode):
    """x: (Ci, N, H, W); wT: (Co, k*k*Ci).  Returns (Co, N, OH, OW)."""
    Ci, N, H, W = x.shape
    Co = wT.shape[0]
    if pad:
        x = jnp.pad(x, ((0, 0), (0, 0), (pad, pad), (pad, pad)))
    Hp, Wp = H + 2 * pad, W + 2 * pad
    OH = (Hp - k) // stride + 1
    OW = (Wp - k) // stride + 1
    xT = _im2col_T(x, k, stride, OH, OW)
    out = fused_conv_pallas(wT, xT, extras, act=act, mode=mode)
    return out.reshape(Co, N, OH, OW)


def _conv_wT(w):
    """nn.Conv2d weight (Co, Ci, k, k) -> (Co, k*k*Ci) with cols (kh, kw, ci)."""
    Co, Ci, k, _ = w.shape
    return jnp.transpose(w, (0, 2, 3, 1)).reshape(Co, k * k * Ci)


def _upsample_matrix(s):
    """Bilinear, align_corners=True, scale 2: (2s, s) interpolation matrix."""
    out = 2 * s
    A = np.zeros((out, s), dtype=np.float32)
    if s == 1:
        A[:, 0] = 1.0
    else:
        for j in range(out):
            pos = j * (s - 1) / (out - 1)
            i0 = min(int(np.floor(pos)), s - 2)
            frac = pos - i0
            A[j, i0] = 1.0 - frac
            A[j, i0 + 1] = frac
    return jnp.asarray(A)


def _relu_upsample2x(x):
    # TODO(synk): align_corners bilinear resampling is position-dependent (not
    # a convolution), so it stays as one XLA einsum on the tiny map instead of
    # being folded into the following Pallas conv kernel.
    C, N, H, W = x.shape
    Ah = _upsample_matrix(H)
    Aw = _upsample_matrix(W)
    return jnp.einsum("ph,qw,cnhw->cnpq", Ah, Aw, jnp.maximum(x, 0.0),
                      precision=lax.Precision.HIGHEST)


def _subpixel_tconv_weight_T(wt):
    """ConvTranspose2d(Ci,Co,4,2,1) == pad-1 3x3 stride-1 conv producing 4*Co
    channels (one per output parity) + pixel shuffle.  wt: (Ci, Co, 4, 4).
    Returns effective weight (4*Co, 9*Ci): rows (r,s,co), cols (kh,kw,ci)."""
    Ci, Co = wt.shape[0], wt.shape[1]
    zero = jnp.zeros((Co, Ci), wt.dtype)
    rows = []
    for r in range(2):
        for s in range(2):
            cols = []
            for a in range(3):
                kh = 3 + r - 2 * a
                for b in range(3):
                    kw = 3 + s - 2 * b
                    if 0 <= kh < 4 and 0 <= kw < 4:
                        cols.append(jnp.transpose(wt[:, :, kh, kw]))   # (Co, Ci)
                    else:
                        cols.append(zero)
            rows.append(jnp.concatenate(cols, axis=1))                 # (Co, 9*Ci)
    return jnp.concatenate(rows, axis=0)                               # (4*Co, 9*Ci)


# ------------------------------ UNet blocks ----------------------------------

def enc_block(x, prm, k, pad):
    # LeakyReLU(0.2) -> Conv2d(k, stride 2, pad) -> BatchNorm2d
    # (conv bias omitted: it cancels inside BatchNorm)
    return conv_block(x, _conv_wT(prm["w"]), [prm["gamma"], prm["beta"]],
                      k=k, stride=2, pad=pad, act="leaky", mode="bn")


def dec_block(x, prm, k, pad):
    # ReLU -> Upsample(x2, bilinear, align_corners) -> Conv2d(k, 1, pad) -> BN
    u = _relu_upsample2x(x)
    return conv_block(u, _conv_wT(prm["w"]), [prm["gamma"], prm["beta"]],
                      k=k, stride=1, pad=pad, act="none", mode="bn")


def tconv_block(x, prm):
    # ReLU -> ConvTranspose2d(Ci, Co, 4, 2, 1)  (sub-pixel decomposition)
    C, N, H, W = x.shape
    Co = prm["w"].shape[1]
    weq = _subpixel_tconv_weight_T(prm["w"])                 # (4*Co, 9*C)
    bias4 = jnp.tile(prm["b"], 4)                            # rows (r,s,co)
    y = conv_block(x, weq, [bias4], k=3, stride=1, pad=1,
                   act="relu", mode="bias")                  # (4*Co, N, H, W)
    y = y.reshape(2, 2, Co, N, H, W)
    y = jnp.transpose(y, (2, 3, 4, 0, 5, 1)).reshape(Co, N, 2 * H, 2 * W)
    return y


def unet_forward(x_nchw, params):
    x = jnp.transpose(x_nchw, (1, 0, 2, 3))                  # NCHW -> (C,N,H,W)
    p = params
    out1 = conv_block(x, _conv_wT(p["l1"]["w"]), [p["l1"]["b"]],
                      k=4, stride=2, pad=1, act="none", mode="bias")
    out2 = enc_block(out1, p["l2"], 4, 1)
    out3 = enc_block(out2, p["l3"], 4, 1)
    out4 = enc_block(out3, p["l4"], 4, 1)
    out5 = enc_block(out4, p["l5"], 2, 0)

    dout5 = dec_block(out5, p["d5"], 1, 0)
    dout4 = dec_block(jnp.concatenate([dout5, out4], axis=0), p["d4"], 3, 1)
    dout3 = dec_block(jnp.concatenate([dout4, out3], axis=0), p["d3"], 3, 1)
    dout2 = dec_block(jnp.concatenate([dout3, out2], axis=0), p["d2"], 3, 1)

    dout1 = tconv_block(jnp.concatenate([dout2, out1], axis=0), p["d1"])
    return jnp.transpose(dout1, (1, 0, 2, 3))                # (C,N,H,W) -> NCHW


# ------------------------------ parameters -----------------------------------

def init_params(key):
    keys = iter(jax.random.split(key, 64))

    def conv(cout, cin, k):
        fan_in = cin * k * k
        w = jax.random.normal(next(keys), (cout, cin, k, k), jnp.float32) / np.sqrt(fan_in)
        b = 0.05 * jax.random.normal(next(keys), (cout,), jnp.float32)
        return {"w": w, "b": b}   # b unused for BN-followed convs (cancels in BN)

    def bn(c):
        return {"gamma": 1.0 + 0.1 * jax.random.normal(next(keys), (c,), jnp.float32),
                "beta": 0.1 * jax.random.normal(next(keys), (c,), jnp.float32)}

    p = {}
    p["l1"] = conv(CH[1], CH[0], 4)
    p["l2"] = {**conv(CH[2], CH[1], 4), **bn(CH[2])}
    p["l3"] = {**conv(CH[3], CH[2], 4), **bn(CH[3])}
    p["l4"] = {**conv(CH[4], CH[3], 4), **bn(CH[4])}
    p["l5"] = {**conv(CH[5], CH[4], 2), **bn(CH[5])}
    p["d5"] = {**conv(CH[4], CH[5], 1), **bn(CH[4])}
    p["d4"] = {**conv(CH[3], CH[4] * 2, 3), **bn(CH[3])}
    p["d3"] = {**conv(CH[2], CH[3] * 2, 3), **bn(CH[2])}
    p["d2"] = {**conv(CH[1], CH[2] * 2, 3), **bn(CH[1])}
    # ConvTranspose2d weight layout: (Cin, Cout, k, k)
    wt = jax.random.normal(next(keys), (CH[1] * 2, CH[6], 4, 4), jnp.float32) / np.sqrt(CH[1] * 2 * 16)
    bt = 0.05 * jax.random.normal(next(keys), (CH[6],), jnp.float32)
    p["d1"] = {"w": wt, "b": bt}
    return p


# --------------------------------- main ---------------------------------------

if __name__ == "__main__":
    key = jax.random.PRNGKey(0)
    kx, kp = jax.random.split(key)
    # spatial must be divisible by 2^5 = 32 for the 5-level encoder.
    x = jax.random.normal(kx, (2, CH[0], 64, 64), jnp.float32)
    params = init_params(kp)

    fwd = jax.jit(unet_forward)
    out = jax.block_until_ready(fwd(x, params))

    assert out.shape == (2, CH[6], 64, 64), out.shape
    assert bool(jnp.all(jnp.isfinite(out)))
    print("KERNEL_OK")
</pallas_src>

<mosaic_0001>
module attributes {stable_mosaic.version = 11 : i64} {
  func.func @_fused_conv_kernel(%arg0: i32, %arg1: memref<4x32xf32, #tpu.memory_space<vmem>>, %arg2: memref<32x2048xf32, #tpu.memory_space<vmem>>, %arg3: memref<4x1xf32, #tpu.memory_space<vmem>>, %arg4: memref<4x2048xf32, #tpu.memory_space<vmem>>) attributes {dimension_semantics = [#tpu.dimension_semantics<arbitrary>], iteration_bounds = array<i64: 1>, scalar_prefetch = 0 : i64, scratch_operands = 0 : i64, tpu.core_type = #tpu.core_type<tc>, window_params = [{pipeline_mode = #tpu.pipeline_mode<synchronous>, transform_indices = @transform_0, window_bounds = array<i64: 4, 32>}, {pipeline_mode = #tpu.pipeline_mode<synchronous>, transform_indices = @transform_1, window_bounds = array<i64: 32, 2048>}, {pipeline_mode = #tpu.pipeline_mode<synchronous>, transform_indices = @transform_2, window_bounds = array<i64: 4, 1>}, {pipeline_mode = #tpu.pipeline_mode<synchronous>, transform_indices = @transform_3, window_bounds = array<i64: 4, 2048>}]} {
    %c0 = arith.constant 0 : index
    %c0_0 = arith.constant 0 : index
    %0 = vector.load %arg2[%c0, %c0_0] : memref<32x2048xf32, #tpu.memory_space<vmem>>, vector<32x2048xf32>
    %c0_1 = arith.constant 0 : index
    %c0_2 = arith.constant 0 : index
    %1 = vector.load %arg1[%c0_1, %c0_2] : memref<4x32xf32, #tpu.memory_space<vmem>>, vector<4x32xf32>
    %cst = arith.constant dense<0.000000e+00> : vector<4x2048xf32>
    %2 = tpu.matmul %1, %0, %cst {dimension_numbers = #tpu.dot_dimension_numbers<[1], [0], [0], [1], [0, 0, 1, 1], [], []>} : vector<4x32xf32>, vector<32x2048xf32>, vector<4x2048xf32> -> vector<4x2048xf32>
    %c0_3 = arith.constant 0 : index
    %c0_4 = arith.constant 0 : index
    %3 = vector.load %arg3[%c0_3, %c0_4] : memref<4x1xf32, #tpu.memory_space<vmem>>, vector<4x1xf32>
    %4 = vector.broadcast %3 : vector<4x1xf32> to vector<4x2048xf32>
    %5 = arith.addf %2, %4 : vector<4x2048xf32>
    %c0_5 = arith.constant 0 : index
    %c0_6 = arith.constant 0 : index
    %6 = vector.load %arg4[%c0_5, %c0_6] : memref<4x2048xf32, #tpu.memory_space<vmem>>, vector<4x2048xf32>
    tpu.vector_store %arg4[%c0_5, %c0_6], %5 {strides = array<i32>} : memref<4x2048xf32, #tpu.memory_space<vmem>>, vector<4x2048xf32>,
    return
  }
  func.func @transform_0(%arg0: i32) -> (i32, i32) {
    %c0_i32 = arith.constant 0 : i32
    %c0_i32_0 = arith.constant 0 : i32
    %c0_i32_1 = arith.constant 0 : i32
    return %c0_i32, %c0_i32_0 : i32, i32
  }
  func.func @transform_1(%arg0: i32) -> (i32, i32) {
    %c0_i32 = arith.constant 0 : i32
    %c0_i32_0 = arith.constant 0 : i32
    %c0_i32_1 = arith.constant 0 : i32
    return %c0_i32, %c0_i32_0 : i32, i32
  }
  func.func @transform_2(%arg0: i32) -> (i32, i32) {
    %c0_i32 = arith.constant 0 : i32
    %c0_i32_0 = arith.constant 0 : i32
    %c0_i32_1 = arith.constant 0 : i32
    return %c0_i32, %c0_i32_0 : i32, i32
  }
  func.func @transform_3(%arg0: i32) -> (i32, i32) {
    %c0_i32 = arith.constant 0 : i32
    %c0_i32_0 = arith.constant 0 : i32
    %c0_i32_1 = arith.constant 0 : i32
    return %c0_i32, %c0_i32_0 : i32, i32
  }
}

module attributes {stable_mosaic.version = 11 : i64} {
  func.func @_fused_conv_kernel(%arg0: i32, %arg1: memref<8x64xf32, #tpu.memory_space<vmem>>, %arg2: memref<64x512xf32, #tpu.memory_space<vmem>>, %arg3: memref<8x1xf32, #tpu.memory_space<vmem>>, %arg4: memref<8x1xf32, #tpu.memory_space<vmem>>, %arg5: memref<8x512xf32, #tpu.memory_space<vmem>>) attributes {dimension_semantics = [#tpu.dimension_semantics<arbitrary>], iteration_bounds = array<i64: 1>, scalar_prefetch = 0 : i64, scratch_operands = 0 : i64, tpu.core_type = #tpu.core_type<tc>, window_params = [{pipeline_mode = #tpu.pipeline_mode<synchronous>, transform_indices = @transform_0, window_bounds = array<i64: 8, 64>}, {pipeline_mode = #tpu.pipeline_mode<synchronous>, transform_indices = @transform_1, window_bounds = array<i64: 64, 512>}, {pipeline_mode = #tpu.pipeline_mode<synchronous>, transform_indices = @transform_2, window_bounds = array<i64: 8, 1>}, {pipeline_mode = #tpu.pipeline_mode<synchronous>, transform_indices = @transform_3, window_bounds = array<i64: 8, 1>}, {pipeline_mode = #tpu.pipeline_mode<synchronous>, transform_indices = @transform_4, window_bounds = array<i64: 8, 512>}]} {
    %c0 = arith.constant 0 : index
    %c0_0 = arith.constant 0 : index
    %0 = vector.load %arg2[%c0, %c0_0] : memref<64x512xf32, #tpu.memory_space<vmem>>, vector<64x512xf32>
    %cst = arith.constant 0.000000e+00 : f32
    %1 = vector.broadcast %cst : f32 to vector<64x512xf32>
    %2 = arith.cmpf ogt, %0, %1 : vector<64x512xf32>
    %cst_1 = arith.constant 2.000000e-01 : f32
    %3 = vector.broadcast %cst_1 : f32 to vector<64x512xf32>
    %4 = arith.mulf %3, %0 : vector<64x512xf32>
    %5 = arith.select %2, %0, %4 : vector<64x512xi1>, vector<64x512xf32>
    %c0_2 = arith.constant 0 : index
    %c0_3 = arith.constant 0 : index
    %6 = vector.load %arg1[%c0_2, %c0_3] : memref<8x64xf32, #tpu.memory_space<vmem>>, vector<8x64xf32>
    %cst_4 = arith.constant dense<0.000000e+00> : vector<8x512xf32>
    %7 = tpu.matmul %6, %5, %cst_4 {dimension_numbers = #tpu.dot_dimension_numbers<[1], [0], [0], [1], [0, 0, 1, 1], [], []>} : vector<8x64xf32>, vector<64x512xf32>, vector<8x512xf32> -> vector<8x512xf32>
    %cst_5 = arith.constant dense<0.000000e+00> : vector<8xf32>
    %8 = vector.multi_reduction <add>, %7, %cst_5 [1] : vector<8x512xf32> to vector<8xf32>
    %9 = vector.shape_cast %8 : vector<8xf32> to vector<8x1xf32>
    %cst_6 = arith.constant 5.120000e+02 : f32
    %10 = vector.broadcast %cst_6 : f32 to vector<8x1xf32>
    %11 = arith.divf %9, %10 : vector<8x1xf32>
    %12 = vector.broadcast %11 : vector<8x1xf32> to vector<8x512xf32>
    %13 = arith.subf %7, %12 : vector<8x512xf32>
    %14 = arith.mulf %13, %13 : vector<8x512xf32>
    %cst_7 = arith.constant dense<0.000000e+00> : vector<8xf32>
    %15 = vector.multi_reduction <add>, %14, %cst_7 [1] : vector<8x512xf32> to vector<8xf32>
    %16 = vector.shape_cast %15 : vector<8xf32> to vector<8x1xf32>
    %cst_8 = arith.constant 5.120000e+02 : f32
    %17 = vector.broadcast %cst_8 : f32 to vector<8x1xf32>
    %18 = arith.divf %16, %17 : vector<8x1xf32>
    %19 = vector.broadcast %11 : vector<8x1xf32> to vector<8x512xf32>
    %20 = arith.subf %7, %19 : vector<8x512xf32>
    %cst_9 = arith.constant 9.99999974E-6 : f32
    %21 = vector.broadcast %cst_9 : f32 to vector<8x1xf32>
    %22 = arith.addf %18, %21 : vector<8x1xf32>
    %23 = math.rsqrt %22 : vector<8x1xf32>
    %c0_10 = arith.constant 0 : index
    %c0_11 = arith.constant 0 : index
    %24 = vector.load %arg3[%c0_10, %c0_11] : memref<8x1xf32, #tpu.memory_space<vmem>>, vector<8x1xf32>
    %25 = arith.mulf %23, %24 : vector<8x1xf32>
    %26 = vector.broadcast %25 : vector<8x1xf32> to vector<8x512xf32>
    %27 = arith.mulf %20, %26 : vector<8x512xf32>
    %c0_12 = arith.constant 0 : index
    %c0_13 = arith.constant 0 : index
    %28 = vector.load %arg4[%c0_12, %c0_13] : memref<8x1xf32, #tpu.memory_space<vmem>>, vector<8x1xf32>
    %29 = vector.broadcast %28 : vector<8x1xf32> to vector<8x512xf32>
    %30 = arith.addf %27, %29 : vector<8x512xf32>
    %c0_14 = arith.constant 0 : index
    %c0_15 = arith.constant 0 : index
    %31 = vector.load %arg5[%c0_14, %c0_15] : memref<8x512xf32, #tpu.memory_space<vmem>>, vector<8x512xf32>
    tpu.vector_store %arg5[%c0_14, %c0_15], %30 {strides = array<i32>} : memref<8x512xf32, #tpu.memory_space<vmem>>, vector<8x512xf32>,
    return
  }
  func.func @transform_0(%arg0: i32) -> (i32, i32) {
    %c0_i32 = arith.constant 0 : i32
    %c0_i32_0 = arith.constant 0 : i32
    %c0_i32_1 = arith.constant 0 : i32
    return %c0_i32, %c0_i32_0 : i32, i32
  }
  func.func @transform_1(%arg0: i32) -> (i32, i32) {
    %c0_i32 = arith.constant 0 : i32
    %c0_i32_0 = arith.constant 0 : i32
    %c0_i32_1 = arith.constant 0 : i32
    return %c0_i32, %c0_i32_0 : i32, i32
  }
  func.func @transform_2(%arg0: i32) -> (i32, i32) {
    %c0_i32 = arith.constant 0 : i32
    %c0_i32_0 = arith.constant 0 : i32
    %c0_i32_1 = arith.constant 0 : i32
    return %c0_i32, %c0_i32_0 : i32, i32
  }
  func.func @transform_3(%arg0: i32) -> (i32, i32) {
    %c0_i32 = arith.constant 0 : i32
    %c0_i32_0 = arith.constant 0 : i32
    %c0_i32_1 = arith.constant 0 : i32
    return %c0_i32, %c0_i32_0 : i32, i32
  }
  func.func @transform_4(%arg0: i32) -> (i32, i32) {
    %c0_i32 = arith.constant 0 : i32
    %c0_i32_0 = arith.constant 0 : i32
    %c0_i32_1 = arith.constant 0 : i32
    return %c0_i32, %c0_i32_0 : i32, i32
  }
}

module attributes {stable_mosaic.version = 11 : i64} {
  func.func @_fused_conv_kernel(%arg0: i32, %arg1: memref<16x128xf32, #tpu.memory_space<vmem>>, %arg2: memref<128x128xf32, #tpu.memory_space<vmem>>, %arg3: memref<16x1xf32, #tpu.memory_space<vmem>>, %arg4: memref<16x1xf32, #tpu.memory_space<vmem>>, %arg5: memref<16x128xf32, #tpu.memory_space<vmem>>) attributes {dimension_semantics = [#tpu.dimension_semantics<arbitrary>], iteration_bounds = array<i64: 1>, scalar_prefetch = 0 : i64, scratch_operands = 0 : i64, tpu.core_type = #tpu.core_type<tc>, window_params = [{pipeline_mode = #tpu.pipeline_mode<synchronous>, transform_indices = @transform_0, window_bounds = array<i64: 16, 128>}, {pipeline_mode = #tpu.pipeline_mode<synchronous>, transform_indices = @transform_1, window_bounds = array<i64: 128, 128>}, {pipeline_mode = #tpu.pipeline_mode<synchronous>, transform_indices = @transform_2, window_bounds = array<i64: 16, 1>}, {pipeline_mode = #tpu.pipeline_mode<synchronous>, transform_indices = @transform_3, window_bounds = array<i64: 16, 1>}, {pipeline_mode = #tpu.pipeline_mode<synchronous>, transform_indices = @transform_4, window_bounds = array<i64: 16, 128>}]} {
    %c0 = arith.constant 0 : index
    %c0_0 = arith.constant 0 : index
    %0 = vector.load %arg2[%c0, %c0_0] : memref<128x128xf32, #tpu.memory_space<vmem>>, vector<128x128xf32>
    %cst = arith.constant 0.000000e+00 : f32
    %1 = vector.broadcast %cst : f32 to vector<128x128xf32>
    %2 = arith.cmpf ogt, %0, %1 : vector<128x128xf32>
    %cst_1 = arith.constant 2.000000e-01 : f32
    %3 = vector.broadcast %cst_1 : f32 to vector<128x128xf32>
    %4 = arith.mulf %3, %0 : vector<128x128xf32>
    %5 = arith.select %2, %0, %4 : vector<128x128xi1>, vector<128x128xf32>
    %c0_2 = arith.constant 0 : index
    %c0_3 = arith.constant 0 : index
    %6 = vector.load %arg1[%c0_2, %c0_3] : memref<16x128xf32, #tpu.memory_space<vmem>>, vector<16x128xf32>
    %cst_4 = arith.constant dense<0.000000e+00> : vector<16x128xf32>
    %7 = tpu.matmul %6, %5, %cst_4 {dimension_numbers = #tpu.dot_dimension_numbers<[1], [0], [0], [1], [0, 0, 1, 1], [], []>} : vector<16x128xf32>, vector<128x128xf32>, vector<16x128xf32> -> vector<16x128xf32>
    %cst_5 = arith.constant dense<0.000000e+00> : vector<16xf32>
    %8 = vector.multi_reduction <add>, %7, %cst_5 [1] : vector<16x128xf32> to vector<16xf32>
    %9 = vector.shape_cast %8 : vector<16xf32> to vector<16x1xf32>
    %cst_6 = arith.constant 1.280000e+02 : f32
    %10 = vector.broadcast %cst_6 : f32 to vector<16x1xf32>
    %11 = arith.divf %9, %10 : vector<16x1xf32>
    %12 = vector.broadcast %11 : vector<16x1xf32> to vector<16x128xf32>
    %13 = arith.subf %7, %12 : vector<16x128xf32>
    %14 = arith.mulf %13, %13 : vector<16x128xf32>
    %cst_7 = arith.constant dense<0.000000e+00> : vector<16xf32>
    %15 = vector.multi_reduction <add>, %14, %cst_7 [1] : vector<16x128xf32> to vector<16xf32>
    %16 = vector.shape_cast %15 : vector<16xf32> to vector<16x1xf32>
    %cst_8 = arith.constant 1.280000e+02 : f32
    %17 = vector.broadcast %cst_8 : f32 to vector<16x1xf32>
    %18 = arith.divf %16, %17 : vector<16x1xf32>
    %19 = vector.broadcast %11 : vector<16x1xf32> to vector<16x128xf32>
    %20 = arith.subf %7, %19 : vector<16x128xf32>
    %cst_9 = arith.constant 9.99999974E-6 : f32
    %21 = vector.broadcast %cst_9 : f32 to vector<16x1xf32>
    %22 = arith.addf %18, %21 : vector<16x1xf32>
    %23 = math.rsqrt %22 : vector<16x1xf32>
    %c0_10 = arith.constant 0 : index
    %c0_11 = arith.constant 0 : index
    %24 = vector.load %arg3[%c0_10, %c0_11] : memref<16x1xf32, #tpu.memory_space<vmem>>, vector<16x1xf32>
    %25 = arith.mulf %23, %24 : vector<16x1xf32>
    %26 = vector.broadcast %25 : vector<16x1xf32> to vector<16x128xf32>
    %27 = arith.mulf %20, %26 : vector<16x128xf32>
    %c0_12 = arith.constant 0 : index
    %c0_13 = arith.constant 0 : index
    %28 = vector.load %arg4[%c0_12, %c0_13] : memref<16x1xf32, #tpu.memory_space<vmem>>, vector<16x1xf32>
    %29 = vector.broadcast %28 : vector<16x1xf32> to vector<16x128xf32>
    %30 = arith.addf %27, %29 : vector<16x128xf32>
    %c0_14 = arith.constant 0 : index
    %c0_15 = arith.constant 0 : index
    %31 = vector.load %arg5[%c0_14, %c0_15] : memref<16x128xf32, #tpu.memory_space<vmem>>, vector<16x128xf32>
    tpu.vector_store %arg5[%c0_14, %c0_15], %30 {strides = array<i32>} : memref<16x128xf32, #tpu.memory_space<vmem>>, vector<16x128xf32>,
    return
  }
  func.func @transform_0(%arg0: i32) -> (i32, i32) {
    %c0_i32 = arith.constant 0 : i32
    %c0_i32_0 = arith.constant 0 : i32
    %c0_i32_1 = arith.constant 0 : i32
    return %c0_i32, %c0_i32_0 : i32, i32
  }
  func.func @transform_1(%arg0: i32) -> (i32, i32) {
    %c0_i32 = arith.constant 0 : i32
    %c0_i32_0 = arith.constant 0 : i32
    %c0_i32_1 = arith.constant 0 : i32
    return %c0_i32, %c0_i32_0 : i32, i32
  }
  func.func @transform_2(%arg0: i32) -> (i32, i32) {
    %c0_i32 = arith.constant 0 : i32
    %c0_i32_0 = arith.constant 0 : i32
    %c0_i32_1 = arith.constant 0 : i32
    return %c0_i32, %c0_i32_0 : i32, i32
  }
  func.func @transform_3(%arg0: i32) -> (i32, i32) {
    %c0_i32 = arith.constant 0 : i32
    %c0_i32_0 = arith.constant 0 : i32
    %c0_i32_1 = arith.constant 0 : i32
    return %c0_i32, %c0_i32_0 : i32, i32
  }
  func.func @transform_4(%arg0: i32) -> (i32, i32) {
    %c0_i32 = arith.constant 0 : i32
    %c0_i32_0 = arith.constant 0 : i32
    %c0_i32_1 = arith.constant 0 : i32
    return %c0_i32, %c0_i32_0 : i32, i32
  }
}

module attributes {stable_mosaic.version = 11 : i64} {
  func.func @_fused_conv_kernel(%arg0: i32, %arg1: memref<32x256xf32, #tpu.memory_space<vmem>>, %arg2: memref<256x32xf32, #tpu.memory_space<vmem>>, %arg3: memref<32x1xf32, #tpu.memory_space<vmem>>, %arg4: memref<32x1xf32, #tpu.memory_space<vmem>>, %arg5: memref<32x32xf32, #tpu.memory_space<vmem>>) attributes {dimension_semantics = [#tpu.dimension_semantics<arbitrary>], iteration_bounds = array<i64: 1>, scalar_prefetch = 0 : i64, scratch_operands = 0 : i64, tpu.core_type = #tpu.core_type<tc>, window_params = [{pipeline_mode = #tpu.pipeline_mode<synchronous>, transform_indices = @transform_0, window_bounds = array<i64: 32, 256>}, {pipeline_mode = #tpu.pipeline_mode<synchronous>, transform_indices = @transform_1, window_bounds = array<i64: 256, 32>}, {pipeline_mode = #tpu.pipeline_mode<synchronous>, transform_indices = @transform_2, window_bounds = array<i64: 32, 1>}, {pipeline_mode = #tpu.pipeline_mode<synchronous>, transform_indices = @transform_3, window_bounds = array<i64: 32, 1>}, {pipeline_mode = #tpu.pipeline_mode<synchronous>, transform_indices = @transform_4, window_bounds = array<i64: 32, 32>}]} {
    %c0 = arith.constant 0 : index
    %c0_0 = arith.constant 0 : index
    %0 = vector.load %arg2[%c0, %c0_0] : memref<256x32xf32, #tpu.memory_space<vmem>>, vector<256x32xf32>
    %cst = arith.constant 0.000000e+00 : f32
    %1 = vector.broadcast %cst : f32 to vector<256x32xf32>
    %2 = arith.cmpf ogt, %0, %1 : vector<256x32xf32>
    %cst_1 = arith.constant 2.000000e-01 : f32
    %3 = vector.broadcast %cst_1 : f32 to vector<256x32xf32>
    %4 = arith.mulf %3, %0 : vector<256x32xf32>
    %5 = arith.select %2, %0, %4 : vector<256x32xi1>, vector<256x32xf32>
    %c0_2 = arith.constant 0 : index
    %c0_3 = arith.constant 0 : index
    %6 = vector.load %arg1[%c0_2, %c0_3] : memref<32x256xf32, #tpu.memory_space<vmem>>, vector<32x256xf32>
    %cst_4 = arith.constant dense<0.000000e+00> : vector<32x32xf32>
    %7 = tpu.matmul %6, %5, %cst_4 {dimension_numbers = #tpu.dot_dimension_numbers<[1], [0], [0], [1], [0, 0, 1, 1], [], []>} : vector<32x256xf32>, vector<256x32xf32>, vector<32x32xf32> -> vector<32x32xf32>
    %cst_5 = arith.constant dense<0.000000e+00> : vector<32xf32>
    %8 = vector.multi_reduction <add>, %7, %cst_5 [1] : vector<32x32xf32> to vector<32xf32>
    %9 = vector.shape_cast %8 : vector<32xf32> to vector<32x1xf32>
    %cst_6 = arith.constant 3.200000e+01 : f32
    %10 = vector.broadcast %cst_6 : f32 to vector<32x1xf32>
    %11 = arith.divf %9, %10 : vector<32x1xf32>
    %12 = vector.broadcast %11 : vector<32x1xf32> to vector<32x32xf32>
    %13 = arith.subf %7, %12 : vector<32x32xf32>
    %14 = arith.mulf %13, %13 : vector<32x32xf32>
    %cst_7 = arith.constant dense<0.000000e+00> : vector<32xf32>
    %15 = vector.multi_reduction <add>, %14, %cst_7 [1] : vector<32x32xf32> to vector<32xf32>
    %16 = vector.shape_cast %15 : vector<32xf32> to vector<32x1xf32>
    %cst_8 = arith.constant 3.200000e+01 : f32
    %17 = vector.broadcast %cst_8 : f32 to vector<32x1xf32>
    %18 = arith.divf %16, %17 : vector<32x1xf32>
    %19 = vector.broadcast %11 : vector<32x1xf32> to vector<32x32xf32>
    %20 = arith.subf %7, %19 : vector<32x32xf32>
    %cst_9 = arith.constant 9.99999974E-6 : f32
    %21 = vector.broadcast %cst_9 : f32 to vector<32x1xf32>
    %22 = arith.addf %18, %21 : vector<32x1xf32>
    %23 = math.rsqrt %22 : vector<32x1xf32>
    %c0_10 = arith.constant 0 : index
    %c0_11 = arith.constant 0 : index
    %24 = vector.load %arg3[%c0_10, %c0_11] : memref<32x1xf32, #tpu.memory_space<vmem>>, vector<32x1xf32>
    %25 = arith.mulf %23, %24 : vector<32x1xf32>
    %26 = vector.broadcast %25 : vector<32x1xf32> to vector<32x32xf32>
    %27 = arith.mulf %20, %26 : vector<32x32xf32>
    %c0_12 = arith.constant 0 : index
    %c0_13 = arith.constant 0 : index
    %28 = vector.load %arg4[%c0_12, %c0_13] : memref<32x1xf32, #tpu.memory_space<vmem>>, vector<32x1xf32>
    %29 = vector.broadcast %28 : vector<32x1xf32> to vector<32x32xf32>
    %30 = arith.addf %27, %29 : vector<32x32xf32>
    %c0_14 = arith.constant 0 : index
    %c0_15 = arith.constant 0 : index
    %31 = vector.load %arg5[%c0_14, %c0_15] : memref<32x32xf32, #tpu.memory_space<vmem>>, vector<32x32xf32>
    tpu.vector_store %arg5[%c0_14, %c0_15], %30 {strides = array<i32>} : memref<32x32xf32, #tpu.memory_space<vmem>>, vector<32x32xf32>,
    return
  }
  func.func @transform_0(%arg0: i32) -> (i32, i32) {
    %c0_i32 = arith.constant 0 : i32
    %c0_i32_0 = arith.constant 0 : i32
    %c0_i32_1 = arith.constant 0 : i32
    return %c0_i32, %c0_i32_0 : i32, i32
  }
  func.func @transform_1(%arg0: i32) -> (i32, i32) {
    %c0_i32 = arith.constant 0 : i32
    %c0_i32_0 = arith.constant 0 : i32
    %c0_i32_1 = arith.constant 0 : i32
    return %c0_i32, %c0_i32_0 : i32, i32
  }
  func.func @transform_2(%arg0: i32) -> (i32, i32) {
    %c0_i32 = arith.constant 0 : i32
    %c0_i32_0 = arith.constant 0 : i32
    %c0_i32_1 = arith.constant 0 : i32
    return %c0_i32, %c0_i32_0 : i32, i32
  }
  func.func @transform_3(%arg0: i32) -> (i32, i32) {
    %c0_i32 = arith.constant 0 : i32
    %c0_i32_0 = arith.constant 0 : i32
    %c0_i32_1 = arith.constant 0 : i32
    return %c0_i32, %c0_i32_0 : i32, i32
  }
  func.func @transform_4(%arg0: i32) -> (i32, i32) {
    %c0_i32 = arith.constant 0 : i32
    %c0_i32_0 = arith.constant 0 : i32
    %c0_i32_1 = arith.constant 0 : i32
    return %c0_i32, %c0_i32_0 : i32, i32
  }
}

module attributes {stable_mosaic.version = 11 : i64} {
  func.func @_fused_conv_kernel(%arg0: i32, %arg1: memref<32x128xf32, #tpu.memory_space<vmem>>, %arg2: memref<128x8xf32, #tpu.memory_space<vmem>>, %arg3: memref<32x1xf32, #tpu.memory_space<vmem>>, %arg4: memref<32x1xf32, #tpu.memory_space<vmem>>, %arg5: memref<32x8xf32, #tpu.memory_space<vmem>>) attributes {dimension_semantics = [#tpu.dimension_semantics<arbitrary>], iteration_bounds = array<i64: 1>, scalar_prefetch = 0 : i64, scratch_operands = 0 : i64, tpu.core_type = #tpu.core_type<tc>, window_params = [{pipeline_mode = #tpu.pipeline_mode<synchronous>, transform_indices = @transform_0, window_bounds = array<i64: 32, 128>}, {pipeline_mode = #tpu.pipeline_mode<synchronous>, transform_indices = @transform_1, window_bounds = array<i64: 128, 8>}, {pipeline_mode = #tpu.pipeline_mode<synchronous>, transform_indices = @transform_2, window_bounds = array<i64: 32, 1>}, {pipeline_mode = #tpu.pipeline_mode<synchronous>, transform_indices = @transform_3, window_bounds = array<i64: 32, 1>}, {pipeline_mode = #tpu.pipeline_mode<synchronous>, transform_indices = @transform_4, window_bounds = array<i64: 32, 8>}]} {
    %c0 = arith.constant 0 : index
    %c0_0 = arith.constant 0 : index
    %0 = vector.load %arg2[%c0, %c0_0] : memref<128x8xf32, #tpu.memory_space<vmem>>, vector<128x8xf32>
    %cst = arith.constant 0.000000e+00 : f32
    %1 = vector.broadcast %cst : f32 to vector<128x8xf32>
    %2 = arith.cmpf ogt, %0, %1 : vector<128x8xf32>
    %cst_1 = arith.constant 2.000000e-01 : f32
    %3 = vector.broadcast %cst_1 : f32 to vector<128x8xf32>
    %4 = arith.mulf %3, %0 : vector<128x8xf32>
    %5 = arith.select %2, %0, %4 : vector<128x8xi1>, vector<128x8xf32>
    %c0_2 = arith.constant 0 : index
    %c0_3 = arith.constant 0 : index
    %6 = vector.load %arg1[%c0_2, %c0_3] : memref<32x128xf32, #tpu.memory_space<vmem>>, vector<32x128xf32>
    %cst_4 = arith.constant dense<0.000000e+00> : vector<32x8xf32>
    %7 = tpu.matmul %6, %5, %cst_4 {dimension_numbers = #tpu.dot_dimension_numbers<[1], [0], [0], [1], [0, 0, 1, 1], [], []>} : vector<32x128xf32>, vector<128x8xf32>, vector<32x8xf32> -> vector<32x8xf32>
    %cst_5 = arith.constant dense<0.000000e+00> : vector<32xf32>
    %8 = vector.multi_reduction <add>, %7, %cst_5 [1] : vector<32x8xf32> to vector<32xf32>
    %9 = vector.shape_cast %8 : vector<32xf32> to vector<32x1xf32>
    %cst_6 = arith.constant 8.000000e+00 : f32
    %10 = vector.broadcast %cst_6 : f32 to vector<32x1xf32>
    %11 = arith.divf %9, %10 : vector<32x1xf32>
    %12 = vector.broadcast %11 : vector<32x1xf32> to vector<32x8xf32>
    %13 = arith.subf %7, %12 : vector<32x8xf32>
    %14 = arith.mulf %13, %13 : vector<32x8xf32>
    %cst_7 = arith.constant dense<0.000000e+00> : vector<32xf32>
    %15 = vector.multi_reduction <add>, %14, %cst_7 [1] : vector<32x8xf32> to vector<32xf32>
    %16 = vector.shape_cast %15 : vector<32xf32> to vector<32x1xf32>
    %cst_8 = arith.constant 8.000000e+00 : f32
    %17 = vector.broadcast %cst_8 : f32 to vector<32x1xf32>
    %18 = arith.divf %16, %17 : vector<32x1xf32>
    %19 = vector.broadcast %11 : vector<32x1xf32> to vector<32x8xf32>
    %20 = arith.subf %7, %19 : vector<32x8xf32>
    %cst_9 = arith.constant 9.99999974E-6 : f32
    %21 = vector.broadcast %cst_9 : f32 to vector<32x1xf32>
    %22 = arith.addf %18, %21 : vector<32x1xf32>
    %23 = math.rsqrt %22 : vector<32x1xf32>
    %c0_10 = arith.constant 0 : index
    %c0_11 = arith.constant 0 : index
    %24 = vector.load %arg3[%c0_10, %c0_11] : memref<32x1xf32, #tpu.memory_space<vmem>>, vector<32x1xf32>
    %25 = arith.mulf %23, %24 : vector<32x1xf32>
    %26 = vector.broadcast %25 : vector<32x1xf32> to vector<32x8xf32>
    %27 = arith.mulf %20, %26 : vector<32x8xf32>
    %c0_12 = arith.constant 0 : index
    %c0_13 = arith.constant 0 : index
    %28 = vector.load %arg4[%c0_12, %c0_13] : memref<32x1xf32, #tpu.memory_space<vmem>>, vector<32x1xf32>
    %29 = vector.broadcast %28 : vector<32x1xf32> to vector<32x8xf32>
    %30 = arith.addf %27, %29 : vector<32x8xf32>
    %c0_14 = arith.constant 0 : index
    %c0_15 = arith.constant 0 : index
    %31 = vector.load %arg5[%c0_14, %c0_15] : memref<32x8xf32, #tpu.memory_space<vmem>>, vector<32x8xf32>
    tpu.vector_store %arg5[%c0_14, %c0_15], %30 {strides = array<i32>} : memref<32x8xf32, #tpu.memory_space<vmem>>, vector<32x8xf32>,
    return
  }
  func.func @transform_0(%arg0: i32) -> (i32, i32) {
    %c0_i32 = arith.constant 0 : i32
    %c0_i32_0 = arith.constant 0 : i32
    %c0_i32_1 = arith.constant 0 : i32
    return %c0_i32, %c0_i32_0 : i32, i32
  }
  func.func @transform_1(%arg0: i32) -> (i32, i32) {
    %c0_i32 = arith.constant 0 : i32
    %c0_i32_0 = arith.constant 0 : i32
    %c0_i32_1 = arith.constant 0 : i32
    return %c0_i32, %c0_i32_0 : i32, i32
  }
  func.func @transform_2(%arg0: i32) -> (i32, i32) {
    %c0_i32 = arith.constant 0 : i32
    %c0_i32_0 = arith.constant 0 : i32
    %c0_i32_1 = arith.constant 0 : i32
    return %c0_i32, %c0_i32_0 : i32, i32
  }
  func.func @transform_3(%arg0: i32) -> (i32, i32) {
    %c0_i32 = arith.constant 0 : i32
    %c0_i32_0 = arith.constant 0 : i32
    %c0_i32_1 = arith.constant 0 : i32
    return %c0_i32, %c0_i32_0 : i32, i32
  }
  func.func @transform_4(%arg0: i32) -> (i32, i32) {
    %c0_i32 = arith.constant 0 : i32
    %c0_i32_0 = arith.constant 0 : i32
    %c0_i32_1 = arith.constant 0 : i32
    return %c0_i32, %c0_i32_0 : i32, i32
  }
}

module attributes {stable_mosaic.version = 11 : i64} {
  func.func @_fused_conv_kernel(%arg0: i32, %arg1: memref<32x32xf32, #tpu.memory_space<vmem>>, %arg2: memref<32x32xf32, #tpu.memory_space<vmem>>, %arg3: memref<32x1xf32, #tpu.memory_space<vmem>>, %arg4: memref<32x1xf32, #tpu.memory_space<vmem>>, %arg5: memref<32x32xf32, #tpu.memory_space<vmem>>) attributes {dimension_semantics = [#tpu.dimension_semantics<arbitrary>], iteration_bounds = array<i64: 1>, scalar_prefetch = 0 : i64, scratch_operands = 0 : i64, tpu.core_type = #tpu.core_type<tc>, window_params = [{pipeline_mode = #tpu.pipeline_mode<synchronous>, transform_indices = @transform_0, window_bounds = array<i64: 32, 32>}, {pipeline_mode = #tpu.pipeline_mode<synchronous>, transform_indices = @transform_1, window_bounds = array<i64: 32, 32>}, {pipeline_mode = #tpu.pipeline_mode<synchronous>, transform_indices = @transform_2, window_bounds = array<i64: 32, 1>}, {pipeline_mode = #tpu.pipeline_mode<synchronous>, transform_indices = @transform_3, window_bounds = array<i64: 32, 1>}, {pipeline_mode = #tpu.pipeline_mode<synchronous>, transform_indices = @transform_4, window_bounds = array<i64: 32, 32>}]} {
    %c0 = arith.constant 0 : index
    %c0_0 = arith.constant 0 : index
    %0 = vector.load %arg2[%c0, %c0_0] : memref<32x32xf32, #tpu.memory_space<vmem>>, vector<32x32xf32>
    %c0_1 = arith.constant 0 : index
    %c0_2 = arith.constant 0 : index
    %1 = vector.load %arg1[%c0_1, %c0_2] : memref<32x32xf32, #tpu.memory_space<vmem>>, vector<32x32xf32>
    %cst = arith.constant dense<0.000000e+00> : vector<32x32xf32>
    %2 = tpu.matmul %1, %0, %cst {dimension_numbers = #tpu.dot_dimension_numbers<[1], [0], [0], [1], [0, 0, 1, 1], [], []>} : vector<32x32xf32>, vector<32x32xf32>, vector<32x32xf32> -> vector<32x32xf32>
    %cst_3 = arith.constant dense<0.000000e+00> : vector<32xf32>
    %3 = vector.multi_reduction <add>, %2, %cst_3 [1] : vector<32x32xf32> to vector<32xf32>
    %4 = vector.shape_cast %3 : vector<32xf32> to vector<32x1xf32>
    %cst_4 = arith.constant 3.200000e+01 : f32
    %5 = vector.broadcast %cst_4 : f32 to vector<32x1xf32>
    %6 = arith.divf %4, %5 : vector<32x1xf32>
    %7 = vector.broadcast %6 : vector<32x1xf32> to vector<32x32xf32>
    %8 = arith.subf %2, %7 : vector<32x32xf32>
    %9 = arith.mulf %8, %8 : vector<32x32xf32>
    %cst_5 = arith.constant dense<0.000000e+00> : vector<32xf32>
    %10 = vector.multi_reduction <add>, %9, %cst_5 [1] : vector<32x32xf32> to vector<32xf32>
    %11 = vector.shape_cast %10 : vector<32xf32> to vector<32x1xf32>
    %cst_6 = arith.constant 3.200000e+01 : f32
    %12 = vector.broadcast %cst_6 : f32 to vector<32x1xf32>
    %13 = arith.divf %11, %12 : vector<32x1xf32>
    %14 = vector.broadcast %6 : vector<32x1xf32> to vector<32x32xf32>
    %15 = arith.subf %2, %14 : vector<32x32xf32>
    %cst_7 = arith.constant 9.99999974E-6 : f32
    %16 = vector.broadcast %cst_7 : f32 to vector<32x1xf32>
    %17 = arith.addf %13, %16 : vector<32x1xf32>
    %18 = math.rsqrt %17 : vector<32x1xf32>
    %c0_8 = arith.constant 0 : index
    %c0_9 = arith.constant 0 : index
    %19 = vector.load %arg3[%c0_8, %c0_9] : memref<32x1xf32, #tpu.memory_space<vmem>>, vector<32x1xf32>
    %20 = arith.mulf %18, %19 : vector<32x1xf32>
    %21 = vector.broadcast %20 : vector<32x1xf32> to vector<32x32xf32>
    %22 = arith.mulf %15, %21 : vector<32x32xf32>
    %c0_10 = arith.constant 0 : index
    %c0_11 = arith.constant 0 : index
    %23 = vector.load %arg4[%c0_10, %c0_11] : memref<32x1xf32, #tpu.memory_space<vmem>>, vector<32x1xf32>
    %24 = vector.broadcast %23 : vector<32x1xf32> to vector<32x32xf32>
    %25 = arith.addf %22, %24 : vector<32x32xf32>
    %c0_12 = arith.constant 0 : index
    %c0_13 = arith.constant 0 : index
    %26 = vector.load %arg5[%c0_12, %c0_13] : memref<32x32xf32, #tpu.memory_space<vmem>>, vector<32x32xf32>
    tpu.vector_store %arg5[%c0_12, %c0_13], %25 {strides = array<i32>} : memref<32x32xf32, #tpu.memory_space<vmem>>, vector<32x32xf32>,
    return
  }
  func.func @transform_0(%arg0: i32) -> (i32, i32) {
    %c0_i32 = arith.constant 0 : i32
    %c0_i32_0 = arith.constant 0 : i32
    %c0_i32_1 = arith.constant 0 : i32
    return %c0_i32, %c0_i32_0 : i32, i32
  }
  func.func @transform_1(%arg0: i32) -> (i32, i32) {
    %c0_i32 = arith.constant 0 : i32
    %c0_i32_0 = arith.constant 0 : i32
    %c0_i32_1 = arith.constant 0 : i32
    return %c0_i32, %c0_i32_0 : i32, i32
  }
  func.func @transform_2(%arg0: i32) -> (i32, i32) {
    %c0_i32 = arith.constant 0 : i32
    %c0_i32_0 = arith.constant 0 : i32
    %c0_i32_1 = arith.constant 0 : i32
    return %c0_i32, %c0_i32_0 : i32, i32
  }
  func.func @transform_3(%arg0: i32) -> (i32, i32) {
    %c0_i32 = arith.constant 0 : i32
    %c0_i32_0 = arith.constant 0 : i32
    %c0_i32_1 = arith.constant 0 : i32
    return %c0_i32, %c0_i32_0 : i32, i32
  }
  func.func @transform_4(%arg0: i32) -> (i32, i32) {
    %c0_i32 = arith.constant 0 : i32
    %c0_i32_0 = arith.constant 0 : i32
    %c0_i32_1 = arith.constant 0 : i32
    return %c0_i32, %c0_i32_0 : i32, i32
  }
}

module attributes {stable_mosaic.version = 11 : i64} {
  func.func @_fused_conv_kernel(%arg0: i32, %arg1: memref<16x576xf32, #tpu.memory_space<vmem>>, %arg2: memref<576x128xf32, #tpu.memory_space<vmem>>, %arg3: memref<16x1xf32, #tpu.memory_space<vmem>>, %arg4: memref<16x1xf32, #tpu.memory_space<vmem>>, %arg5: memref<16x128xf32, #tpu.memory_space<vmem>>) attributes {dimension_semantics = [#tpu.dimension_semantics<arbitrary>], iteration_bounds = array<i64: 1>, scalar_prefetch = 0 : i64, scratch_operands = 0 : i64, tpu.core_type = #tpu.core_type<tc>, window_params = [{pipeline_mode = #tpu.pipeline_mode<synchronous>, transform_indices = @transform_0, window_bounds = array<i64: 16, 576>}, {pipeline_mode = #tpu.pipeline_mode<synchronous>, transform_indices = @transform_1, window_bounds = array<i64: 576, 128>}, {pipeline_mode = #tpu.pipeline_mode<synchronous>, transform_indices = @transform_2, window_bounds = array<i64: 16, 1>}, {pipeline_mode = #tpu.pipeline_mode<synchronous>, transform_indices = @transform_3, window_bounds = array<i64: 16, 1>}, {pipeline_mode = #tpu.pipeline_mode<synchronous>, transform_indices = @transform_4, window_bounds = array<i64: 16, 128>}]} {
    %c0 = arith.constant 0 : index
    %c0_0 = arith.constant 0 : index
    %0 = vector.load %arg2[%c0, %c0_0] : memref<576x128xf32, #tpu.memory_space<vmem>>, vector<576x128xf32>
    %c0_1 = arith.constant 0 : index
    %c0_2 = arith.constant 0 : index
    %1 = vector.load %arg1[%c0_1, %c0_2] : memref<16x576xf32, #tpu.memory_space<vmem>>, vector<16x576xf32>
    %cst = arith.constant dense<0.000000e+00> : vector<16x128xf32>
    %2 = tpu.matmul %1, %0, %cst {dimension_numbers = #tpu.dot_dimension_numbers<[1], [0], [0], [1], [0, 0, 1, 1], [], []>} : vector<16x576xf32>, vector<576x128xf32>, vector<16x128xf32> -> vector<16x128xf32>
    %cst_3 = arith.constant dense<0.000000e+00> : vector<16xf32>
    %3 = vector.multi_reduction <add>, %2, %cst_3 [1] : vector<16x128xf32> to vector<16xf32>
    %4 = vector.shape_cast %3 : vector<16xf32> to vector<16x1xf32>
    %cst_4 = arith.constant 1.280000e+02 : f32
    %5 = vector.broadcast %cst_4 : f32 to vector<16x1xf32>
    %6 = arith.divf %4, %5 : vector<16x1xf32>
    %7 = vector.broadcast %6 : vector<16x1xf32> to vector<16x128xf32>
    %8 = arith.subf %2, %7 : vector<16x128xf32>
    %9 = arith.mulf %8, %8 : vector<16x128xf32>
    %cst_5 = arith.constant dense<0.000000e+00> : vector<16xf32>
    %10 = vector.multi_reduction <add>, %9, %cst_5 [1] : vector<16x128xf32> to vector<16xf32>
    %11 = vector.shape_cast %10 : vector<16xf32> to vector<16x1xf32>
    %cst_6 = arith.constant 1.280000e+02 : f32
    %12 = vector.broadcast %cst_6 : f32 to vector<16x1xf32>
    %13 = arith.divf %11, %12 : vector<16x1xf32>
    %14 = vector.broadcast %6 : vector<16x1xf32> to vector<16x128xf32>
    %15 = arith.subf %2, %14 : vector<16x128xf32>
    %cst_7 = arith.constant 9.99999974E-6 : f32
    %16 = vector.broadcast %cst_7 : f32 to vector<16x1xf32>
    %17 = arith.addf %13, %16 : vector<16x1xf32>
    %18 = math.rsqrt %17 : vector<16x1xf32>
    %c0_8 = arith.constant 0 : index
    %c0_9 = arith.constant 0 : index
    %19 = vector.load %arg3[%c0_8, %c0_9] : memref<16x1xf32, #tpu.memory_space<vmem>>, vector<16x1xf32>
    %20 = arith.mulf %18, %19 : vector<16x1xf32>
    %21 = vector.broadcast %20 : vector<16x1xf32> to vector<16x128xf32>
    %22 = arith.mulf %15, %21 : vector<16x128xf32>
    %c0_10 = arith.constant 0 : index
    %c0_11 = arith.constant 0 : index
    %23 = vector.load %arg4[%c0_10, %c0_11] : memref<16x1xf32, #tpu.memory_space<vmem>>, vector<16x1xf32>
    %24 = vector.broadcast %23 : vector<16x1xf32> to vector<16x128xf32>
    %25 = arith.addf %22, %24 : vector<16x128xf32>
    %c0_12 = arith.constant 0 : index
    %c0_13 = arith.constant 0 : index
    %26 = vector.load %arg5[%c0_12, %c0_13] : memref<16x128xf32, #tpu.memory_space<vmem>>, vector<16x128xf32>
    tpu.vector_store %arg5[%c0_12, %c0_13], %25 {strides = array<i32>} : memref<16x128xf32, #tpu.memory_space<vmem>>, vector<16x128xf32>,
    return
  }
  func.func @transform_0(%arg0: i32) -> (i32, i32) {
    %c0_i32 = arith.constant 0 : i32
    %c0_i32_0 = arith.constant 0 : i32
    %c0_i32_1 = arith.constant 0 : i32
    return %c0_i32, %c0_i32_0 : i32, i32
  }
  func.func @transform_1(%arg0: i32) -> (i32, i32) {
    %c0_i32 = arith.constant 0 : i32
    %c0_i32_0 = arith.constant 0 : i32
    %c0_i32_1 = arith.constant 0 : i32
    return %c0_i32, %c0_i32_0 : i32, i32
  }
  func.func @transform_2(%arg0: i32) -> (i32, i32) {
    %c0_i32 = arith.constant 0 : i32
    %c0_i32_0 = arith.constant 0 : i32
    %c0_i32_1 = arith.constant 0 : i32
    return %c0_i32, %c0_i32_0 : i32, i32
  }
  func.func @transform_3(%arg0: i32) -> (i32, i32) {
    %c0_i32 = arith.constant 0 : i32
    %c0_i32_0 = arith.constant 0 : i32
    %c0_i32_1 = arith.constant 0 : i32
    return %c0_i32, %c0_i32_0 : i32, i32
  }
  func.func @transform_4(%arg0: i32) -> (i32, i32) {
    %c0_i32 = arith.constant 0 : i32
    %c0_i32_0 = arith.constant 0 : i32
    %c0_i32_1 = arith.constant 0 : i32
    return %c0_i32, %c0_i32_0 : i32, i32
  }
}

module attributes {stable_mosaic.version = 11 : i64} {
  func.func @_fused_conv_kernel(%arg0: i32, %arg1: memref<8x288xf32, #tpu.memory_space<vmem>>, %arg2: memref<288x512xf32, #tpu.memory_space<vmem>>, %arg3: memref<8x1xf32, #tpu.memory_space<vmem>>, %arg4: memref<8x1xf32, #tpu.memory_space<vmem>>, %arg5: memref<8x512xf32, #tpu.memory_space<vmem>>) attributes {dimension_semantics = [#tpu.dimension_semantics<arbitrary>], iteration_bounds = array<i64: 1>, scalar_prefetch = 0 : i64, scratch_operands = 0 : i64, tpu.core_type = #tpu.core_type<tc>, window_params = [{pipeline_mode = #tpu.pipeline_mode<synchronous>, transform_indices = @transform_0, window_bounds = array<i64: 8, 288>}, {pipeline_mode = #tpu.pipeline_mode<synchronous>, transform_indices = @transform_1, window_bounds = array<i64: 288, 512>}, {pipeline_mode = #tpu.pipeline_mode<synchronous>, transform_indices = @transform_2, window_bounds = array<i64: 8, 1>}, {pipeline_mode = #tpu.pipeline_mode<synchronous>, transform_indices = @transform_3, window_bounds = array<i64: 8, 1>}, {pipeline_mode = #tpu.pipeline_mode<synchronous>, transform_indices = @transform_4, window_bounds = array<i64: 8, 512>}]} {
    %c0 = arith.constant 0 : index
    %c0_0 = arith.constant 0 : index
    %0 = vector.load %arg2[%c0, %c0_0] : memref<288x512xf32, #tpu.memory_space<vmem>>, vector<288x512xf32>
    %c0_1 = arith.constant 0 : index
    %c0_2 = arith.constant 0 : index
    %1 = vector.load %arg1[%c0_1, %c0_2] : memref<8x288xf32, #tpu.memory_space<vmem>>, vector<8x288xf32>
    %cst = arith.constant dense<0.000000e+00> : vector<8x512xf32>
    %2 = tpu.matmul %1, %0, %cst {dimension_numbers = #tpu.dot_dimension_numbers<[1], [0], [0], [1], [0, 0, 1, 1], [], []>} : vector<8x288xf32>, vector<288x512xf32>, vector<8x512xf32> -> vector<8x512xf32>
    %cst_3 = arith.constant dense<0.000000e+00> : vector<8xf32>
    %3 = vector.multi_reduction <add>, %2, %cst_3 [1] : vector<8x512xf32> to vector<8xf32>
    %4 = vector.shape_cast %3 : vector<8xf32> to vector<8x1xf32>
    %cst_4 = arith.constant 5.120000e+02 : f32
    %5 = vector.broadcast %cst_4 : f32 to vector<8x1xf32>
    %6 = arith.divf %4, %5 : vector<8x1xf32>
    %7 = vector.broadcast %6 : vector<8x1xf32> to vector<8x512xf32>
    %8 = arith.subf %2, %7 : vector<8x512xf32>
    %9 = arith.mulf %8, %8 : vector<8x512xf32>
    %cst_5 = arith.constant dense<0.000000e+00> : vector<8xf32>
    %10 = vector.multi_reduction <add>, %9, %cst_5 [1] : vector<8x512xf32> to vector<8xf32>
    %11 = vector.shape_cast %10 : vector<8xf32> to vector<8x1xf32>
    %cst_6 = arith.constant 5.120000e+02 : f32
    %12 = vector.broadcast %cst_6 : f32 to vector<8x1xf32>
    %13 = arith.divf %11, %12 : vector<8x1xf32>
    %14 = vector.broadcast %6 : vector<8x1xf32> to vector<8x512xf32>
    %15 = arith.subf %2, %14 : vector<8x512xf32>
    %cst_7 = arith.constant 9.99999974E-6 : f32
    %16 = vector.broadcast %cst_7 : f32 to vector<8x1xf32>
    %17 = arith.addf %13, %16 : vector<8x1xf32>
    %18 = math.rsqrt %17 : vector<8x1xf32>
    %c0_8 = arith.constant 0 : index
    %c0_9 = arith.constant 0 : index
    %19 = vector.load %arg3[%c0_8, %c0_9] : memref<8x1xf32, #tpu.memory_space<vmem>>, vector<8x1xf32>
    %20 = arith.mulf %18, %19 : vector<8x1xf32>
    %21 = vector.broadcast %20 : vector<8x1xf32> to vector<8x512xf32>
    %22 = arith.mulf %15, %21 : vector<8x512xf32>
    %c0_10 = arith.constant 0 : index
    %c0_11 = arith.constant 0 : index
    %23 = vector.load %arg4[%c0_10, %c0_11] : memref<8x1xf32, #tpu.memory_space<vmem>>, vector<8x1xf32>
    %24 = vector.broadcast %23 : vector<8x1xf32> to vector<8x512xf32>
    %25 = arith.addf %22, %24 : vector<8x512xf32>
    %c0_12 = arith.constant 0 : index
    %c0_13 = arith.constant 0 : index
    %26 = vector.load %arg5[%c0_12, %c0_13] : memref<8x512xf32, #tpu.memory_space<vmem>>, vector<8x512xf32>
    tpu.vector_store %arg5[%c0_12, %c0_13], %25 {strides = array<i32>} : memref<8x512xf32, #tpu.memory_space<vmem>>, vector<8x512xf32>,
    return
  }
  func.func @transform_0(%arg0: i32) -> (i32, i32) {
    %c0_i32 = arith.constant 0 : i32
    %c0_i32_0 = arith.constant 0 : i32
    %c0_i32_1 = arith.constant 0 : i32
    return %c0_i32, %c0_i32_0 : i32, i32
  }
  func.func @transform_1(%arg0: i32) -> (i32, i32) {
    %c0_i32 = arith.constant 0 : i32
    %c0_i32_0 = arith.constant 0 : i32
    %c0_i32_1 = arith.constant 0 : i32
    return %c0_i32, %c0_i32_0 : i32, i32
  }
  func.func @transform_2(%arg0: i32) -> (i32, i32) {
    %c0_i32 = arith.constant 0 : i32
    %c0_i32_0 = arith.constant 0 : i32
    %c0_i32_1 = arith.constant 0 : i32
    return %c0_i32, %c0_i32_0 : i32, i32
  }
  func.func @transform_3(%arg0: i32) -> (i32, i32) {
    %c0_i32 = arith.constant 0 : i32
    %c0_i32_0 = arith.constant 0 : i32
    %c0_i32_1 = arith.constant 0 : i32
    return %c0_i32, %c0_i32_0 : i32, i32
  }
  func.func @transform_4(%arg0: i32) -> (i32, i32) {
    %c0_i32 = arith.constant 0 : i32
    %c0_i32_0 = arith.constant 0 : i32
    %c0_i32_1 = arith.constant 0 : i32
    return %c0_i32, %c0_i32_0 : i32, i32
  }
}

module attributes {stable_mosaic.version = 11 : i64} {
  func.func @_fused_conv_kernel(%arg0: i32, %arg1: memref<4x144xf32, #tpu.memory_space<vmem>>, %arg2: memref<144x2048xf32, #tpu.memory_space<vmem>>, %arg3: memref<4x1xf32, #tpu.memory_space<vmem>>, %arg4: memref<4x1xf32, #tpu.memory_space<vmem>>, %arg5: memref<4x2048xf32, #tpu.memory_space<vmem>>) attributes {dimension_semantics = [#tpu.dimension_semantics<arbitrary>], iteration_bounds = array<i64: 1>, scalar_prefetch = 0 : i64, scratch_operands = 0 : i64, tpu.core_type = #tpu.core_type<tc>, window_params = [{pipeline_mode = #tpu.pipeline_mode<synchronous>, transform_indices = @transform_0, window_bounds = array<i64: 4, 144>}, {pipeline_mode = #tpu.pipeline_mode<synchronous>, transform_indices = @transform_1, window_bounds = array<i64: 144, 2048>}, {pipeline_mode = #tpu.pipeline_mode<synchronous>, transform_indices = @transform_2, window_bounds = array<i64: 4, 1>}, {pipeline_mode = #tpu.pipeline_mode<synchronous>, transform_indices = @transform_3, window_bounds = array<i64: 4, 1>}, {pipeline_mode = #tpu.pipeline_mode<synchronous>, transform_indices = @transform_4, window_bounds = array<i64: 4, 2048>}]} {
    %c0 = arith.constant 0 : index
    %c0_0 = arith.constant 0 : index
    %0 = vector.load %arg2[%c0, %c0_0] : memref<144x2048xf32, #tpu.memory_space<vmem>>, vector<144x2048xf32>
    %c0_1 = arith.constant 0 : index
    %c0_2 = arith.constant 0 : index
    %1 = vector.load %arg1[%c0_1, %c0_2] : memref<4x144xf32, #tpu.memory_space<vmem>>, vector<4x144xf32>
    %cst = arith.constant dense<0.000000e+00> : vector<4x2048xf32>
    %2 = tpu.matmul %1, %0, %cst {dimension_numbers = #tpu.dot_dimension_numbers<[1], [0], [0], [1], [0, 0, 1, 1], [], []>} : vector<4x144xf32>, vector<144x2048xf32>, vector<4x2048xf32> -> vector<4x2048xf32>
    %cst_3 = arith.constant dense<0.000000e+00> : vector<4xf32>
    %3 = vector.multi_reduction <add>, %2, %cst_3 [1] : vector<4x2048xf32> to vector<4xf32>
    %4 = vector.shape_cast %3 : vector<4xf32> to vector<4x1xf32>
    %cst_4 = arith.constant 2.048000e+03 : f32
    %5 = vector.broadcast %cst_4 : f32 to vector<4x1xf32>
    %6 = arith.divf %4, %5 : vector<4x1xf32>
    %7 = vector.broadcast %6 : vector<4x1xf32> to vector<4x2048xf32>
    %8 = arith.subf %2, %7 : vector<4x2048xf32>
    %9 = arith.mulf %8, %8 : vector<4x2048xf32>
    %cst_5 = arith.constant dense<0.000000e+00> : vector<4xf32>
    %10 = vector.multi_reduction <add>, %9, %cst_5 [1] : vector<4x2048xf32> to vector<4xf32>
    %11 = vector.shape_cast %10 : vector<4xf32> to vector<4x1xf32>
    %cst_6 = arith.constant 2.048000e+03 : f32
    %12 = vector.broadcast %cst_6 : f32 to vector<4x1xf32>
    %13 = arith.divf %11, %12 : vector<4x1xf32>
    %14 = vector.broadcast %6 : vector<4x1xf32> to vector<4x2048xf32>
    %15 = arith.subf %2, %14 : vector<4x2048xf32>
    %cst_7 = arith.constant 9.99999974E-6 : f32
    %16 = vector.broadcast %cst_7 : f32 to vector<4x1xf32>
    %17 = arith.addf %13, %16 : vector<4x1xf32>
    %18 = math.rsqrt %17 : vector<4x1xf32>
    %c0_8 = arith.constant 0 : index
    %c0_9 = arith.constant 0 : index
    %19 = vector.load %arg3[%c0_8, %c0_9] : memref<4x1xf32, #tpu.memory_space<vmem>>, vector<4x1xf32>
    %20 = arith.mulf %18, %19 : vector<4x1xf32>
    %21 = vector.broadcast %20 : vector<4x1xf32> to vector<4x2048xf32>
    %22 = arith.mulf %15, %21 : vector<4x2048xf32>
    %c0_10 = arith.constant 0 : index
    %c0_11 = arith.constant 0 : index
    %23 = vector.load %arg4[%c0_10, %c0_11] : memref<4x1xf32, #tpu.memory_space<vmem>>, vector<4x1xf32>
    %24 = vector.broadcast %23 : vector<4x1xf32> to vector<4x2048xf32>
    %25 = arith.addf %22, %24 : vector<4x2048xf32>
    %c0_12 = arith.constant 0 : index
    %c0_13 = arith.constant 0 : index
    %26 = vector.load %arg5[%c0_12, %c0_13] : memref<4x2048xf32, #tpu.memory_space<vmem>>, vector<4x2048xf32>
    tpu.vector_store %arg5[%c0_12, %c0_13], %25 {strides = array<i32>} : memref<4x2048xf32, #tpu.memory_space<vmem>>, vector<4x2048xf32>,
    return
  }
  func.func @transform_0(%arg0: i32) -> (i32, i32) {
    %c0_i32 = arith.constant 0 : i32
    %c0_i32_0 = arith.constant 0 : i32
    %c0_i32_1 = arith.constant 0 : i32
    return %c0_i32, %c0_i32_0 : i32, i32
  }
  func.func @transform_1(%arg0: i32) -> (i32, i32) {
    %c0_i32 = arith.constant 0 : i32
    %c0_i32_0 = arith.constant 0 : i32
    %c0_i32_1 = arith.constant 0 : i32
    return %c0_i32, %c0_i32_0 : i32, i32
  }
  func.func @transform_2(%arg0: i32) -> (i32, i32) {
    %c0_i32 = arith.constant 0 : i32
    %c0_i32_0 = arith.constant 0 : i32
    %c0_i32_1 = arith.constant 0 : i32
    return %c0_i32, %c0_i32_0 : i32, i32
  }
  func.func @transform_3(%arg0: i32) -> (i32, i32) {
    %c0_i32 = arith.constant 0 : i32
    %c0_i32_0 = arith.constant 0 : i32
    %c0_i32_1 = arith.constant 0 : i32
    return %c0_i32, %c0_i32_0 : i32, i32
  }
  func.func @transform_4(%arg0: i32) -> (i32, i32) {
    %c0_i32 = arith.constant 0 : i32
    %c0_i32_0 = arith.constant 0 : i32
    %c0_i32_1 = arith.constant 0 : i32
    return %c0_i32, %c0_i32_0 : i32, i32
  }
}

module attributes {stable_mosaic.version = 11 : i64} {
  func.func @_fused_conv_kernel(%arg0: i32, %arg1: memref<8x72xf32, #tpu.memory_space<vmem>>, %arg2: memref<72x2048xf32, #tpu.memory_space<vmem>>, %arg3: memref<8x1xf32, #tpu.memory_space<vmem>>, %arg4: memref<8x2048xf32, #tpu.memory_space<vmem>>) attributes {dimension_semantics = [#tpu.dimension_semantics<arbitrary>], iteration_bounds = array<i64: 1>, scalar_prefetch = 0 : i64, scratch_operands = 0 : i64, tpu.core_type = #tpu.core_type<tc>, window_params = [{pipeline_mode = #tpu.pipeline_mode<synchronous>, transform_indices = @transform_0, window_bounds = array<i64: 8, 72>}, {pipeline_mode = #tpu.pipeline_mode<synchronous>, transform_indices = @transform_1, window_bounds = array<i64: 72, 2048>}, {pipeline_mode = #tpu.pipeline_mode<synchronous>, transform_indices = @transform_2, window_bounds = array<i64: 8, 1>}, {pipeline_mode = #tpu.pipeline_mode<synchronous>, transform_indices = @transform_3, window_bounds = array<i64: 8, 2048>}]} {
    %c0 = arith.constant 0 : index
    %c0_0 = arith.constant 0 : index
    %0 = vector.load %arg2[%c0, %c0_0] : memref<72x2048xf32, #tpu.memory_space<vmem>>, vector<72x2048xf32>
    %cst = arith.constant 0.000000e+00 : f32
    %1 = vector.broadcast %cst : f32 to vector<72x2048xf32>
    %2 = arith.maximumf %0, %1 : vector<72x2048xf32>
    %c0_1 = arith.constant 0 : index
    %c0_2 = arith.constant 0 : index
    %3 = vector.load %arg1[%c0_1, %c0_2] : memref<8x72xf32, #tpu.memory_space<vmem>>, vector<8x72xf32>
    %cst_3 = arith.constant dense<0.000000e+00> : vector<8x2048xf32>
    %4 = tpu.matmul %3, %2, %cst_3 {dimension_numbers = #tpu.dot_dimension_numbers<[1], [0], [0], [1], [0, 0, 1, 1], [], []>} : vector<8x72xf32>, vector<72x2048xf32>, vector<8x2048xf32> -> vector<8x2048xf32>
    %c0_4 = arith.constant 0 : index
    %c0_5 = arith.constant 0 : index
    %5 = vector.load %arg3[%c0_4, %c0_5] : memref<8x1xf32, #tpu.memory_space<vmem>>, vector<8x1xf32>
    %6 = vector.broadcast %5 : vector<8x1xf32> to vector<8x2048xf32>
    %7 = arith.addf %4, %6 : vector<8x2048xf32>
    %c0_6 = arith.constant 0 : index
    %c0_7 = arith.constant 0 : index
    %8 = vector.load %arg4[%c0_6, %c0_7] : memref<8x2048xf32, #tpu.memory_space<vmem>>, vector<8x2048xf32>
    tpu.vector_store %arg4[%c0_6, %c0_7], %7 {strides = array<i32>} : memref<8x2048xf32, #tpu.memory_space<vmem>>, vector<8x2048xf32>,
    return
  }
  func.func @transform_0(%arg0: i32) -> (i32, i32) {
    %c0_i32 = arith.constant 0 : i32
    %c0_i32_0 = arith.constant 0 : i32
    %c0_i32_1 = arith.constant 0 : i32
    return %c0_i32, %c0_i32_0 : i32, i32
  }
  func.func @transform_1(%arg0: i32) -> (i32, i32) {
    %c0_i32 = arith.constant 0 : i32
    %c0_i32_0 = arith.constant 0 : i32
    %c0_i32_1 = arith.constant 0 : i32
    return %c0_i32, %c0_i32_0 : i32, i32
  }
  func.func @transform_2(%arg0: i32) -> (i32, i32) {
    %c0_i32 = arith.constant 0 : i32
    %c0_i32_0 = arith.constant 0 : i32
    %c0_i32_1 = arith.constant 0 : i32
    return %c0_i32, %c0_i32_0 : i32, i32
  }
  func.func @transform_3(%arg0: i32) -> (i32, i32) {
    %c0_i32 = arith.constant 0 : i32
    %c0_i32_0 = arith.constant 0 : i32
    %c0_i32_1 = arith.constant 0 : i32
    return %c0_i32, %c0_i32_0 : i32, i32
  }
}

</mosaic_0001>

<bundles_post_ra>
// kernel: unet_forward.10
= control target key start
LH: loop header
LB: loop body
LE: loop exit
PB: predicated region body
PF: predicated region fallthrough
CT: control target
= control target key end

     0   :  { %v712_v3 = vmov 0.0   ;;  %vm85_vm0 = vcmask 261120   ;;  %s982_s1 = inlined_call_operand.vmem [shape: f32[32,2048], index: 1, kind: input, shape index: {}]   ;;  %s983_s0 = inlined_call_operand.vmem [shape: f32[4,32], index: 0, kind: input, shape index: {}]   ;;  %s984_s2 = inlined_call_operand.vmem [shape: f32[4,1], index: 2, kind: input, shape index: {}]   ;;  %s985_s3 = inlined_call_operand.vmem [shape: f32[4,2048], index: 3, kind: output, shape index: {}]  }
   0x1   :  { %v63_v0 = vld [vmem:[%s982_s1 + $0x188] sm:$0xff]  ;;  %v65_v1 = vld [vmem:[%s982_s1 + $0x198] sm:$0xff]  ;;  %v62_v2 = vld [vmem:[%s982_s1 + $0x180] sm:$0xff]  ;;  %153 = vmatprep.mubr.f32.mxu0 %v712_v3  ;;  %224 = vmatprep.mubr.f32.mxu1 %v712_v3 }
   0x2   :  { %113 = vmatprep.subr.mxu0 %v63_v0  ;;  %184 = vmatprep.subr.mxu1 %v65_v1  ;;  %v64_v4 = vld [vmem:[%s982_s1 + $0x190] sm:$0xff]  ;;  %v47_v5 = vld [vmem:[%s982_s1 + $0x108] sm:$0xff]  ;;  %v49_v6 = vld [vmem:[%s982_s1 + $0x118] sm:$0xff] }
   0x3   :  { %114 = vmatpush1.msra.mxu0 %v62_v2  ;;  %185 = vmatpush1.msra.mxu1 %v64_v4  ;;  %v46_v7 = vld [vmem:[%s982_s1 + $0x100] sm:$0xff]  ;;  %v48_v8 = vld [vmem:[%s982_s1 + $0x110] sm:$0xff]  ;;  %v31_v9 = vld [vmem:[%s982_s1 + $0x88] sm:$0xff]  ;;  %v713_v4 = vmov 0  }
   0x4   :  { %115 = vmatprep.subr.mxu0 %v47_v5  ;;  %186 = vmatprep.subr.mxu1 %v49_v6  ;;  %v33_v10 = vld [vmem:[%s982_s1 + $0x98] sm:$0xff]  ;;  %v30_v11 = vld [vmem:[%s982_s1 + $0x80] sm:$0xff]  ;;  %v32_v12 = vld [vmem:[%s982_s1 + $0x90] sm:$0xff] }
   0x5   :  { %116 = vmatpush1.msra.mxu0 %v46_v7  ;;  %187 = vmatpush1.msra.mxu1 %v48_v8  ;;  %v15_v13 = vld [vmem:[%s982_s1 + $0x8] sm:$0xff]  ;;  %v17_v14 = vld [vmem:[%s982_s1 + $0x18] sm:$0xff]  ;;  %v14_v15 = vld [vmem:[%s982_s1] sm:$0xff] }
   0x6   :  { %117 = vmatprep.subr.mxu0 %v31_v9  ;;  %188 = vmatprep.subr.mxu1 %v33_v10  ;;  %v16_v16 = vld [vmem:[%s982_s1 + $0x10] sm:$0xff]  ;;  %v787_v17 = vld [vmem:[%s983_s0] sm:$0xf]  ;;  %v67_v18 = vld [vmem:[%s982_s1 + $0x1a8] sm:$0xff] }
   0x7   :  { %118 = vmatpush1.msra.mxu0 %v30_v11  ;;  %189 = vmatpush1.msra.mxu1 %v32_v12  ;;  %v69_v19 = vld [vmem:[%s982_s1 + $0x1b8] sm:$0xff]  ;;  %v66_v20 = vld [vmem:[%s982_s1 + $0x1a0] sm:$0xff]  ;;  %v68_v21 = vld [vmem:[%s982_s1 + $0x1b0] sm:$0xff] }
   0x8   :  { %119 = vmatprep.subr.mxu0 %v15_v13  ;;  %190 = vmatprep.subr.mxu1 %v17_v14  ;;  %v51_v22 = vld [vmem:[%s982_s1 + $0x128] sm:$0xff]  ;;  %v53_v23 = vld [vmem:[%s982_s1 + $0x138] sm:$0xff]  ;;  %v50_v24 = vld [vmem:[%s982_s1 + $0x120] sm:$0xff] }
   0x9   :  { %120 = vmatpush1.msra.mxu0 %v14_v15  ;;  %191 = vmatpush1.msra.mxu1 %v16_v16  ;;  %v52_v25 = vld [vmem:[%s982_s1 + $0x130] sm:$0xff]  ;;  %v35_v26 = vld [vmem:[%s982_s1 + $0xa8] sm:$0xff]  ;;  %v37_v27 = vld [vmem:[%s982_s1 + $0xb8] sm:$0xff] }
   0xa   :  { %701 = vmatmul.mubr.msk.f32.vlgmr.msra.gmra.mxu0 %vm85_vm0, %v787_v17  ;;  %702 = vmatmul.mubr.msk.f32.vlgmr.msra.gmra.mxu1 %vm85_vm0, %v787_v17  ;;  %v34_v28 = vld [vmem:[%s982_s1 + $0xa0] sm:$0xff]  ;;  %v36_v29 = vld [vmem:[%s982_s1 + $0xb0] sm:$0xff]  ;;  %v19_v30 = vld [vmem:[%s982_s1 + $0x28] sm:$0xff] }
   0xb   :  { %255 = vmatprep.subr.mxu0 %v67_v18  ;;  %326 = vmatprep.subr.mxu1 %v69_v19  ;;  %v21_v31 = vld [vmem:[%s982_s1 + $0x38] sm:$0xff]  ;;  %v18_v32 = vld [vmem:[%s982_s1 + $0x20] sm:$0xff]  ;;  %v20_v33 = vld [vmem:[%s982_s1 + $0x30] sm:$0xff] }
   0xc   :  { %256 = vmatpush1.msra.mxu0 %v66_v20  ;;  %327 = vmatpush1.msra.mxu1 %v68_v21  ;;  %v71_v34 = vld [vmem:[%s982_s1 + $0x1c8] sm:$0xff]  ;;  %v73_v35 = vld [vmem:[%s982_s1 + $0x1d8] sm:$0xff]  ;;  %v70_v36 = vld [vmem:[%s982_s1 + $0x1c0] sm:$0xff] }
   0xd   :  { %257 = vmatprep.subr.mxu0 %v51_v22  ;;  %328 = vmatprep.subr.mxu1 %v53_v23  ;;  %v72_v37 = vld [vmem:[%s982_s1 + $0x1d0] sm:$0xff]  ;;  %v55_v38 = vld [vmem:[%s982_s1 + $0x148] sm:$0xff]  ;;  %v57_v39 = vld [vmem:[%s982_s1 + $0x158] sm:$0xff] }
   0xe   :  { %258 = vmatpush1.msra.mxu0 %v50_v24  ;;  %329 = vmatpush1.msra.mxu1 %v52_v25  ;;  %v54_v40 = vld [vmem:[%s982_s1 + $0x140] sm:$0xff]  ;;  %v56_v41 = vld [vmem:[%s982_s1 + $0x150] sm:$0xff]  ;;  %v39_v42 = vld [vmem:[%s982_s1 + $0xc8] sm:$0xff] }
   0xf   :  { %259 = vmatprep.subr.mxu0 %v35_v26  ;;  %330 = vmatprep.subr.mxu1 %v37_v27  ;;  %v41_v43 = vld [vmem:[%s982_s1 + $0xd8] sm:$0xff]  ;;  %v38_v44 = vld [vmem:[%s982_s1 + $0xc0] sm:$0xff]  ;;  %v40_v45 = vld [vmem:[%s982_s1 + $0xd0] sm:$0xff] }
  0x10   :  { %260 = vmatpush1.msra.mxu0 %v34_v28  ;;  %331 = vmatpush1.msra.mxu1 %v36_v29  ;;  %v23_v46 = vld [vmem:[%s982_s1 + $0x48] sm:$0xff]  ;;  %v25_v47 = vld [vmem:[%s982_s1 + $0x58] sm:$0xff]  ;;  %v22_v48 = vld [vmem:[%s982_s1 + $0x40] sm:$0xff] }
  0x11   :  { %261 = vmatprep.subr.mxu0 %v19_v30  ;;  %332 = vmatprep.subr.mxu1 %v21_v31  ;;  %v24_v49 = vld [vmem:[%s982_s1 + $0x50] sm:$0xff]  ;;  %v75_v50 = vld [vmem:[%s982_s1 + $0x1e8] sm:$0xff]  ;;  %v77_v51 = vld [vmem:[%s982_s1 + $0x1f8] sm:$0xff] }
  0x12   :  { %262 = vmatpush1.msra.mxu0 %v18_v32  ;;  %295 = vmatprep.mubr.f32.mxu0 %v712_v3  ;;  %v74_v52 = vld [vmem:[%s982_s1 + $0x1e0] sm:$0xff]  ;;  %v76_v53 = vld [vmem:[%s982_s1 + $0x1f0] sm:$0xff]  ;;  %v59_v54 = vld [vmem:[%s982_s1 + $0x168] sm:$0xff] }
  0x13   :  { %333 = vmatpush1.msra.mxu1 %v20_v33  ;;  %366 = vmatprep.mubr.f32.mxu1 %v712_v3  ;;  %v61_v55 = vld [vmem:[%s982_s1 + $0x178] sm:$0xff]  ;;  %v58_v56 = vld [vmem:[%s982_s1 + $0x160] sm:$0xff]  ;;  %v60_v57 = vld [vmem:[%s982_s1 + $0x170] sm:$0xff] }
  0x14   :  { %703 = vmatmul.mubr.msk.f32.vlgmr.msra.gmra.mxu0 %vm85_vm0, %v787_v17  ;;  %704 = vmatmul.mubr.msk.f32.vlgmr.msra.gmra.mxu1 %vm85_vm0, %v787_v17  ;;  %v43_v58 = vld [vmem:[%s982_s1 + $0xe8] sm:$0xff]  ;;  %v45_v59 = vld [vmem:[%s982_s1 + $0xf8] sm:$0xff]  ;;  %v42_v60 = vld [vmem:[%s982_s1 + $0xe0] sm:$0xff] }
  0x15   :  { %397 = vmatprep.subr.mxu0 %v71_v34  ;;  %468 = vmatprep.subr.mxu1 %v73_v35  ;;  %v44_v61 = vld [vmem:[%s982_s1 + $0xf0] sm:$0xff]  ;;  %v27_v62 = vld [vmem:[%s982_s1 + $0x68] sm:$0xff]  ;;  %v29_v63 = vld [vmem:[%s982_s1 + $0x78] sm:$0xff] }
  0x16   :  { %398 = vmatpush1.msra.mxu0 %v70_v36  ;;  %469 = vmatpush1.msra.mxu1 %v72_v37  ;;  %v26_v0 = vld [vmem:[%s982_s1 + $0x60] sm:$0xff]  ;;  %v28_v1 = vld [vmem:[%s982_s1 + $0x70] sm:$0xff] }
  0x17   :  { %399 = vmatprep.subr.mxu0 %v55_v38  ;;  %470 = vmatprep.subr.mxu1 %v57_v39  ;;  %v79_v2 = vld [vmem:[%s984_s2] sm:$0xf] }
  0x18   :  { %400 = vmatpush1.msra.mxu0 %v54_v40  ;;  %471 = vmatpush1.msra.mxu1 %v56_v41 }
  0x19   :  { %401 = vmatprep.subr.mxu0 %v39_v42  ;;  %472 = vmatprep.subr.mxu1 %v41_v43 }
  0x1a   :  { %402 = vmatpush1.msra.mxu0 %v38_v44  ;;  %473 = vmatpush1.msra.mxu1 %v40_v45 }
  0x1b   :  { %403 = vmatprep.subr.mxu0 %v23_v46  ;;  %474 = vmatprep.subr.mxu1 %v25_v47 }
  0x1c   :  { %404 = vmatpush1.msra.mxu0 %v22_v48  ;;  %437 = vmatprep.mubr.f32.mxu0 %v712_v3 }
  0x1d   :  { %475 = vmatpush1.msra.mxu1 %v24_v49  ;;  %508 = vmatprep.mubr.f32.mxu1 %v712_v3 }
  0x1e   :  { %705 = vmatmul.mubr.msk.f32.vlgmr.msra.gmra.mxu0 %vm85_vm0, %v787_v17  ;;  %706 = vmatmul.mubr.msk.f32.vlgmr.msra.gmra.mxu1 %vm85_vm0, %v787_v17 }
  0x1f   :  { %539 = vmatprep.subr.mxu0 %v75_v50  ;;  %610 = vmatprep.subr.mxu1 %v77_v51 }
  0x20   :  { %540 = vmatpush1.msra.mxu0 %v74_v52  ;;  %611 = vmatpush1.msra.mxu1 %v76_v53 }
  0x21   :  { %541 = vmatprep.subr.mxu0 %v59_v54  ;;  %612 = vmatprep.subr.mxu1 %v61_v55 }
  0x22   :  { %542 = vmatpush1.msra.mxu0 %v58_v56  ;;  %613 = vmatpush1.msra.mxu1 %v60_v57 }
  0x23   :  { %543 = vmatprep.subr.mxu0 %v43_v58  ;;  %614 = vmatprep.subr.mxu1 %v45_v59 }
  0x24   :  { %544 = vmatpush1.msra.mxu0 %v42_v60  ;;  %615 = vmatpush1.msra.mxu1 %v44_v61 }
  0x25   :  { %545 = vmatprep.subr.mxu0 %v27_v62  ;;  %616 = vmatprep.subr.mxu1 %v29_v63 }
  0x26   :  { %546 = vmatpush1.msra.mxu0 %v26_v0  ;;  %579 = vmatprep.mubr.f32.mxu0 %v712_v3 }
  0x27   :  { %617 = vmatpush1.msra.mxu1 %v28_v1  ;;  %650 = vmatprep.mubr.f32.mxu1 %v712_v3 }
  0x28   :  { %707 = vmatmul.mubr.msk.f32.vlgmr.msra.gmra.mxu0 %vm85_vm0, %v787_v17  ;;  %708 = vmatmul.mubr.msk.f32.vlgmr.msra.gmra.mxu1 %vm85_vm0, %v787_v17 }
  0x29   :  { %711 = vset.pattern.permute.xlu0 %v713_v4 }
  0x2a   :  { %82 = vperm.xlu0 %711, %v79_v2  }
  0xa5   :  { %v83_v5 = vpop.permute.xlu0 %82 }
  0xca   :  { %v155_v6 = vpop.f32.mrf.mxu0  ;;  %v226_v7 = vpop.f32.mrf.mxu1 }
  0xcb   :  { %v156_v8 = vadd.f32 %v155_v6, %v83_v5  ;;  %v227_v9 = vadd.f32 %v226_v7, %v83_v5 }
  0xcc   :  { %v157_v10 = vpop.f32.mrf.mxu0  ;;  %v228_v3 = vpop.f32.mrf.mxu1 }
  0xcd   :  { %v158_v11 = vadd.f32 %v157_v10, %v83_v5  ;;  %v229_v12 = vadd.f32 %v228_v3, %v83_v5 }
  0xcf   :  { %v673_v13 = vcombine.low %v156_v8, %v158_v11  ;;  %v674_v14 = vcombine.low %v227_v9, %v229_v12 }
  0xd1   :  { %689 = vst [vmem:[%s985_s3] sm:$0xff] %v673_v13  ;;  %690 = vst [vmem:[%s985_s3 + $0x8] sm:$0xff] %v674_v14 }
  0xd4   :  { %v297_v15 = vpop.f32.mrf.mxu0  ;;  %v368_v16 = vpop.f32.mrf.mxu1 }
  0xd5   :  { %v298_v17 = vadd.f32 %v297_v15, %v83_v5  ;;  %v369_v18 = vadd.f32 %v368_v16, %v83_v5 }
  0xd6   :  { %v299_v19 = vpop.f32.mrf.mxu0  ;;  %v370_v20 = vpop.f32.mrf.mxu1 }
  0xd7   :  { %v300_v21 = vadd.f32 %v299_v19, %v83_v5  ;;  %v371_v22 = vadd.f32 %v370_v20, %v83_v5 }
  0xd9   :  { %v675_v23 = vcombine.low %v298_v17, %v300_v21  ;;  %v676_v24 = vcombine.low %v369_v18, %v371_v22 }
  0xdb   :  { %691 = vst [vmem:[%s985_s3 + $0x10] sm:$0xff] %v675_v23  ;;  %692 = vst [vmem:[%s985_s3 + $0x18] sm:$0xff] %v676_v24 }
  0xde   :  { %v439_v25 = vpop.f32.mrf.mxu0  ;;  %v510_v26 = vpop.f32.mrf.mxu1 }
  0xdf   :  { %v440_v27 = vadd.f32 %v439_v25, %v83_v5  ;;  %v511_v28 = vadd.f32 %v510_v26, %v83_v5 }
  0xe0   :  { %v441_v29 = vpop.f32.mrf.mxu0  ;;  %v512_v30 = vpop.f32.mrf.mxu1 }
  0xe1   :  { %v442_v31 = vadd.f32 %v441_v29, %v83_v5  ;;  %v513_v32 = vadd.f32 %v512_v30, %v83_v5 }
  0xe3   :  { %v677_v33 = vcombine.low %v440_v27, %v442_v31  ;;  %v678_v34 = vcombine.low %v511_v28, %v513_v32 }
  0xe5   :  { %693 = vst [vmem:[%s985_s3 + $0x20] sm:$0xff] %v677_v33  ;;  %694 = vst [vmem:[%s985_s3 + $0x28] sm:$0xff] %v678_v34 }
  0xe8   :  { %v581_v35 = vpop.f32.mrf.mxu0  ;;  %v652_v36 = vpop.f32.mrf.mxu1 }
  0xe9   :  { %v582_v39 = vadd.f32 %v581_v35, %v83_v5  ;;  %v653_v40 = vadd.f32 %v652_v36, %v83_v5 }
  0xea   :  { %v583_v37 = vpop.f32.mrf.mxu0  ;;  %v654_v38 = vpop.f32.mrf.mxu1 }
  0xeb   :  { %v584_v41 = vadd.f32 %v583_v37, %v83_v5  ;;  %v655_v42 = vadd.f32 %v654_v38, %v83_v5 }
  0xed   :  { %v679_v43 = vcombine.low %v582_v39, %v584_v41  ;;  %v680_v44 = vcombine.low %v653_v40, %v655_v42 }
  0xef   :  { %695 = vst [vmem:[%s985_s3 + $0x30] sm:$0xff] %v679_v43  ;;  %696 = vst [vmem:[%s985_s3 + $0x38] sm:$0xff] %v680_v44 }

// kernel: unet_forward.11
= control target key start
LH: loop header
LB: loop body
LE: loop exit
PB: predicated region body
PF: predicated region fallthrough
CT: control target
= control target key end

     0   :  { %v352_v3 = vmov 0.0   ;;  %s509_s1 = inlined_call_operand.vmem [shape: f32[64,512], index: 1, kind: input, shape index: {}]   ;;  %s510_s0 = inlined_call_operand.vmem [shape: f32[8,64], index: 0, kind: input, shape index: {}]   ;;  %s511_s2 = inlined_call_operand.vmem [shape: f32[8,1], index: 2, kind: input, shape index: {}]   ;;  %s512_s3 = inlined_call_operand.vmem [shape: f32[8,1], index: 3, kind: input, shape index: {}]   ;;  %s513_s4 = inlined_call_operand.vmem [shape: f32[8,512], index: 4, kind: output, shape index: {}]  }
   0x1   :  { %v46_v0 = vld [vmem:[%s509_s1 + $0xe8] sm:$0xff]  ;;  %v45_v1 = vld [vmem:[%s509_s1 + $0xe0] sm:$0xff]  ;;  %214 = vmatprep.mubr.f32.mxu0 %v352_v3  ;;  %285 = vmatprep.mubr.f32.mxu1 %v352_v3  ;;  %v48_v7 = vld [vmem:[%s509_s1 + $0xf8] sm:$0xff] }
   0x2   :  { %v42_v2 = vld [vmem:[%s509_s1 + $0xc8] sm:$0xff]  ;;  %vm78_vm0 = vcmp.gt.f32.partialorder %v46_v0, 0.0  ;;  %v110_v4 = vmul.f32 0.2, %v46_v0  ;;  %vm77_vm1 = vcmp.gt.f32.partialorder %v45_v1, 0.0  ;;  %v41_v8 = vld [vmem:[%s509_s1 + $0xc0] sm:$0xff] }
   0x3   :  { %v109_v5 = vmul.f32 0.2, %v45_v1  ;;  %vm74_vm2 = vcmp.gt.f32.partialorder %v42_v2, 0.0  ;;  %v106_v6 = vmul.f32 0.2, %v42_v2  ;;  %v47_v9 = vld [vmem:[%s509_s1 + $0xf0] sm:$0xff] }
   0x4   :  { %v142_v10 = vsel %vm78_vm0, %v46_v0, %v110_v4  ;;  %vm80_vm3 = vcmp.gt.f32.partialorder %v48_v7, 0.0  ;;  %v112_v12 = vmul.f32 0.2, %v48_v7  ;;  %v38_v13 = vld [vmem:[%s509_s1 + $0xa8] sm:$0xff]  ;;  %v44_v14 = vld [vmem:[%s509_s1 + $0xd8] sm:$0xff]  ;;  %v37_v15 = vld [vmem:[%s509_s1 + $0xa0] sm:$0xff] }
   0x5   :  { %v141_v11 = vsel %vm77_vm1, %v45_v1, %v109_v5  ;;  %166 = vmatprep.subr.mxu0 %v142_v10  ;;  %v138_v16 = vsel %vm74_vm2, %v42_v2, %v106_v6  ;;  %vm73_vm4 = vcmp.gt.f32.partialorder %v41_v8, 0.0  ;;  %v105_v17 = vmul.f32 0.2, %v41_v8  ;;  %v43_v18 = vld [vmem:[%s509_s1 + $0xd0] sm:$0xff]  ;;  %v34_v22 = vld [vmem:[%s509_s1 + $0x88] sm:$0xff]  ;;  %v40_v25 = vld [vmem:[%s509_s1 + $0xb8] sm:$0xff] }
   0x6   :  { %vm79_vm5 = vcmp.gt.f32.partialorder %v47_v9, 0.0  ;;  %167 = vmatpush1.msra.mxu0 %v141_v11  ;;  %v144_v19 = vsel %vm80_vm3, %v48_v7, %v112_v12  ;;  %v111_v20 = vmul.f32 0.2, %v47_v9  ;;  %vm70_vm6 = vcmp.gt.f32.partialorder %v38_v13, 0.0  ;;  %v33_v26 = vld [vmem:[%s509_s1 + $0x80] sm:$0xff]  ;;  %v39_v30 = vld [vmem:[%s509_s1 + $0xb0] sm:$0xff] }
   0x7   :  { %v102_v21 = vmul.f32 0.2, %v38_v13  ;;  %168 = vmatprep.subr.mxu0 %v138_v16  ;;  %237 = vmatprep.subr.mxu1 %v144_v19  ;;  %v137_v23 = vsel %vm73_vm4, %v41_v8, %v105_v17  ;;  %vm76_vm7 = vcmp.gt.f32.partialorder %v44_v14, 0.0  ;;  %v108_v24 = vmul.f32 0.2, %v44_v14  ;;  %v30_v34 = vld [vmem:[%s509_s1 + $0x68] sm:$0xff] }
   0x8   :  { %vm69_vm8 = vcmp.gt.f32.partialorder %v37_v15, 0.0  ;;  %169 = vmatpush1.msra.mxu0 %v137_v23  ;;  %v143_v27 = vsel %vm79_vm5, %v47_v9, %v111_v20  ;;  %v101_v29 = vmul.f32 0.2, %v37_v15  ;;  %vm75_vm9 = vcmp.gt.f32.partialorder %v43_v18, 0.0  ;;  %v36_v37 = vld [vmem:[%s509_s1 + $0x98] sm:$0xff]  ;;  %v29_v38 = vld [vmem:[%s509_s1 + $0x60] sm:$0xff] }
   0x9   :  { %v134_v28 = vsel %vm70_vm6, %v38_v13, %v102_v21  ;;  %238 = vmatpush1.msra.mxu1 %v143_v27  ;;  %v140_v31 = vsel %vm76_vm7, %v44_v14, %v108_v24  ;;  %v107_v32 = vmul.f32 0.2, %v43_v18  ;;  %vm66_vm10 = vcmp.gt.f32.partialorder %v34_v22, 0.0  ;;  %v35_v42 = vld [vmem:[%s509_s1 + $0x90] sm:$0xff]  ;;  %v26_v46 = vld [vmem:[%s509_s1 + $0x48] sm:$0xff]  ;;  %v32_v49 = vld [vmem:[%s509_s1 + $0x78] sm:$0xff] }
   0xa   :  { %170 = vmatprep.subr.mxu0 %v134_v28  ;;  %v98_v33 = vmul.f32 0.2, %v34_v22  ;;  %239 = vmatprep.subr.mxu1 %v140_v31  ;;  %v133_v35 = vsel %vm69_vm8, %v37_v15, %v101_v29  ;;  %vm72_vm11 = vcmp.gt.f32.partialorder %v40_v25, 0.0  ;;  %v104_v36 = vmul.f32 0.2, %v40_v25  ;;  %v25_v50 = vld [vmem:[%s509_s1 + $0x40] sm:$0xff] }
   0xb   :  { %vm65_vm12 = vcmp.gt.f32.partialorder %v33_v26, 0.0  ;;  %171 = vmatpush1.msra.mxu0 %v133_v35  ;;  %v139_v39 = vsel %vm75_vm9, %v43_v18, %v107_v32  ;;  %v97_v41 = vmul.f32 0.2, %v33_v26  ;;  %vm71_vm13 = vcmp.gt.f32.partialorder %v39_v30, 0.0  ;;  %v31_v54 = vld [vmem:[%s509_s1 + $0x70] sm:$0xff]  ;;  %v22_v58 = vld [vmem:[%s509_s1 + $0x28] sm:$0xff] }
   0xc   :  { %v130_v40 = vsel %vm66_vm10, %v34_v22, %v98_v33  ;;  %240 = vmatpush1.msra.mxu1 %v139_v39  ;;  %v136_v43 = vsel %vm72_vm11, %v40_v25, %v104_v36  ;;  %v103_v44 = vmul.f32 0.2, %v39_v30  ;;  %vm62_vm14 = vcmp.gt.f32.partialorder %v30_v34, 0.0  ;;  %v28_v61 = vld [vmem:[%s509_s1 + $0x58] sm:$0xff]  ;;  %v21_v62 = vld [vmem:[%s509_s1 + $0x20] sm:$0xff]  ;;  %v27_v2 = vld [vmem:[%s509_s1 + $0x50] sm:$0xff] }
   0xd   :  { %172 = vmatprep.subr.mxu0 %v130_v40  ;;  %v94_v45 = vmul.f32 0.2, %v30_v34  ;;  %241 = vmatprep.subr.mxu1 %v136_v43  ;;  %v129_v47 = vsel %vm65_vm12, %v33_v26, %v97_v41  ;;  %vm68_vm15 = vcmp.gt.f32.partialorder %v36_v37, 0.0  ;;  %v100_v48 = vmul.f32 0.2, %v36_v37  ;;  %v18_v6 = vld [vmem:[%s509_s1 + $0x8] sm:$0xff] }
   0xe   :  { %vm61_vm0 = vcmp.gt.f32.partialorder %v29_v38, 0.0  ;;  %173 = vmatpush1.msra.mxu0 %v129_v47  ;;  %v135_v51 = vsel %vm71_vm13, %v39_v30, %v103_v44  ;;  %v93_v53 = vmul.f32 0.2, %v29_v38  ;;  %vm67_vm1 = vcmp.gt.f32.partialorder %v35_v42, 0.0  ;;  %v24_v9 = vld [vmem:[%s509_s1 + $0x38] sm:$0xff]  ;;  %v17_v10 = vld [vmem:[%s509_s1] sm:$0xff] }
   0xf   :  { %v126_v52 = vsel %vm62_vm14, %v30_v34, %v94_v45  ;;  %242 = vmatpush1.msra.mxu1 %v135_v51  ;;  %v132_v55 = vsel %vm68_vm15, %v36_v37, %v100_v48  ;;  %v99_v56 = vmul.f32 0.2, %v35_v42  ;;  %vm58_vm2 = vcmp.gt.f32.partialorder %v26_v46, 0.0  ;;  %v23_v14 = vld [vmem:[%s509_s1 + $0x30] sm:$0xff]  ;;  %v20_v18 = vld [vmem:[%s509_s1 + $0x18] sm:$0xff]  ;;  %v145_v27 = vld [vmem:[%s510_s0] sm:$0xff] }
  0x10   :  { %174 = vmatprep.subr.mxu0 %v126_v52  ;;  %v90_v57 = vmul.f32 0.2, %v26_v46  ;;  %243 = vmatprep.subr.mxu1 %v132_v55  ;;  %v125_v59 = vsel %vm61_vm0, %v29_v38, %v93_v53  ;;  %vm64_vm3 = vcmp.gt.f32.partialorder %v32_v49, 0.0  ;;  %v96_v60 = vmul.f32 0.2, %v32_v49  ;;  %v19_v21 = vld [vmem:[%s509_s1 + $0x10] sm:$0xff] }
  0x11   :  { %vm57_vm4 = vcmp.gt.f32.partialorder %v25_v50, 0.0  ;;  %vm146_vm5 = vcmask 523264   ;;  %175 = vmatpush1.msra.mxu0 %v125_v59  ;;  %v131_v63 = vsel %vm67_vm1, %v35_v42, %v99_v56  ;;  %v89_v1 = vmul.f32 0.2, %v25_v50 }
  0x12   :  { %v122_v0 = vsel %vm58_vm2, %v26_v46, %v90_v57  ;;  %vm63_vm6 = vcmp.gt.f32.partialorder %v31_v54, 0.0  ;;  %244 = vmatpush1.msra.mxu1 %v131_v63  ;;  %v128_v3 = vsel %vm64_vm3, %v32_v49, %v96_v60  ;;  %v95_v4 = vmul.f32 0.2, %v31_v54 }
  0x13   :  { %176 = vmatprep.subr.mxu0 %v122_v0  ;;  %vm54_vm7 = vcmp.gt.f32.partialorder %v22_v58, 0.0  ;;  %v86_v5 = vmul.f32 0.2, %v22_v58  ;;  %245 = vmatprep.subr.mxu1 %v128_v3  ;;  %v121_v7 = vsel %vm57_vm4, %v25_v50, %v89_v1  ;;  %vm60_vm8 = vcmp.gt.f32.partialorder %v28_v61, 0.0 }
  0x14   :  { %v92_v8 = vmul.f32 0.2, %v28_v61  ;;  %vm53_vm9 = vcmp.gt.f32.partialorder %v21_v62, 0.0  ;;  %177 = vmatpush1.msra.mxu0 %v121_v7  ;;  %v127_v11 = vsel %vm63_vm6, %v31_v54, %v95_v4  ;;  %v85_v13 = vmul.f32 0.2, %v21_v62 }
  0x15   :  { %v118_v12 = vsel %vm54_vm7, %v22_v58, %v86_v5  ;;  %vm59_vm10 = vcmp.gt.f32.partialorder %v27_v2, 0.0  ;;  %246 = vmatpush1.msra.mxu1 %v127_v11  ;;  %v91_v16 = vmul.f32 0.2, %v27_v2  ;;  %vm50_vm11 = vcmp.gt.f32.partialorder %v18_v6, 0.0  ;;  %v315_v58 = vld [vmem:[%s511_s2] sm:$0xff] }
  0x16   :  { %178 = vmatprep.subr.mxu0 %v118_v12  ;;  %v124_v15 = vsel %vm60_vm8, %v28_v61, %v92_v8  ;;  %v82_v17 = vmul.f32 0.2, %v18_v6  ;;  %v117_v19 = vsel %vm53_vm9, %v21_v62, %v85_v13  ;;  %vm56_vm12 = vcmp.gt.f32.partialorder %v24_v9, 0.0  ;;  %v326_v61 = vld [vmem:[%s512_s3] sm:$0xff] }
  0x17   :  { %247 = vmatprep.subr.mxu1 %v124_v15  ;;  %v88_v20 = vmul.f32 0.2, %v24_v9  ;;  %vm49_vm13 = vcmp.gt.f32.partialorder %v17_v10, 0.0  ;;  %179 = vmatpush1.msra.mxu0 %v117_v19  ;;  %v123_v22 = vsel %vm59_vm10, %v27_v2, %v91_v16  ;;  %v81_v24 = vmul.f32 0.2, %v17_v10 }
  0x18   :  { %v114_v23 = vsel %vm50_vm11, %v18_v6, %v82_v17  ;;  %vm55_vm14 = vcmp.gt.f32.partialorder %v23_v14, 0.0  ;;  %248 = vmatpush1.msra.mxu1 %v123_v22  ;;  %v87_v26 = vmul.f32 0.2, %v23_v14  ;;  %vm52_vm15 = vcmp.gt.f32.partialorder %v20_v18, 0.0 }
  0x19   :  { %180 = vmatprep.subr.mxu0 %v114_v23  ;;  %v120_v25 = vsel %vm56_vm12, %v24_v9, %v88_v20  ;;  %v84_v28 = vmul.f32 0.2, %v20_v18  ;;  %v113_v29 = vsel %vm49_vm13, %v17_v10, %v81_v24  ;;  %vm51_vm0 = vcmp.gt.f32.partialorder %v19_v21, 0.0 }
  0x1a   :  { %249 = vmatprep.subr.mxu1 %v120_v25  ;;  %v83_v30 = vmul.f32 0.2, %v19_v21  ;;  %181 = vmatpush1.msra.mxu0 %v113_v29  ;;  %v119_v31 = vsel %vm55_vm14, %v23_v14, %v87_v26  ;;  %v353_v54 = vmov 0  }
  0x1b   :  { %v116_v32 = vsel %vm52_vm15, %v20_v18, %v84_v28  ;;  %250 = vmatpush1.msra.mxu1 %v119_v31  ;;  %344 = vmatmul.mubr.msk.f32.vlgmr.msra.gmra.mxu0 %vm146_vm5, %v145_v27 }
  0x1c   :  { %v115_v33 = vsel %vm51_vm0, %v19_v21, %v83_v30  ;;  %251 = vmatprep.subr.mxu1 %v116_v32  ;;  %348 = vset.pattern.permute.xlu1 %v353_v54 }
  0x1d   :  { %252 = vmatpush1.msra.mxu1 %v115_v33  ;;  %349 = vset.pattern.permute.xlu0 %v353_v54 }
  0x1e   :  { %345 = vmatmul.mubr.msk.f32.vlgmr.msra.gmra.mxu1 %vm146_vm5, %v145_v27 }
  0xdb   :  { %v216_v34 = vpop.f32.mrf.mxu0 }
  0xdd   :  { %v218_v35 = vpop.f32.mrf.mxu0 }
  0xde   :  { %v292_v36 = vadd.f32 %v218_v35, %v216_v34  ;;  %v287_v37 = vpop.f32.mrf.mxu1 }
  0xe0   :  { %v293_v38 = vadd.f32 %v292_v36, %v287_v37  ;;  %v289_v39 = vpop.f32.mrf.mxu1 }
  0xe2   :  { %v294_v40 = vadd.f32 %v293_v38, %v289_v39 }
  0xe4   :  { %295 = vadd.xlane.f32.xlu0 %v294_v40 }
 0x16d   :  { %v296_v41 = vpop.xlane.xlu0 %295 }
 0x16e   :  { %v298_v42 = vmul.f32 0.001953125, %v296_v41 }
 0x170   :  { %v299_v43 = vsub.f32 %v216_v34, %v298_v42  ;;  %v300_v44 = vsub.f32 %v218_v35, %v298_v42  ;;  %v301_v45 = vsub.f32 %v287_v37, %v298_v42  ;;  %v302_v46 = vsub.f32 %v289_v39, %v298_v42 }
 0x172   :  { %v303_v47 = vmul.f32 %v299_v43, %v299_v43  ;;  %v304_v48 = vmul.f32 %v300_v44, %v300_v44  ;;  %v305_v49 = vmul.f32 %v301_v45, %v301_v45  ;;  %v306_v51 = vmul.f32 %v302_v46, %v302_v46 }
 0x174   :  { %v307_v50 = vadd.f32 %v304_v48, %v303_v47 }
 0x176   :  { %v308_v52 = vadd.f32 %v307_v50, %v305_v49 }
 0x178   :  { %v309_v53 = vadd.f32 %v308_v52, %v306_v51 }
 0x17a   :  { %310 = vadd.xlane.f32.xlu0 %v309_v53 }
 0x203   :  { %v311_v55 = vpop.xlane.xlu0 %310 }
 0x204   :  { %v312_v56 = vmul.f32 0.001953125, %v311_v55 }
 0x206   :  { %v313_v57 = vadd.f32 1e-05, %v312_v56 }
 0x208   :  { %350 = vrsqrt.f32 %v313_v57 }
 0x215   :  { %v351_v59 = vpop.eup %350 }
 0x216   :  { %v316_v60 = vmul.f32 %v351_v59, %v315_v58 }
 0x218   :  { %319 = vperm.xlu1 %348, %v316_v60  }
 0x21c   :  { %329 = vperm.xlu1 %348, %v326_v61  }
 0x293   :  { %v320_v62 = vpop.permute.xlu1 %319 }
 0x294   :  { %v322_v63 = vmul.f32 %v320_v62, %v299_v43  ;;  %v323_v0 = vmul.f32 %v320_v62, %v300_v44  ;;  %v324_v1 = vmul.f32 %v320_v62, %v301_v45  ;;  %v325_v2 = vmul.f32 %v320_v62, %v302_v46 }
 0x297   :  { %v330_v3 = vpop.permute.xlu1 %329 }
 0x298   :  { %v332_v4 = vadd.f32 %v330_v3, %v322_v63  ;;  %v333_v5 = vadd.f32 %v330_v3, %v323_v0  ;;  %v334_v6 = vadd.f32 %v330_v3, %v324_v1  ;;  %v335_v7 = vadd.f32 %v330_v3, %v325_v2 }
 0x29a   :  { %336 = vst [vmem:[%s513_s4] sm:$0xff] %v332_v4  ;;  %337 = vst [vmem:[%s513_s4 + $0x8] sm:$0xff] %v333_v5 }
 0x29b   :  { %338 = vst [vmem:[%s513_s4 + $0x10] sm:$0xff] %v334_v6  ;;  %339 = vst [vmem:[%s513_s4 + $0x18] sm:$0xff] %v335_v7 }

// kernel: unet_forward.12
= control target key start
LH: loop header
LB: loop body
LE: loop exit
PB: predicated region body
PF: predicated region fallthrough
CT: control target
= control target key end

     0   :  { %v275_v60 = vmov 0   ;;  %s373_s1 = inlined_call_operand.vmem [shape: f32[128,128], index: 1, kind: input, shape index: {}]   ;;  %s374_s0 = inlined_call_operand.vmem [shape: f32[16,128], index: 0, kind: input, shape index: {}]   ;;  %s375_s2 = inlined_call_operand.vmem [shape: f32[16,1], index: 2, kind: input, shape index: {}]   ;;  %s376_s3 = inlined_call_operand.vmem [shape: f32[16,1], index: 3, kind: input, shape index: {}]   ;;  %s377_s4 = inlined_call_operand.vmem [shape: f32[16,128], index: 4, kind: output, shape index: {}]  }
   0x1   :  { %v32_v0 = vld [vmem:[%s373_s1 + $0x78] sm:$0xff]  ;;  %v31_v1 = vld [vmem:[%s373_s1 + $0x70] sm:$0xff]  ;;  %v30_v2 = vld [vmem:[%s373_s1 + $0x68] sm:$0xff]  ;;  %269 = vset.pattern.permute.xlu0 %v275_v60  ;;  %270 = vset.pattern.permute.xlu1 %v275_v60 }
   0x2   :  { %vm48_vm0 = vcmp.gt.f32.partialorder %v32_v0, 0.0  ;;  %v64_v3 = vmul.f32 0.2, %v32_v0  ;;  %vm47_vm1 = vcmp.gt.f32.partialorder %v31_v1, 0.0  ;;  %v63_v4 = vmul.f32 0.2, %v31_v1 }
   0x3   :  { %vm46_vm2 = vcmp.gt.f32.partialorder %v30_v2, 0.0  ;;  %v62_v5 = vmul.f32 0.2, %v30_v2  ;;  %v29_v6 = vld [vmem:[%s373_s1 + $0x60] sm:$0xff]  ;;  %v28_v7 = vld [vmem:[%s373_s1 + $0x58] sm:$0xff]  ;;  %v27_v11 = vld [vmem:[%s373_s1 + $0x50] sm:$0xff] }
   0x4   :  { %v80_v8 = vsel %vm48_vm0, %v32_v0, %v64_v3  ;;  %v79_v9 = vsel %vm47_vm1, %v31_v1, %v63_v4  ;;  %v61_v10 = vmul.f32 0.2, %v29_v6  ;;  %vm45_vm3 = vcmp.gt.f32.partialorder %v29_v6, 0.0  ;;  %v26_v14 = vld [vmem:[%s373_s1 + $0x48] sm:$0xff]  ;;  %v81_v17 = vld [vmem:[%s374_s0] sm:$0xff]  ;;  %v24_v21 = vld [vmem:[%s373_s1 + $0x38] sm:$0xff] }
   0x5   :  { %233 = vmatprep.subr.mxu0 %v80_v8  ;;  %v78_v12 = vsel %vm46_vm2, %v30_v2, %v62_v5  ;;  %v60_v13 = vmul.f32 0.2, %v28_v7  ;;  %vm44_vm4 = vcmp.gt.f32.partialorder %v28_v7, 0.0  ;;  %v59_v16 = vmul.f32 0.2, %v27_v11  ;;  %v25_v18 = vld [vmem:[%s373_s1 + $0x40] sm:$0xff]  ;;  %265 = vmatprep.mubr.f32.mxu0 %v81_v17 }
   0x6   :  { %234 = vmatpush3.msra.mxu0 %v80_v8  ;;  %v77_v15 = vsel %vm45_vm3, %v29_v6, %v61_v10  ;;  %vm43_vm5 = vcmp.gt.f32.partialorder %v27_v11, 0.0  ;;  %v58_v20 = vmul.f32 0.2, %v26_v14  ;;  %vm42_vm6 = vcmp.gt.f32.partialorder %v26_v14, 0.0  ;;  %v23_v24 = vld [vmem:[%s373_s1 + $0x30] sm:$0xff]  ;;  %v22_v27 = vld [vmem:[%s373_s1 + $0x28] sm:$0xff] }
   0x7   :  { %235 = vmatprep.subr.mxu0 %v79_v9  ;;  %v76_v19 = vsel %vm44_vm4, %v28_v7, %v60_v13  ;;  %v75_v22 = vsel %vm43_vm5, %v27_v11, %v59_v16  ;;  %v57_v23 = vmul.f32 0.2, %v25_v18  ;;  %vm41_vm7 = vcmp.gt.f32.partialorder %v25_v18, 0.0  ;;  %v21_v30 = vld [vmem:[%s373_s1 + $0x20] sm:$0xff]  ;;  %v20_v33 = vld [vmem:[%s373_s1 + $0x18] sm:$0xff]  ;;  %v19_v36 = vld [vmem:[%s373_s1 + $0x10] sm:$0xff] }
   0x8   :  { %236 = vmatpush3.msra.mxu0 %v79_v9  ;;  %v74_v25 = vsel %vm42_vm6, %v26_v14, %v58_v20  ;;  %v56_v26 = vmul.f32 0.2, %v24_v21  ;;  %vm40_vm8 = vcmp.gt.f32.partialorder %v24_v21, 0.0  ;;  %v55_v29 = vmul.f32 0.2, %v23_v24  ;;  %v18_v39 = vld [vmem:[%s373_s1 + $0x8] sm:$0xff] }
   0x9   :  { %237 = vmatprep.subr.mxu0 %v78_v12  ;;  %v73_v28 = vsel %vm41_vm7, %v25_v18, %v57_v23  ;;  %vm39_vm9 = vcmp.gt.f32.partialorder %v23_v24, 0.0  ;;  %v54_v32 = vmul.f32 0.2, %v22_v27  ;;  %vm38_vm10 = vcmp.gt.f32.partialorder %v22_v27, 0.0  ;;  %v17_v42 = vld [vmem:[%s373_s1] sm:$0xff]  ;;  %v82_v49 = vld [vmem:[%s374_s0 + $0x8] sm:$0xff] }
   0xa   :  { %238 = vmatpush3.msra.mxu0 %v78_v12  ;;  %v72_v31 = vsel %vm40_vm8, %v24_v21, %v56_v26  ;;  %v71_v34 = vsel %vm39_vm9, %v23_v24, %v55_v29  ;;  %v53_v35 = vmul.f32 0.2, %v21_v30  ;;  %vm37_vm11 = vcmp.gt.f32.partialorder %v21_v30, 0.0  ;;  %v179_v3 = vld [vmem:[%s375_s2] sm:$0xff]  ;;  %v180_v6 = vld [vmem:[%s375_s2 + $0x8] sm:$0xff] }
   0xb   :  { %239 = vmatprep.subr.mxu0 %v77_v15  ;;  %v70_v37 = vsel %vm38_vm10, %v22_v27, %v54_v32  ;;  %v52_v38 = vmul.f32 0.2, %v20_v33  ;;  %vm36_vm12 = vcmp.gt.f32.partialorder %v20_v33, 0.0  ;;  %v51_v41 = vmul.f32 0.2, %v19_v36  ;;  %v195_v9 = vld [vmem:[%s376_s3] sm:$0xff] }
   0xc   :  { %240 = vmatpush3.msra.mxu0 %v77_v15  ;;  %v69_v40 = vsel %vm37_vm11, %v21_v30, %v53_v35  ;;  %vm35_vm13 = vcmp.gt.f32.partialorder %v19_v36, 0.0  ;;  %v50_v44 = vmul.f32 0.2, %v18_v39  ;;  %vm34_vm14 = vcmp.gt.f32.partialorder %v18_v39, 0.0  ;;  %v196_v10 = vld [vmem:[%s376_s3 + $0x8] sm:$0xff] }
   0xd   :  { %241 = vmatprep.subr.mxu0 %v76_v19  ;;  %v68_v43 = vsel %vm36_vm12, %v20_v33, %v52_v38  ;;  %v67_v45 = vsel %vm35_vm13, %v19_v36, %v51_v41  ;;  %v49_v46 = vmul.f32 0.2, %v17_v42  ;;  %vm33_vm15 = vcmp.gt.f32.partialorder %v17_v42, 0.0 }
   0xe   :  { %242 = vmatpush3.msra.mxu0 %v76_v19  ;;  %v66_v47 = vsel %vm34_vm14, %v18_v39, %v50_v44 }
   0xf   :  { %243 = vmatprep.subr.mxu0 %v75_v22  ;;  %v65_v48 = vsel %vm33_vm15, %v17_v42, %v49_v46 }
  0x10   :  { %244 = vmatpush3.msra.mxu0 %v75_v22 }
  0x11   :  { %245 = vmatprep.subr.mxu0 %v74_v25 }
  0x12   :  { %246 = vmatpush3.msra.mxu0 %v74_v25 }
  0x13   :  { %247 = vmatprep.subr.mxu0 %v73_v28 }
  0x14   :  { %248 = vmatpush3.msra.mxu0 %v73_v28 }
  0x15   :  { %249 = vmatprep.subr.mxu0 %v72_v31 }
  0x16   :  { %250 = vmatpush3.msra.mxu0 %v72_v31 }
  0x17   :  { %251 = vmatprep.subr.mxu0 %v71_v34 }
  0x18   :  { %252 = vmatpush3.msra.mxu0 %v71_v34 }
  0x19   :  { %253 = vmatprep.subr.mxu0 %v70_v37 }
  0x1a   :  { %254 = vmatpush3.msra.mxu0 %v70_v37 }
  0x1b   :  { %255 = vmatprep.subr.mxu0 %v69_v40 }
  0x1c   :  { %256 = vmatpush3.msra.mxu0 %v69_v40 }
  0x1d   :  { %257 = vmatprep.subr.mxu0 %v68_v43 }
  0x1e   :  { %258 = vmatpush3.msra.mxu0 %v68_v43 }
  0x1f   :  { %259 = vmatprep.subr.mxu0 %v67_v45 }
  0x20   :  { %260 = vmatpush3.msra.mxu0 %v67_v45 }
  0x21   :  { %261 = vmatprep.subr.mxu0 %v66_v47 }
  0x22   :  { %262 = vmatpush3.msra.mxu0 %v66_v47 }
  0x23   :  { %263 = vmatprep.subr.mxu0 %v65_v48 }
  0x24   :  { %264 = vmatpush3.msra.mxu0 %v65_v48 }
  0x25   :  { %266 = vmatmul.mubr.f32.vlgmr.msra.gmra.mxu0 %v82_v49 }
  0xe5   :  { %v267_v50 = vpop.f32.mrf.mxu0 }
  0xe7   :  { %v149_v51 = vpop.f32.mrf.mxu0 }
  0xe8   :  { %158 = vadd.xlane.f32.xlu0 %v149_v51 }
  0xec   :  { %160 = vadd.xlane.f32.xlu0 %v267_v50 }
 0x171   :  { %v159_v52 = vpop.xlane.xlu0 %158 }
 0x172   :  { %v163_v53 = vmul.f32 0.0078125, %v159_v52 }
 0x174   :  { %v165_v54 = vsub.f32 %v149_v51, %v163_v53 }
 0x175   :  { %v161_v55 = vpop.xlane.xlu0 %160 }
 0x176   :  { %v164_v56 = vmul.f32 0.0078125, %v161_v55  ;;  %v167_v57 = vmul.f32 %v165_v54, %v165_v54 }
 0x178   :  { %v166_v58 = vsub.f32 %v267_v50, %v164_v56  ;;  %169 = vadd.xlane.f32.xlu1 %v167_v57 }
 0x17a   :  { %v168_v59 = vmul.f32 %v166_v58, %v166_v58 }
 0x17c   :  { %171 = vadd.xlane.f32.xlu1 %v168_v59 }
 0x201   :  { %v170_v61 = vpop.xlane.xlu1 %169 }
 0x202   :  { %v173_v62 = vmul.f32 0.0078125, %v170_v61 }
 0x204   :  { %v175_v63 = vadd.f32 1e-05, %v173_v62 }
 0x205   :  { %v172_v0 = vpop.xlane.xlu1 %171 }
 0x206   :  { %271 = vrsqrt.f32 %v175_v63  ;;  %v174_v1 = vmul.f32 0.0078125, %v172_v0 }
 0x208   :  { %v176_v2 = vadd.f32 1e-05, %v174_v1 }
 0x20a   :  { %273 = vrsqrt.f32 %v176_v2 }
 0x213   :  { %v272_v4 = vpop.eup %271 }
 0x214   :  { %v181_v5 = vmul.f32 %v272_v4, %v179_v3 }
 0x216   :  { %185 = vperm.xlu0 %269, %v181_v5  }
 0x217   :  { %v274_v7 = vpop.eup %273 }
 0x218   :  { %v182_v8 = vmul.f32 %v274_v7, %v180_v6 }
 0x21a   :  { %190 = vperm.xlu1 %270, %v182_v8  }
 0x21e   :  { %199 = vperm.xlu1 %270, %v195_v9  }
 0x222   :  { %204 = vperm.xlu1 %270, %v196_v10  }
 0x291   :  { %v186_v11 = vpop.permute.xlu0 %185 }
 0x292   :  { %v193_v13 = vmul.f32 %v186_v11, %v165_v54 }
 0x295   :  { %v191_v12 = vpop.permute.xlu1 %190 }
 0x296   :  { %v194_v16 = vmul.f32 %v191_v12, %v166_v58 }
 0x299   :  { %v200_v14 = vpop.permute.xlu1 %199 }
 0x29a   :  { %v207_v15 = vadd.f32 %v200_v14, %v193_v13 }
 0x29c   :  { %209 = vst [vmem:[%s377_s4] sm:$0xff] %v207_v15 }
 0x29d   :  { %v205_v17 = vpop.permute.xlu1 %204 }
 0x29e   :  { %v208_v18 = vadd.f32 %v205_v17, %v194_v16 }
 0x2a0   :  { %210 = vst [vmem:[%s377_s4 + $0x8] sm:$0xff] %v208_v18 }

// kernel: unet_forward.13
= control target key start
LH: loop header
LB: loop body
LE: loop exit
PB: predicated region body
PF: predicated region fallthrough
CT: control target
= control target key end

     0   :  { %s677_s1 = inlined_call_operand.vmem [shape: f32[256,32], index: 1, kind: input, shape index: {}]   ;;  %s678_s0 = inlined_call_operand.vmem [shape: f32[32,256], index: 0, kind: input, shape index: {}]   ;;  %s679_s3 = inlined_call_operand.vmem [shape: f32[32,1], index: 3, kind: input, shape index: {}]   ;;  %s680_s2 = inlined_call_operand.vmem [shape: f32[32,1], index: 2, kind: input, shape index: {}]   ;;  %s681_s4 = inlined_call_operand.vmem [shape: f32[32,32], index: 4, kind: output, shape index: {}]  }
   0x1   :  { %v48_v0 = vld [vmem:[%s677_s1 + $0xf8] sm:$0xff]  ;;  %v47_v2 = vld [vmem:[%s677_s1 + $0xf0] sm:$0xff]  ;;  %v46_v7 = vld [vmem:[%s677_s1 + $0xe8] sm:$0xff] }
   0x2   :  { %v32_v1 = vld [vmem:[%s677_s1 + $0x78] sm:$0xff]  ;;  %vm80_vm0 = vcmp.gt.f32.partialorder %v48_v0, 0.0  ;;  %v112_v3 = vmul.f32 0.2, %v48_v0  ;;  %vm79_vm2 = vcmp.gt.f32.partialorder %v47_v2, 0.0  ;;  %v31_v6 = vld [vmem:[%s677_s1 + $0x70] sm:$0xff] }
   0x3   :  { %vm64_vm1 = vcmp.gt.f32.partialorder %v32_v1, 0.0  ;;  %v96_v4 = vmul.f32 0.2, %v32_v1  ;;  %v111_v5 = vmul.f32 0.2, %v47_v2  ;;  %v30_v8 = vld [vmem:[%s677_s1 + $0x68] sm:$0xff] }
   0x4   :  { %v144_v9 = vsel %vm80_vm0, %v48_v0, %v112_v3  ;;  %vm63_vm3 = vcmp.gt.f32.partialorder %v31_v6, 0.0  ;;  %v95_v11 = vmul.f32 0.2, %v31_v6  ;;  %v45_v12 = vld [vmem:[%s677_s1 + $0xe0] sm:$0xff]  ;;  %v44_v14 = vld [vmem:[%s677_s1 + $0xd8] sm:$0xff]  ;;  %vm78_vm4 = vcmp.gt.f32.partialorder %v46_v7, 0.0 }
   0x5   :  { %v128_v10 = vsel %vm64_vm1, %v32_v1, %v96_v4  ;;  %v29_v13 = vld [vmem:[%s677_s1 + $0x60] sm:$0xff]  ;;  %356 = vmatprep.subr.mxu0 %v144_v9  ;;  %400 = vmatprep.subr.mxu1 %v144_v9  ;;  %v143_v15 = vsel %vm79_vm2, %v47_v2, %v111_v5  ;;  %v110_v16 = vmul.f32 0.2, %v46_v7  ;;  %vm62_vm5 = vcmp.gt.f32.partialorder %v30_v8, 0.0  ;;  %v28_v17 = vld [vmem:[%s677_s1 + $0x58] sm:$0xff]  ;;  %v43_v21 = vld [vmem:[%s677_s1 + $0xd0] sm:$0xff] }
   0x6   :  { %357 = vmatpush3.msra.mxu0 %v128_v10  ;;  %416 = vmatpush3.msra.mxu1 %v128_v10  ;;  %v127_v18 = vsel %vm63_vm3, %v31_v6, %v95_v11  ;;  %v94_v19 = vmul.f32 0.2, %v30_v8  ;;  %vm77_vm6 = vcmp.gt.f32.partialorder %v45_v12, 0.0  ;;  %v109_v20 = vmul.f32 0.2, %v45_v12  ;;  %v27_v24 = vld [vmem:[%s677_s1 + $0x50] sm:$0xff] }
   0x7   :  { %358 = vmatprep.subr.mxu0 %v143_v15  ;;  %401 = vmatprep.subr.mxu1 %v143_v15  ;;  %v142_v22 = vsel %vm78_vm4, %v46_v7, %v110_v16  ;;  %vm61_vm7 = vcmp.gt.f32.partialorder %v29_v13, 0.0  ;;  %v93_v23 = vmul.f32 0.2, %v29_v13  ;;  %vm76_vm8 = vcmp.gt.f32.partialorder %v44_v14, 0.0  ;;  %v42_v28 = vld [vmem:[%s677_s1 + $0xc8] sm:$0xff]  ;;  %v41_v33 = vld [vmem:[%s677_s1 + $0xc0] sm:$0xff] }
   0x8   :  { %359 = vmatpush3.msra.mxu0 %v127_v18  ;;  %417 = vmatpush3.msra.mxu1 %v127_v18  ;;  %v126_v25 = vsel %vm62_vm5, %v30_v8, %v94_v19  ;;  %v141_v26 = vsel %vm77_vm6, %v45_v12, %v109_v20  ;;  %v108_v27 = vmul.f32 0.2, %v44_v14  ;;  %vm60_vm9 = vcmp.gt.f32.partialorder %v28_v17, 0.0  ;;  %v26_v29 = vld [vmem:[%s677_s1 + $0x48] sm:$0xff]  ;;  %v25_v36 = vld [vmem:[%s677_s1 + $0x40] sm:$0xff]  ;;  %v40_v39 = vld [vmem:[%s677_s1 + $0xb8] sm:$0xff] }
   0x9   :  { %360 = vmatprep.subr.mxu0 %v142_v22  ;;  %402 = vmatprep.subr.mxu1 %v142_v22  ;;  %v125_v30 = vsel %vm61_vm7, %v29_v13, %v93_v23  ;;  %v92_v31 = vmul.f32 0.2, %v28_v17  ;;  %vm75_vm10 = vcmp.gt.f32.partialorder %v43_v21, 0.0  ;;  %v107_v32 = vmul.f32 0.2, %v43_v21  ;;  %v24_v43 = vld [vmem:[%s677_s1 + $0x38] sm:$0xff] }
   0xa   :  { %361 = vmatpush3.msra.mxu0 %v126_v25  ;;  %418 = vmatpush3.msra.mxu1 %v126_v25  ;;  %v140_v34 = vsel %vm76_vm8, %v44_v14, %v108_v27  ;;  %vm59_vm11 = vcmp.gt.f32.partialorder %v27_v24, 0.0  ;;  %v91_v35 = vmul.f32 0.2, %v27_v24  ;;  %vm74_vm12 = vcmp.gt.f32.partialorder %v42_v28, 0.0  ;;  %v39_v46 = vld [vmem:[%s677_s1 + $0xb0] sm:$0xff]  ;;  %v38_v52 = vld [vmem:[%s677_s1 + $0xa8] sm:$0xff] }
   0xb   :  { %362 = vmatprep.subr.mxu0 %v141_v26  ;;  %403 = vmatprep.subr.mxu1 %v141_v26  ;;  %v124_v37 = vsel %vm60_vm9, %v28_v17, %v92_v31  ;;  %v106_v38 = vmul.f32 0.2, %v42_v28  ;;  %v139_v40 = vsel %vm75_vm10, %v43_v21, %v107_v32  ;;  %vm58_vm13 = vcmp.gt.f32.partialorder %v26_v29, 0.0  ;;  %v23_v49 = vld [vmem:[%s677_s1 + $0x30] sm:$0xff]  ;;  %v22_v55 = vld [vmem:[%s677_s1 + $0x28] sm:$0xff]  ;;  %v37_v58 = vld [vmem:[%s677_s1 + $0xa0] sm:$0xff] }
   0xc   :  { %363 = vmatpush3.msra.mxu0 %v125_v30  ;;  %419 = vmatpush3.msra.mxu1 %v125_v30  ;;  %v90_v41 = vmul.f32 0.2, %v26_v29  ;;  %v105_v42 = vmul.f32 0.2, %v41_v33  ;;  %v123_v44 = vsel %vm59_vm11, %v27_v24, %v91_v35  ;;  %vm73_vm14 = vcmp.gt.f32.partialorder %v41_v33, 0.0  ;;  %v21_v61 = vld [vmem:[%s677_s1 + $0x20] sm:$0xff] }
   0xd   :  { %364 = vmatprep.subr.mxu0 %v140_v34  ;;  %404 = vmatprep.subr.mxu1 %v140_v34  ;;  %v89_v45 = vmul.f32 0.2, %v25_v36  ;;  %v138_v47 = vsel %vm74_vm12, %v42_v28, %v106_v38  ;;  %vm57_vm15 = vcmp.gt.f32.partialorder %v25_v36, 0.0  ;;  %v104_v48 = vmul.f32 0.2, %v40_v39  ;;  %v36_v0 = vld [vmem:[%s677_s1 + $0x98] sm:$0xff] }
   0xe   :  { %365 = vmatpush3.msra.mxu0 %v124_v37  ;;  %420 = vmatpush3.msra.mxu1 %v124_v37  ;;  %v122_v50 = vsel %vm58_vm13, %v26_v29, %v90_v41  ;;  %vm72_vm0 = vcmp.gt.f32.partialorder %v40_v39, 0.0  ;;  %v88_v51 = vmul.f32 0.2, %v24_v43  ;;  %v137_v53 = vsel %vm73_vm14, %v41_v33, %v105_v42  ;;  %v20_v3 = vld [vmem:[%s677_s1 + $0x18] sm:$0xff]  ;;  %v35_v6 = vld [vmem:[%s677_s1 + $0x90] sm:$0xff]  ;;  %v34_v12 = vld [vmem:[%s677_s1 + $0x88] sm:$0xff] }
   0xf   :  { %366 = vmatprep.subr.mxu0 %v139_v40  ;;  %405 = vmatprep.subr.mxu1 %v139_v40  ;;  %vm56_vm1 = vcmp.gt.f32.partialorder %v24_v43, 0.0  ;;  %v103_v54 = vmul.f32 0.2, %v39_v46  ;;  %v121_v56 = vsel %vm57_vm15, %v25_v36, %v89_v45  ;;  %vm71_vm2 = vcmp.gt.f32.partialorder %v39_v46, 0.0  ;;  %v19_v9 = vld [vmem:[%s677_s1 + $0x10] sm:$0xff]  ;;  %v18_v15 = vld [vmem:[%s677_s1 + $0x8] sm:$0xff] }
  0x10   :  { %367 = vmatpush3.msra.mxu0 %v123_v44  ;;  %421 = vmatpush3.msra.mxu1 %v123_v44  ;;  %v87_v57 = vmul.f32 0.2, %v23_v49  ;;  %v136_v59 = vsel %vm72_vm0, %v40_v39, %v104_v48  ;;  %vm55_vm3 = vcmp.gt.f32.partialorder %v23_v49, 0.0  ;;  %v102_v60 = vmul.f32 0.2, %v38_v52  ;;  %v33_v18 = vld [vmem:[%s677_s1 + $0x80] sm:$0xff] }
  0x11   :  { %368 = vmatprep.subr.mxu0 %v138_v47  ;;  %406 = vmatprep.subr.mxu1 %v138_v47  ;;  %v120_v62 = vsel %vm56_vm1, %v24_v43, %v88_v51  ;;  %vm70_vm4 = vcmp.gt.f32.partialorder %v38_v52, 0.0  ;;  %v86_v63 = vmul.f32 0.2, %v22_v55  ;;  %v135_v1 = vsel %vm71_vm2, %v39_v46, %v103_v54  ;;  %v17_v21 = vld [vmem:[%s677_s1] sm:$0xff]  ;;  %v146_v32 = vld [vmem:[%s678_s0 + $0x8] sm:$0xff]  ;;  %v148_v36 = vld [vmem:[%s678_s0 + $0x18] sm:$0xff] }
  0x12   :  { %369 = vmatpush3.msra.mxu0 %v122_v50  ;;  %422 = vmatpush3.msra.mxu1 %v122_v50  ;;  %vm54_vm5 = vcmp.gt.f32.partialorder %v22_v55, 0.0  ;;  %v101_v2 = vmul.f32 0.2, %v37_v58  ;;  %v119_v4 = vsel %vm55_vm3, %v23_v49, %v87_v57  ;;  %vm69_vm6 = vcmp.gt.f32.partialorder %v37_v58, 0.0  ;;  %v150_v33 = vld [vmem:[%s678_s0 + $0x28] sm:$0xff]  ;;  %v145_v34 = vld [vmem:[%s678_s0] sm:$0xff] }
  0x13   :  { %370 = vmatprep.subr.mxu0 %v137_v53  ;;  %407 = vmatprep.subr.mxu1 %v137_v53  ;;  %v85_v5 = vmul.f32 0.2, %v21_v61  ;;  %v134_v7 = vsel %vm70_vm4, %v38_v52, %v102_v60  ;;  %vm53_vm7 = vcmp.gt.f32.partialorder %v21_v61, 0.0  ;;  %v100_v8 = vmul.f32 0.2, %v36_v0  ;;  %v149_v35 = vld [vmem:[%s678_s0 + $0x20] sm:$0xff] }
  0x14   :  { %371 = vmatpush3.msra.mxu0 %v121_v56  ;;  %423 = vmatpush3.msra.mxu1 %v121_v56  ;;  %v118_v10 = vsel %vm54_vm5, %v22_v55, %v86_v63  ;;  %vm68_vm8 = vcmp.gt.f32.partialorder %v36_v0, 0.0  ;;  %v84_v11 = vmul.f32 0.2, %v20_v3  ;;  %v133_v13 = vsel %vm69_vm6, %v37_v58, %v101_v2  ;;  %v152_v37 = vld [vmem:[%s678_s0 + $0x38] sm:$0xff]  ;;  %v147_v38 = vld [vmem:[%s678_s0 + $0x10] sm:$0xff] }
  0x15   :  { %372 = vmatprep.subr.mxu0 %v136_v59  ;;  %408 = vmatprep.subr.mxu1 %v136_v59  ;;  %vm52_vm9 = vcmp.gt.f32.partialorder %v20_v3, 0.0  ;;  %v99_v14 = vmul.f32 0.2, %v35_v6  ;;  %v117_v16 = vsel %vm53_vm7, %v21_v61, %v85_v5  ;;  %vm67_vm10 = vcmp.gt.f32.partialorder %v35_v6, 0.0  ;;  %v151_v39 = vld [vmem:[%s678_s0 + $0x30] sm:$0xff] }
  0x16   :  { %373 = vmatpush3.msra.mxu0 %v120_v62  ;;  %424 = vmatpush3.msra.mxu1 %v120_v62  ;;  %v83_v17 = vmul.f32 0.2, %v19_v9  ;;  %v132_v19 = vsel %vm68_vm8, %v36_v0, %v100_v8  ;;  %vm51_vm11 = vcmp.gt.f32.partialorder %v19_v9, 0.0  ;;  %v98_v20 = vmul.f32 0.2, %v34_v12 }
  0x17   :  { %374 = vmatprep.subr.mxu0 %v135_v1  ;;  %409 = vmatprep.subr.mxu1 %v135_v1  ;;  %v116_v22 = vsel %vm52_vm9, %v20_v3, %v84_v11  ;;  %vm66_vm12 = vcmp.gt.f32.partialorder %v34_v12, 0.0  ;;  %v82_v23 = vmul.f32 0.2, %v18_v15  ;;  %v131_v24 = vsel %vm67_vm10, %v35_v6, %v99_v14  ;;  %v321_v14 = vld [vmem:[%s679_s3 + $0x8] sm:$0xff] }
  0x18   :  { %375 = vmatpush3.msra.mxu0 %v119_v4  ;;  %425 = vmatpush3.msra.mxu1 %v119_v4  ;;  %vm50_vm13 = vcmp.gt.f32.partialorder %v18_v15, 0.0  ;;  %v97_v25 = vmul.f32 0.2, %v33_v18  ;;  %v115_v26 = vsel %vm51_vm11, %v19_v9, %v83_v17  ;;  %vm65_vm14 = vcmp.gt.f32.partialorder %v33_v18, 0.0 }
  0x19   :  { %376 = vmatprep.subr.mxu0 %v134_v7  ;;  %410 = vmatprep.subr.mxu1 %v134_v7  ;;  %v81_v27 = vmul.f32 0.2, %v17_v21  ;;  %v130_v28 = vsel %vm66_vm12, %v34_v12, %v98_v20  ;;  %vm49_vm15 = vcmp.gt.f32.partialorder %v17_v21, 0.0  ;;  %v114_v29 = vsel %vm50_vm13, %v18_v15, %v82_v23  ;;  %v322_v15 = vld [vmem:[%s679_s3 + $0x10] sm:$0xff] }
  0x1a   :  { %377 = vmatpush3.msra.mxu0 %v118_v10  ;;  %426 = vmatpush3.msra.mxu1 %v118_v10  ;;  %v129_v30 = vsel %vm65_vm14, %v33_v18, %v97_v25  ;;  %vm238_vm0 = vcmask 261120   ;;  %v443_v12 = vmov 0  }
  0x1b   :  { %378 = vmatprep.subr.mxu0 %v133_v13  ;;  %411 = vmatprep.subr.mxu1 %v133_v13  ;;  %v113_v31 = vsel %vm49_vm15, %v17_v21, %v81_v27  ;;  %v320_v13 = vld [vmem:[%s679_s3] sm:$0xff] }
  0x1c   :  { %379 = vmatpush3.msra.mxu0 %v117_v16  ;;  %427 = vmatpush3.msra.mxu1 %v117_v16 }
  0x1d   :  { %380 = vmatprep.subr.mxu0 %v132_v19  ;;  %412 = vmatprep.subr.mxu1 %v132_v19 }
  0x1e   :  { %381 = vmatpush3.msra.mxu0 %v116_v22  ;;  %428 = vmatpush3.msra.mxu1 %v116_v22 }
  0x1f   :  { %382 = vmatprep.subr.mxu0 %v131_v24  ;;  %413 = vmatprep.subr.mxu1 %v131_v24 }
  0x20   :  { %383 = vmatpush3.msra.mxu0 %v115_v26  ;;  %429 = vmatpush3.msra.mxu1 %v115_v26 }
  0x21   :  { %384 = vmatprep.subr.mxu0 %v130_v28  ;;  %414 = vmatprep.subr.mxu1 %v130_v28  ;;  %v288_v28 = vld [vmem:[%s680_s2] sm:$0xff] }
  0x22   :  { %385 = vmatpush3.msra.mxu0 %v114_v29  ;;  %430 = vmatpush3.msra.mxu1 %v114_v29 }
  0x23   :  { %386 = vmatprep.subr.mxu0 %v129_v30  ;;  %415 = vmatprep.subr.mxu1 %v129_v30 }
  0x24   :  { %387 = vmatpush3.msra.mxu0 %v113_v31  ;;  %431 = vmatpush3.msra.mxu1 %v113_v31  ;;  %v290_v31 = vld [vmem:[%s680_s2 + $0x10] sm:$0xff] }
  0x25   :  { %217 = vmatprep.mubr.f32.mxu0 %v146_v32  ;;  %227 = vmatprep.mubr.f32.mxu1 %v150_v33 }
  0x26   :  { %218 = vmatmul.mubr.f32.vlgmr.msra.gmra.mxu0 %v145_v34  ;;  %228 = vmatmul.mubr.f32.vlgmr.msra.gmra.mxu1 %v149_v35  ;;  %v289_v35 = vld [vmem:[%s680_s2 + $0x8] sm:$0xff] }
  0x27   :  { %222 = vmatprep.mubr.f32.mxu0 %v148_v36  ;;  %232 = vmatprep.mubr.f32.mxu1 %v152_v37 }
  0x28   :  { %434 = vset.pattern.permute.xlu1 %v443_v12  ;;  %433 = vset.pattern.permute.xlu0 %v443_v12 }
  0x2a   :  { %223 = vmatmul.mubr.f32.gmra.mxu0 %v147_v38  ;;  %233 = vmatmul.mubr.f32.gmra.mxu1 %v151_v39  ;;  %v291_v38 = vld [vmem:[%s680_s2 + $0x18] sm:$0xff] }
  0xe6   :  { %v388_v40 = vpop.f32.mrf.mxu0  ;;  %v394_v41 = vpop.f32.mrf.mxu1 }
  0xe8   :  { %v389_v42 = vpop.f32.mrf.mxu0  ;;  %v395_v43 = vpop.f32.mrf.mxu1 }
  0xe9   :  { %v390_v44 = vadd.f32 %v389_v42, %v388_v40  ;;  %v396_v45 = vadd.f32 %v395_v43, %v394_v41  ;;  %v323_v40 = vld [vmem:[%s679_s3 + $0x18] sm:$0xff] }
  0xea   :  { %v391_v46 = vpop.f32.mrf.mxu0  ;;  %v397_v47 = vpop.f32.mrf.mxu1 }
  0xeb   :  { %v245_v48 = vsel %vm238_vm0, %v396_v45, 0.0  ;;  %v239_v49 = vsel %vm238_vm0, %v390_v44, 0.0 }
  0xec   :  { %v398_v50 = vpop.f32.mrf.mxu1  ;;  %246 = vadd.xlane.f32.xlu1 %v245_v48  ;;  %v392_v51 = vpop.f32.mrf.mxu0  ;;  %240 = vadd.xlane.f32.xlu0 %v239_v49 }
  0xed   :  { %v399_v52 = vadd.f32 %v398_v50, %v397_v47  ;;  %v393_v53 = vadd.f32 %v392_v51, %v391_v46 }
  0xef   :  { %v248_v54 = vsel %vm238_vm0, %v399_v52, 0.0  ;;  %v242_v55 = vsel %vm238_vm0, %v393_v53, 0.0 }
  0xf0   :  { %249 = vadd.xlane.f32.xlu1 %v248_v54  ;;  %243 = vadd.xlane.f32.xlu0 %v242_v55 }
 0x175   :  { %v247_v56 = vpop.xlane.xlu1 %246  ;;  %v241_v57 = vpop.xlane.xlu0 %240 }
 0x176   :  { %v254_v58 = vmul.f32 0.03125, %v247_v56  ;;  %v252_v59 = vmul.f32 0.03125, %v241_v57 }
 0x178   :  { %v613_v60 = vsub.f32 %v396_v45, %v254_v58  ;;  %v615_v61 = vsub.f32 %v390_v44, %v252_v59 }
 0x179   :  { %v250_v62 = vpop.xlane.xlu1 %249  ;;  %v244_v63 = vpop.xlane.xlu0 %243 }
 0x17a   :  { %v255_v0 = vmul.f32 0.03125, %v250_v62  ;;  %v253_v1 = vmul.f32 0.03125, %v244_v63  ;;  %v260_v2 = vmul.f32 %v615_v61, %v615_v61  ;;  %v262_v6 = vmul.f32 %v613_v60, %v613_v60 }
 0x17c   :  { %v619_v3 = vsub.f32 %v399_v52, %v255_v0  ;;  %v621_v4 = vsub.f32 %v393_v53, %v253_v1  ;;  %v264_v5 = vsel %vm238_vm0, %v260_v2, 0.0  ;;  %v270_v8 = vsel %vm238_vm0, %v262_v6, 0.0 }
 0x17d   :  { %265 = vadd.xlane.f32.xlu0 %v264_v5 }
 0x17e   :  { %v261_v7 = vmul.f32 %v621_v4, %v621_v4  ;;  %v263_v10 = vmul.f32 %v619_v3, %v619_v3 }
 0x180   :  { %v267_v9 = vsel %vm238_vm0, %v261_v7, 0.0  ;;  %v273_v11 = vsel %vm238_vm0, %v263_v10, 0.0 }
 0x181   :  { %271 = vadd.xlane.f32.xlu0 %v270_v8  ;;  %268 = vadd.xlane.f32.xlu1 %v267_v9 }
 0x185   :  { %274 = vadd.xlane.f32.xlu1 %v273_v11 }
 0x196   :  { %326 = vperm.xlu1 %434, %v320_v13  }
 0x19a   :  { %331 = vperm.xlu1 %434, %v321_v14  }
 0x19e   :  { %336 = vperm.xlu1 %434, %v322_v15  }
 0x206   :  { %v266_v16 = vpop.xlane.xlu0 %265 }
 0x207   :  { %v276_v17 = vmul.f32 0.03125, %v266_v16 }
 0x209   :  { %v280_v18 = vadd.f32 1e-05, %v276_v17 }
 0x20a   :  { %v269_v19 = vpop.xlane.xlu1 %268  ;;  %v272_v20 = vpop.xlane.xlu0 %271 }
 0x20b   :  { %435 = vrsqrt.f32 %v280_v18  ;;  %v277_v21 = vmul.f32 0.03125, %v269_v19  ;;  %v278_v22 = vmul.f32 0.03125, %v272_v20 }
 0x20d   :  { %v282_v23 = vadd.f32 1e-05, %v278_v22  ;;  %v281_v24 = vadd.f32 1e-05, %v277_v21 }
 0x20e   :  { %v275_v25 = vpop.xlane.xlu1 %274 }
 0x20f   :  { %v279_v26 = vmul.f32 0.03125, %v275_v25  ;;  %437 = vrsqrt.f32 %v282_v23 }
 0x210   :  { %439 = vrsqrt.f32 %v281_v24 }
 0x211   :  { %v283_v27 = vadd.f32 1e-05, %v279_v26 }
 0x212   :  { %v327_v41 = vpop.permute.xlu1 %326 }
 0x213   :  { %441 = vrsqrt.f32 %v283_v27 }
 0x216   :  { %v332_v42 = vpop.permute.xlu1 %331 }
 0x218   :  { %v436_v29 = vpop.eup %435 }
 0x219   :  { %v292_v30 = vmul.f32 %v436_v29, %v288_v28 }
 0x21a   :  { %v337_v44 = vpop.permute.xlu1 %336 }
 0x21b   :  { %298 = vperm.xlu0 %433, %v292_v30  }
 0x21c   :  { %v438_v32 = vpop.eup %437 }
 0x21d   :  { %v294_v33 = vmul.f32 %v438_v32, %v290_v31  ;;  %v440_v34 = vpop.eup %439 }
 0x21e   :  { %v293_v36 = vmul.f32 %v440_v34, %v289_v35 }
 0x21f   :  { %308 = vperm.xlu1 %434, %v294_v33  }
 0x220   :  { %v442_v37 = vpop.eup %441 }
 0x221   :  { %v295_v39 = vmul.f32 %v442_v37, %v291_v38 }
 0x223   :  { %303 = vperm.xlu1 %434, %v293_v36  }
 0x227   :  { %313 = vperm.xlu1 %434, %v295_v39  }
 0x22b   :  { %341 = vperm.xlu1 %434, %v323_v40  }
 0x296   :  { %v299_v43 = vpop.permute.xlu0 %298 }
 0x297   :  { %v316_v45 = vmul.f32 %v299_v43, %v615_v61 }
 0x299   :  { %v344_v46 = vadd.f32 %v327_v41, %v316_v45 }
 0x29a   :  { %v309_v47 = vpop.permute.xlu1 %308 }
 0x29b   :  { %348 = vst.msk [vmem:[%s681_s4] sm:$0xff] %vm238_vm0, %v344_v46  ;;  %v318_v48 = vmul.f32 %v309_v47, %v613_v60 }
 0x29d   :  { %v346_v49 = vadd.f32 %v337_v44, %v318_v48 }
 0x29e   :  { %v304_v50 = vpop.permute.xlu1 %303 }
 0x29f   :  { %350 = vst.msk [vmem:[%s681_s4 + $0x10] sm:$0xff] %vm238_vm0, %v346_v49  ;;  %v317_v51 = vmul.f32 %v304_v50, %v621_v4 }
 0x2a1   :  { %v345_v52 = vadd.f32 %v332_v42, %v317_v51 }
 0x2a2   :  { %v314_v53 = vpop.permute.xlu1 %313 }
 0x2a3   :  { %349 = vst.msk [vmem:[%s681_s4 + $0x8] sm:$0xff] %vm238_vm0, %v345_v52  ;;  %v319_v54 = vmul.f32 %v314_v53, %v619_v3 }
 0x2a6   :  { %v342_v55 = vpop.permute.xlu1 %341 }
 0x2a7   :  { %v347_v56 = vadd.f32 %v342_v55, %v319_v54 }
 0x2a9   :  { %351 = vst.msk [vmem:[%s681_s4 + $0x18] sm:$0xff] %vm238_vm0, %v347_v56 }

// kernel: unet_forward.14
= control target key start
LH: loop header
LB: loop body
LE: loop exit
PB: predicated region body
PF: predicated region fallthrough
CT: control target
= control target key end

     0   :  { %s543_s1 = inlined_call_operand.vmem [shape: f32[128,8], index: 1, kind: input, shape index: {}]   ;;  %s544_s0 = inlined_call_operand.vmem [shape: f32[32,128], index: 0, kind: input, shape index: {}]   ;;  %s545_s2 = inlined_call_operand.vmem [shape: f32[32,1], index: 2, kind: input, shape index: {}]   ;;  %s546_s3 = inlined_call_operand.vmem [shape: f32[32,1], index: 3, kind: input, shape index: {}]   ;;  %s547_s4 = inlined_call_operand.vmem [shape: f32[32,8], index: 4, kind: output, shape index: {}]  }
   0x1   :  { %v32_v0 = vld [vmem:[%s543_s1 + $0x78] sm:$0xff]  ;;  %v31_v1 = vld [vmem:[%s543_s1 + $0x70] sm:$0xff]  ;;  %v30_v2 = vld [vmem:[%s543_s1 + $0x68] sm:$0xff] }
   0x2   :  { %vm48_vm0 = vcmp.gt.f32.partialorder %v32_v0, 0.0  ;;  %v64_v3 = vmul.f32 0.2, %v32_v0  ;;  %vm47_vm1 = vcmp.gt.f32.partialorder %v31_v1, 0.0  ;;  %v63_v4 = vmul.f32 0.2, %v31_v1 }
   0x3   :  { %vm46_vm2 = vcmp.gt.f32.partialorder %v30_v2, 0.0  ;;  %v62_v5 = vmul.f32 0.2, %v30_v2  ;;  %v29_v6 = vld [vmem:[%s543_s1 + $0x60] sm:$0xff]  ;;  %v28_v7 = vld [vmem:[%s543_s1 + $0x58] sm:$0xff]  ;;  %v27_v11 = vld [vmem:[%s543_s1 + $0x50] sm:$0xff] }
   0x4   :  { %v80_v8 = vsel %vm48_vm0, %v32_v0, %v64_v3  ;;  %v79_v9 = vsel %vm47_vm1, %v31_v1, %v63_v4  ;;  %v61_v10 = vmul.f32 0.2, %v29_v6  ;;  %vm45_vm3 = vcmp.gt.f32.partialorder %v29_v6, 0.0  ;;  %v26_v14 = vld [vmem:[%s543_s1 + $0x48] sm:$0xff]  ;;  %v25_v17 = vld [vmem:[%s543_s1 + $0x40] sm:$0xff]  ;;  %v24_v20 = vld [vmem:[%s543_s1 + $0x38] sm:$0xff] }
   0x5   :  { %308 = vmatprep.subr.mxu0 %v80_v8  ;;  %346 = vmatprep.subr.mxu1 %v80_v8  ;;  %v78_v12 = vsel %vm46_vm2, %v30_v2, %v62_v5  ;;  %v60_v13 = vmul.f32 0.2, %v28_v7  ;;  %vm44_vm4 = vcmp.gt.f32.partialorder %v28_v7, 0.0  ;;  %v59_v16 = vmul.f32 0.2, %v27_v11  ;;  %v23_v23 = vld [vmem:[%s543_s1 + $0x30] sm:$0xff] }
   0x6   :  { %309 = vmatpush3.msra.mxu0 %v80_v8  ;;  %362 = vmatpush3.msra.mxu1 %v80_v8  ;;  %v77_v15 = vsel %vm45_vm3, %v29_v6, %v61_v10  ;;  %vm43_vm5 = vcmp.gt.f32.partialorder %v27_v11, 0.0  ;;  %v58_v19 = vmul.f32 0.2, %v26_v14  ;;  %vm42_vm6 = vcmp.gt.f32.partialorder %v26_v14, 0.0  ;;  %v22_v26 = vld [vmem:[%s543_s1 + $0x28] sm:$0xff]  ;;  %v21_v29 = vld [vmem:[%s543_s1 + $0x20] sm:$0xff] }
   0x7   :  { %310 = vmatprep.subr.mxu0 %v79_v9  ;;  %347 = vmatprep.subr.mxu1 %v79_v9  ;;  %v76_v18 = vsel %vm44_vm4, %v28_v7, %v60_v13  ;;  %v75_v21 = vsel %vm43_vm5, %v27_v11, %v59_v16  ;;  %v57_v22 = vmul.f32 0.2, %v25_v17  ;;  %vm41_vm7 = vcmp.gt.f32.partialorder %v25_v17, 0.0  ;;  %v20_v32 = vld [vmem:[%s543_s1 + $0x18] sm:$0xff]  ;;  %v19_v35 = vld [vmem:[%s543_s1 + $0x10] sm:$0xff]  ;;  %v18_v38 = vld [vmem:[%s543_s1 + $0x8] sm:$0xff] }
   0x8   :  { %311 = vmatpush3.msra.mxu0 %v79_v9  ;;  %363 = vmatpush3.msra.mxu1 %v79_v9  ;;  %v74_v24 = vsel %vm42_vm6, %v26_v14, %v58_v19  ;;  %v56_v25 = vmul.f32 0.2, %v24_v20  ;;  %vm40_vm8 = vcmp.gt.f32.partialorder %v24_v20, 0.0  ;;  %v55_v28 = vmul.f32 0.2, %v23_v23  ;;  %v17_v41 = vld [vmem:[%s543_s1] sm:$0xff] }
   0x9   :  { %312 = vmatprep.subr.mxu0 %v78_v12  ;;  %348 = vmatprep.subr.mxu1 %v78_v12  ;;  %v73_v27 = vsel %vm41_vm7, %v25_v17, %v57_v22  ;;  %vm39_vm9 = vcmp.gt.f32.partialorder %v23_v23, 0.0  ;;  %v54_v31 = vmul.f32 0.2, %v22_v26  ;;  %vm38_vm10 = vcmp.gt.f32.partialorder %v22_v26, 0.0  ;;  %v81_v48 = vld [vmem:[%s544_s0] sm:$0xff]  ;;  %v83_v49 = vld [vmem:[%s544_s0 + $0x10] sm:$0xff] }
   0xa   :  { %313 = vmatpush3.msra.mxu0 %v78_v12  ;;  %364 = vmatpush3.msra.mxu1 %v78_v12  ;;  %v72_v30 = vsel %vm40_vm8, %v24_v20, %v56_v25  ;;  %v71_v33 = vsel %vm39_vm9, %v23_v23, %v55_v28  ;;  %v53_v34 = vmul.f32 0.2, %v21_v29  ;;  %vm37_vm11 = vcmp.gt.f32.partialorder %v21_v29, 0.0  ;;  %v82_v50 = vld [vmem:[%s544_s0 + $0x8] sm:$0xff]  ;;  %v84_v51 = vld [vmem:[%s544_s0 + $0x18] sm:$0xff] }
   0xb   :  { %314 = vmatprep.subr.mxu0 %v77_v15  ;;  %349 = vmatprep.subr.mxu1 %v77_v15  ;;  %v70_v36 = vsel %vm38_vm10, %v22_v26, %v54_v31  ;;  %v52_v37 = vmul.f32 0.2, %v20_v32  ;;  %vm36_vm12 = vcmp.gt.f32.partialorder %v20_v32, 0.0  ;;  %v51_v40 = vmul.f32 0.2, %v19_v35  ;;  %v221_v31 = vld [vmem:[%s545_s2 + $0x8] sm:$0xff] }
   0xc   :  { %315 = vmatpush3.msra.mxu0 %v77_v15  ;;  %365 = vmatpush3.msra.mxu1 %v77_v15  ;;  %v69_v39 = vsel %vm37_vm11, %v21_v29, %v53_v34  ;;  %vm35_vm13 = vcmp.gt.f32.partialorder %v19_v35, 0.0  ;;  %v50_v43 = vmul.f32 0.2, %v18_v38  ;;  %vm34_vm14 = vcmp.gt.f32.partialorder %v18_v38, 0.0 }
   0xd   :  { %316 = vmatprep.subr.mxu0 %v76_v18  ;;  %350 = vmatprep.subr.mxu1 %v76_v18  ;;  %v68_v42 = vsel %vm36_vm12, %v20_v32, %v52_v37  ;;  %v67_v44 = vsel %vm35_vm13, %v19_v35, %v51_v40  ;;  %v49_v45 = vmul.f32 0.2, %v17_v41  ;;  %vm33_vm15 = vcmp.gt.f32.partialorder %v17_v41, 0.0  ;;  %v223_v35 = vld [vmem:[%s545_s2 + $0x18] sm:$0xff]  ;;  %v254_v40 = vld [vmem:[%s546_s3 + $0x10] sm:$0xff] }
   0xe   :  { %317 = vmatpush3.msra.mxu0 %v76_v18  ;;  %366 = vmatpush3.msra.mxu1 %v76_v18  ;;  %v66_v46 = vsel %vm34_vm14, %v18_v38, %v50_v43  ;;  %vm170_vm0 = vcmask 64512   ;;  %v389_v16 = vmov 0   ;;  %v252_v38 = vld [vmem:[%s546_s3] sm:$0xff] }
   0xf   :  { %318 = vmatprep.subr.mxu0 %v75_v21  ;;  %351 = vmatprep.subr.mxu1 %v75_v21  ;;  %v65_v47 = vsel %vm33_vm15, %v17_v41, %v49_v45 }
  0x10   :  { %319 = vmatpush3.msra.mxu0 %v75_v21  ;;  %367 = vmatpush3.msra.mxu1 %v75_v21 }
  0x11   :  { %320 = vmatprep.subr.mxu0 %v74_v24  ;;  %352 = vmatprep.subr.mxu1 %v74_v24 }
  0x12   :  { %321 = vmatpush3.msra.mxu0 %v74_v24  ;;  %368 = vmatpush3.msra.mxu1 %v74_v24 }
  0x13   :  { %322 = vmatprep.subr.mxu0 %v73_v27  ;;  %353 = vmatprep.subr.mxu1 %v73_v27 }
  0x14   :  { %323 = vmatpush3.msra.mxu0 %v73_v27  ;;  %369 = vmatpush3.msra.mxu1 %v73_v27  ;;  %v220_v27 = vld [vmem:[%s545_s2] sm:$0xff] }
  0x15   :  { %324 = vmatprep.subr.mxu0 %v72_v30  ;;  %354 = vmatprep.subr.mxu1 %v72_v30 }
  0x16   :  { %325 = vmatpush3.msra.mxu0 %v72_v30  ;;  %370 = vmatpush3.msra.mxu1 %v72_v30 }
  0x17   :  { %326 = vmatprep.subr.mxu0 %v71_v33  ;;  %355 = vmatprep.subr.mxu1 %v71_v33 }
  0x18   :  { %327 = vmatpush3.msra.mxu0 %v71_v33  ;;  %371 = vmatpush3.msra.mxu1 %v71_v33 }
  0x19   :  { %328 = vmatprep.subr.mxu0 %v70_v36  ;;  %356 = vmatprep.subr.mxu1 %v70_v36 }
  0x1a   :  { %329 = vmatpush3.msra.mxu0 %v70_v36  ;;  %372 = vmatpush3.msra.mxu1 %v70_v36 }
  0x1b   :  { %330 = vmatprep.subr.mxu0 %v69_v39  ;;  %357 = vmatprep.subr.mxu1 %v69_v39 }
  0x1c   :  { %331 = vmatpush3.msra.mxu0 %v69_v39  ;;  %373 = vmatpush3.msra.mxu1 %v69_v39  ;;  %v253_v39 = vld [vmem:[%s546_s3 + $0x8] sm:$0xff] }
  0x1d   :  { %332 = vmatprep.subr.mxu0 %v68_v42  ;;  %358 = vmatprep.subr.mxu1 %v68_v42 }
  0x1e   :  { %333 = vmatpush3.msra.mxu0 %v68_v42  ;;  %374 = vmatpush3.msra.mxu1 %v68_v42  ;;  %v222_v42 = vld [vmem:[%s545_s2 + $0x10] sm:$0xff] }
  0x1f   :  { %334 = vmatprep.subr.mxu0 %v67_v44  ;;  %359 = vmatprep.subr.mxu1 %v67_v44 }
  0x20   :  { %335 = vmatpush3.msra.mxu0 %v67_v44  ;;  %375 = vmatpush3.msra.mxu1 %v67_v44  ;;  %v255_v44 = vld [vmem:[%s546_s3 + $0x18] sm:$0xff] }
  0x21   :  { %336 = vmatprep.subr.mxu0 %v66_v46  ;;  %360 = vmatprep.subr.mxu1 %v66_v46 }
  0x22   :  { %337 = vmatpush3.msra.mxu0 %v66_v46  ;;  %376 = vmatpush3.msra.mxu1 %v66_v46 }
  0x23   :  { %338 = vmatprep.subr.mxu0 %v65_v47  ;;  %361 = vmatprep.subr.mxu1 %v65_v47 }
  0x24   :  { %339 = vmatpush3.msra.mxu0 %v65_v47  ;;  %377 = vmatpush3.msra.mxu1 %v65_v47 }
  0x25   :  { %340 = vmatprep.mubr.f32.mxu0 %v81_v48  ;;  %343 = vmatprep.mubr.f32.mxu1 %v83_v49 }
  0x26   :  { %341 = vmatmul.mubr.f32.vlgmr.msra.gmra.mxu0 %v82_v50  ;;  %344 = vmatmul.mubr.f32.vlgmr.msra.gmra.mxu1 %v84_v51 }
  0x27   :  { %379 = vset.pattern.permute.xlu0 %v389_v16  ;;  %380 = vset.pattern.permute.xlu1 %v389_v16 }
  0xe6   :  { %v342_v52 = vpop.f32.mrf.mxu0  ;;  %v345_v53 = vpop.f32.mrf.mxu1 }
  0xe7   :  { %v180_v58 = vsel %vm170_vm0, %v345_v53, 0.0  ;;  %v174_v59 = vsel %vm170_vm0, %v342_v52, 0.0 }
  0xe8   :  { %v151_v54 = vpop.f32.mrf.mxu0  ;;  %v161_v55 = vpop.f32.mrf.mxu1 }
  0xe9   :  { %v177_v56 = vsel %vm170_vm0, %v161_v55, 0.0  ;;  %v171_v57 = vsel %vm170_vm0, %v151_v54, 0.0 }
  0xea   :  { %178 = vadd.xlane.f32.xlu1 %v177_v56  ;;  %172 = vadd.xlane.f32.xlu0 %v171_v57 }
  0xee   :  { %181 = vadd.xlane.f32.xlu1 %v180_v58  ;;  %175 = vadd.xlane.f32.xlu0 %v174_v59 }
 0x173   :  { %v179_v60 = vpop.xlane.xlu1 %178  ;;  %v173_v61 = vpop.xlane.xlu0 %172 }
 0x174   :  { %v186_v62 = vmul.f32 0.125, %v179_v60  ;;  %v184_v63 = vmul.f32 0.125, %v173_v61 }
 0x176   :  { %v479_v0 = vsub.f32 %v161_v55, %v186_v62  ;;  %v481_v1 = vsub.f32 %v151_v54, %v184_v63 }
 0x177   :  { %v182_v2 = vpop.xlane.xlu1 %181  ;;  %v176_v3 = vpop.xlane.xlu0 %175 }
 0x178   :  { %v187_v4 = vmul.f32 0.125, %v182_v2  ;;  %v185_v5 = vmul.f32 0.125, %v176_v3  ;;  %v192_v6 = vmul.f32 %v481_v1, %v481_v1  ;;  %v194_v10 = vmul.f32 %v479_v0, %v479_v0 }
 0x17a   :  { %v485_v7 = vsub.f32 %v345_v53, %v187_v4  ;;  %v487_v8 = vsub.f32 %v342_v52, %v185_v5  ;;  %v196_v9 = vsel %vm170_vm0, %v192_v6, 0.0  ;;  %v202_v12 = vsel %vm170_vm0, %v194_v10, 0.0 }
 0x17b   :  { %197 = vadd.xlane.f32.xlu0 %v196_v9 }
 0x17c   :  { %v193_v11 = vmul.f32 %v487_v8, %v487_v8  ;;  %v195_v14 = vmul.f32 %v485_v7, %v485_v7 }
 0x17e   :  { %v199_v13 = vsel %vm170_vm0, %v193_v11, 0.0  ;;  %v205_v15 = vsel %vm170_vm0, %v195_v14, 0.0 }
 0x17f   :  { %203 = vadd.xlane.f32.xlu0 %v202_v12  ;;  %200 = vadd.xlane.f32.xlu1 %v199_v13 }
 0x183   :  { %206 = vadd.xlane.f32.xlu1 %v205_v15 }
 0x204   :  { %v198_v17 = vpop.xlane.xlu0 %197 }
 0x205   :  { %v208_v18 = vmul.f32 0.125, %v198_v17 }
 0x207   :  { %v212_v19 = vadd.f32 1e-05, %v208_v18 }
 0x208   :  { %v201_v20 = vpop.xlane.xlu1 %200  ;;  %v204_v26 = vpop.xlane.xlu0 %203 }
 0x209   :  { %381 = vrsqrt.f32 %v212_v19  ;;  %v209_v21 = vmul.f32 0.125, %v201_v20  ;;  %v210_v29 = vmul.f32 0.125, %v204_v26 }
 0x20b   :  { %v213_v22 = vadd.f32 1e-05, %v209_v21  ;;  %v214_v33 = vadd.f32 1e-05, %v210_v29 }
 0x20c   :  { %v207_v23 = vpop.xlane.xlu1 %206 }
 0x20d   :  { %383 = vrsqrt.f32 %v213_v22  ;;  %v211_v24 = vmul.f32 0.125, %v207_v23 }
 0x20f   :  { %v215_v25 = vadd.f32 1e-05, %v211_v24 }
 0x211   :  { %385 = vrsqrt.f32 %v215_v25 }
 0x212   :  { %387 = vrsqrt.f32 %v214_v33 }
 0x216   :  { %v382_v28 = vpop.eup %381 }
 0x217   :  { %v224_v30 = vmul.f32 %v382_v28, %v220_v27 }
 0x219   :  { %230 = vperm.xlu0 %379, %v224_v30  }
 0x21a   :  { %v384_v32 = vpop.eup %383 }
 0x21b   :  { %v225_v34 = vmul.f32 %v384_v32, %v221_v31 }
 0x21d   :  { %235 = vperm.xlu1 %380, %v225_v34  }
 0x21e   :  { %v386_v36 = vpop.eup %385 }
 0x21f   :  { %v227_v37 = vmul.f32 %v386_v36, %v223_v35  ;;  %v388_v41 = vpop.eup %387 }
 0x220   :  { %v226_v43 = vmul.f32 %v388_v41, %v222_v42 }
 0x221   :  { %245 = vperm.xlu1 %380, %v227_v37  }
 0x225   :  { %258 = vperm.xlu1 %380, %v252_v38  }
 0x229   :  { %263 = vperm.xlu1 %380, %v253_v39  }
 0x22d   :  { %268 = vperm.xlu1 %380, %v254_v40  }
 0x231   :  { %240 = vperm.xlu1 %380, %v226_v43  }
 0x235   :  { %273 = vperm.xlu1 %380, %v255_v44  }
 0x294   :  { %v231_v46 = vpop.permute.xlu0 %230 }
 0x295   :  { %v248_v48 = vmul.f32 %v231_v46, %v481_v1 }
 0x298   :  { %v236_v45 = vpop.permute.xlu1 %235 }
 0x299   :  { %v249_v51 = vmul.f32 %v236_v45, %v487_v8 }
 0x29c   :  { %v246_v47 = vpop.permute.xlu1 %245 }
 0x29d   :  { %v251_v57 = vmul.f32 %v246_v47, %v485_v7 }
 0x2a0   :  { %v259_v49 = vpop.permute.xlu1 %258 }
 0x2a1   :  { %v276_v50 = vadd.f32 %v259_v49, %v248_v48 }
 0x2a3   :  { %280 = vst.msk [vmem:[%s547_s4] sm:$0xff] %vm170_vm0, %v276_v50 }
 0x2a4   :  { %v264_v52 = vpop.permute.xlu1 %263 }
 0x2a5   :  { %v277_v53 = vadd.f32 %v264_v52, %v249_v51 }
 0x2a7   :  { %281 = vst.msk [vmem:[%s547_s4 + $0x8] sm:$0xff] %vm170_vm0, %v277_v53 }
 0x2a8   :  { %v269_v54 = vpop.permute.xlu1 %268 }
 0x2ac   :  { %v241_v55 = vpop.permute.xlu1 %240 }
 0x2ad   :  { %v250_v56 = vmul.f32 %v241_v55, %v479_v0 }
 0x2af   :  { %v278_v58 = vadd.f32 %v269_v54, %v250_v56 }
 0x2b0   :  { %v274_v59 = vpop.permute.xlu1 %273 }
 0x2b1   :  { %282 = vst.msk [vmem:[%s547_s4 + $0x10] sm:$0xff] %vm170_vm0, %v278_v58  ;;  %v279_v60 = vadd.f32 %v274_v59, %v251_v57 }
 0x2b3   :  { %283 = vst.msk [vmem:[%s547_s4 + $0x18] sm:$0xff] %vm170_vm0, %v279_v60 }

// kernel: unet_forward.15
= control target key start
LH: loop header
LB: loop body
LE: loop exit
PB: predicated region body
PF: predicated region fallthrough
CT: control target
= control target key end

     0   :  { %vm25_vm0 = vcmask 261120   ;;  %v285_v36 = vmov 0   ;;  %s407_s1 = inlined_call_operand.vmem [shape: f32[32,32], index: 1, kind: input, shape index: {}]   ;;  %s408_s0 = inlined_call_operand.vmem [shape: f32[32,32], index: 0, kind: input, shape index: {}]   ;;  %s409_s2 = inlined_call_operand.vmem [shape: f32[32,1], index: 2, kind: input, shape index: {}]   ;;  %s410_s3 = inlined_call_operand.vmem [shape: f32[32,1], index: 3, kind: input, shape index: {}]   ;;  %s411_s4 = inlined_call_operand.vmem [shape: f32[32,32], index: 4, kind: output, shape index: {}]  }
   0x1   :  { %v20_v0 = vld [vmem:[%s407_s1 + $0x18] sm:$0xff]  ;;  %v19_v1 = vld [vmem:[%s407_s1 + $0x10] sm:$0xff]  ;;  %v18_v2 = vld [vmem:[%s407_s1 + $0x8] sm:$0xff]  ;;  %275 = vset.pattern.permute.xlu0 %v285_v36  ;;  %276 = vset.pattern.permute.xlu1 %v285_v36 }
   0x2   :  { %252 = vmatprep.subr.mxu0 %v20_v0  ;;  %266 = vmatprep.subr.mxu1 %v20_v0  ;;  %v17_v3 = vld [vmem:[%s407_s1] sm:$0xff]  ;;  %v23_v5 = vld [vmem:[%s408_s0 + $0x10] sm:$0xff]  ;;  %v22_v6 = vld [vmem:[%s408_s0 + $0x8] sm:$0xff] }
   0x3   :  { %253 = vmatpush3.msra.mxu0 %v20_v0  ;;  %270 = vmatpush3.msra.mxu1 %v20_v0  ;;  %v21_v4 = vld [vmem:[%s408_s0] sm:$0xff]  ;;  %v24_v7 = vld [vmem:[%s408_s0 + $0x18] sm:$0xff]  ;;  %v173_v51 = vld [vmem:[%s409_s2 + $0x8] sm:$0xff] }
   0x4   :  { %254 = vmatprep.subr.mxu0 %v19_v1  ;;  %267 = vmatprep.subr.mxu1 %v19_v1  ;;  %v172_v47 = vld [vmem:[%s409_s2] sm:$0xff]  ;;  %v175_v55 = vld [vmem:[%s409_s2 + $0x18] sm:$0xff]  ;;  %v205_v59 = vld [vmem:[%s410_s3 + $0x8] sm:$0xff] }
   0x5   :  { %255 = vmatpush3.msra.mxu0 %v19_v1  ;;  %271 = vmatpush3.msra.mxu1 %v19_v1  ;;  %v204_v58 = vld [vmem:[%s410_s3] sm:$0xff]  ;;  %v206_v60 = vld [vmem:[%s410_s3 + $0x10] sm:$0xff]  ;;  %v207_v0 = vld [vmem:[%s410_s3 + $0x18] sm:$0xff] }
   0x6   :  { %256 = vmatprep.subr.mxu0 %v18_v2  ;;  %268 = vmatprep.subr.mxu1 %v18_v2  ;;  %v174_v62 = vld [vmem:[%s409_s2 + $0x10] sm:$0xff] }
   0x7   :  { %257 = vmatpush3.msra.mxu0 %v18_v2  ;;  %272 = vmatpush3.msra.mxu1 %v18_v2 }
   0x8   :  { %258 = vmatprep.subr.mxu0 %v17_v3  ;;  %269 = vmatprep.subr.mxu1 %v17_v3 }
   0x9   :  { %259 = vmatpush3.msra.mxu0 %v17_v3  ;;  %273 = vmatpush3.msra.mxu1 %v17_v3 }
   0xa   :  { %260 = vmatprep.mubr.msk.f32.mxu0 %vm25_vm0, %v21_v4  ;;  %263 = vmatprep.mubr.msk.f32.mxu1 %vm25_vm0, %v23_v5 }
   0xb   :  { %261 = vmatmul.mubr.msk.f32.vlgmr.msra.gmra.mxu0 %vm25_vm0, %v22_v6  ;;  %264 = vmatmul.mubr.msk.f32.vlgmr.msra.gmra.mxu1 %vm25_vm0, %v24_v7 }
  0xcb   :  { %v262_v8 = vpop.f32.mrf.mxu0  ;;  %v265_v9 = vpop.f32.mrf.mxu1 }
  0xcc   :  { %v132_v14 = vsel %vm25_vm0, %v265_v9, 0.0  ;;  %v126_v15 = vsel %vm25_vm0, %v262_v8, 0.0 }
  0xcd   :  { %v104_v10 = vpop.f32.mrf.mxu0  ;;  %v114_v11 = vpop.f32.mrf.mxu1 }
  0xce   :  { %v129_v12 = vsel %vm25_vm0, %v114_v11, 0.0  ;;  %v123_v13 = vsel %vm25_vm0, %v104_v10, 0.0 }
  0xcf   :  { %130 = vadd.xlane.f32.xlu1 %v129_v12  ;;  %124 = vadd.xlane.f32.xlu0 %v123_v13 }
  0xd3   :  { %133 = vadd.xlane.f32.xlu1 %v132_v14  ;;  %127 = vadd.xlane.f32.xlu0 %v126_v15 }
 0x158   :  { %v131_v16 = vpop.xlane.xlu1 %130  ;;  %v125_v17 = vpop.xlane.xlu0 %124 }
 0x159   :  { %v138_v18 = vmul.f32 0.03125, %v131_v16  ;;  %v136_v19 = vmul.f32 0.03125, %v125_v17 }
 0x15b   :  { %v343_v20 = vsub.f32 %v114_v11, %v138_v18  ;;  %v345_v21 = vsub.f32 %v104_v10, %v136_v19 }
 0x15c   :  { %v134_v22 = vpop.xlane.xlu1 %133  ;;  %v128_v23 = vpop.xlane.xlu0 %127 }
 0x15d   :  { %v139_v24 = vmul.f32 0.03125, %v134_v22  ;;  %v137_v25 = vmul.f32 0.03125, %v128_v23  ;;  %v144_v26 = vmul.f32 %v345_v21, %v345_v21  ;;  %v146_v30 = vmul.f32 %v343_v20, %v343_v20 }
 0x15f   :  { %v349_v27 = vsub.f32 %v265_v9, %v139_v24  ;;  %v351_v28 = vsub.f32 %v262_v8, %v137_v25  ;;  %v148_v29 = vsel %vm25_vm0, %v144_v26, 0.0  ;;  %v154_v32 = vsel %vm25_vm0, %v146_v30, 0.0 }
 0x160   :  { %149 = vadd.xlane.f32.xlu0 %v148_v29 }
 0x161   :  { %v145_v31 = vmul.f32 %v351_v28, %v351_v28  ;;  %v147_v34 = vmul.f32 %v349_v27, %v349_v27 }
 0x163   :  { %v151_v33 = vsel %vm25_vm0, %v145_v31, 0.0  ;;  %v157_v35 = vsel %vm25_vm0, %v147_v34, 0.0 }
 0x164   :  { %155 = vadd.xlane.f32.xlu0 %v154_v32  ;;  %152 = vadd.xlane.f32.xlu1 %v151_v33 }
 0x168   :  { %158 = vadd.xlane.f32.xlu1 %v157_v35 }
 0x1e9   :  { %v150_v37 = vpop.xlane.xlu0 %149 }
 0x1ea   :  { %v160_v38 = vmul.f32 0.03125, %v150_v37 }
 0x1ec   :  { %v164_v39 = vadd.f32 1e-05, %v160_v38 }
 0x1ed   :  { %v153_v40 = vpop.xlane.xlu1 %152  ;;  %v156_v46 = vpop.xlane.xlu0 %155 }
 0x1ee   :  { %277 = vrsqrt.f32 %v164_v39  ;;  %v161_v41 = vmul.f32 0.03125, %v153_v40  ;;  %v162_v49 = vmul.f32 0.03125, %v156_v46 }
 0x1f0   :  { %v165_v42 = vadd.f32 1e-05, %v161_v41  ;;  %v166_v53 = vadd.f32 1e-05, %v162_v49 }
 0x1f1   :  { %v159_v43 = vpop.xlane.xlu1 %158 }
 0x1f2   :  { %279 = vrsqrt.f32 %v165_v42  ;;  %v163_v44 = vmul.f32 0.03125, %v159_v43 }
 0x1f4   :  { %v167_v45 = vadd.f32 1e-05, %v163_v44 }
 0x1f6   :  { %281 = vrsqrt.f32 %v167_v45 }
 0x1f7   :  { %283 = vrsqrt.f32 %v166_v53 }
 0x1fb   :  { %v278_v48 = vpop.eup %277 }
 0x1fc   :  { %v176_v50 = vmul.f32 %v278_v48, %v172_v47 }
 0x1fe   :  { %182 = vperm.xlu0 %275, %v176_v50  }
 0x1ff   :  { %v280_v52 = vpop.eup %279 }
 0x200   :  { %v177_v54 = vmul.f32 %v280_v52, %v173_v51 }
 0x202   :  { %187 = vperm.xlu1 %276, %v177_v54  }
 0x203   :  { %v282_v56 = vpop.eup %281 }
 0x204   :  { %v179_v57 = vmul.f32 %v282_v56, %v175_v55  ;;  %v284_v61 = vpop.eup %283 }
 0x205   :  { %v178_v63 = vmul.f32 %v284_v61, %v174_v62 }
 0x206   :  { %197 = vperm.xlu1 %276, %v179_v57  }
 0x20a   :  { %210 = vperm.xlu1 %276, %v204_v58  }
 0x20e   :  { %215 = vperm.xlu1 %276, %v205_v59  }
 0x212   :  { %220 = vperm.xlu1 %276, %v206_v60  }
 0x216   :  { %192 = vperm.xlu1 %276, %v178_v63  }
 0x21a   :  { %225 = vperm.xlu1 %276, %v207_v0  }
 0x279   :  { %v183_v2 = vpop.permute.xlu0 %182 }
 0x27a   :  { %v200_v4 = vmul.f32 %v183_v2, %v345_v21 }
 0x27d   :  { %v188_v1 = vpop.permute.xlu1 %187 }
 0x27e   :  { %v201_v7 = vmul.f32 %v188_v1, %v351_v28 }
 0x281   :  { %v198_v3 = vpop.permute.xlu1 %197 }
 0x282   :  { %v203_v13 = vmul.f32 %v198_v3, %v349_v27 }
 0x285   :  { %v211_v5 = vpop.permute.xlu1 %210 }
 0x286   :  { %v228_v6 = vadd.f32 %v211_v5, %v200_v4 }
 0x288   :  { %232 = vst.msk [vmem:[%s411_s4] sm:$0xff] %vm25_vm0, %v228_v6 }
 0x289   :  { %v216_v8 = vpop.permute.xlu1 %215 }
 0x28a   :  { %v229_v9 = vadd.f32 %v216_v8, %v201_v7 }
 0x28c   :  { %233 = vst.msk [vmem:[%s411_s4 + $0x8] sm:$0xff] %vm25_vm0, %v229_v9 }
 0x28d   :  { %v221_v10 = vpop.permute.xlu1 %220 }
 0x291   :  { %v193_v11 = vpop.permute.xlu1 %192 }
 0x292   :  { %v202_v12 = vmul.f32 %v193_v11, %v343_v20 }
 0x294   :  { %v230_v14 = vadd.f32 %v221_v10, %v202_v12 }
 0x295   :  { %v226_v15 = vpop.permute.xlu1 %225 }
 0x296   :  { %234 = vst.msk [vmem:[%s411_s4 + $0x10] sm:$0xff] %vm25_vm0, %v230_v14  ;;  %v231_v16 = vadd.f32 %v226_v15, %v203_v13 }
 0x298   :  { %235 = vst.msk [vmem:[%s411_s4 + $0x18] sm:$0xff] %vm25_vm0, %v231_v16 }

// kernel: unet_forward.16
= control target key start
LH: loop header
LB: loop body
LE: loop exit
PB: predicated region body
PF: predicated region fallthrough
CT: control target
= control target key end

     0   :  { %vm99_vm0 = vcmask 523264   ;;  %s794_s1 = inlined_call_operand.vmem [shape: f32[576,128], index: 1, kind: input, shape index: {}]   ;;  %s795_s0 = inlined_call_operand.vmem [shape: f32[16,576], index: 0, kind: input, shape index: {}]   ;;  %s796_s2 = inlined_call_operand.vmem [shape: f32[16,1], index: 2, kind: input, shape index: {}]   ;;  %s797_s3 = inlined_call_operand.vmem [shape: f32[16,1], index: 3, kind: input, shape index: {}]   ;;  %s798_s4 = inlined_call_operand.vmem [shape: f32[16,128], index: 4, kind: output, shape index: {}]  }
   0x1   :  { %v48_v0 = vld [vmem:[%s794_s1 + $0xf8] sm:$0xff]  ;;  %v47_v4 = vld [vmem:[%s794_s1 + $0xf0] sm:$0xff]  ;;  %v46_v8 = vld [vmem:[%s794_s1 + $0xe8] sm:$0xff] }
   0x2   :  { %v80_v1 = vld [vmem:[%s794_s1 + $0x1f8] sm:$0xff]  ;;  %390 = vmatprep.subr.mxu0 %v48_v0  ;;  %v79_v5 = vld [vmem:[%s794_s1 + $0x1f0] sm:$0xff]  ;;  %v78_v9 = vld [vmem:[%s794_s1 + $0x1e8] sm:$0xff] }
   0x3   :  { %v32_v2 = vld [vmem:[%s794_s1 + $0x78] sm:$0xff]  ;;  %428 = vmatprep.subr.mxu1 %v80_v1  ;;  %v31_v6 = vld [vmem:[%s794_s1 + $0x70] sm:$0xff]  ;;  %v30_v10 = vld [vmem:[%s794_s1 + $0x68] sm:$0xff] }
   0x4   :  { %v64_v3 = vld [vmem:[%s794_s1 + $0x178] sm:$0xff]  ;;  %391 = vmatpush3.msra.mxu0 %v32_v2  ;;  %v63_v7 = vld [vmem:[%s794_s1 + $0x170] sm:$0xff]  ;;  %v62_v11 = vld [vmem:[%s794_s1 + $0x168] sm:$0xff] }
   0x5   :  { %429 = vmatpush3.msra.mxu1 %v64_v3  ;;  %392 = vmatprep.subr.mxu0 %v47_v4  ;;  %v45_v12 = vld [vmem:[%s794_s1 + $0xe0] sm:$0xff]  ;;  %v44_v16 = vld [vmem:[%s794_s1 + $0xd8] sm:$0xff]  ;;  %v43_v20 = vld [vmem:[%s794_s1 + $0xd0] sm:$0xff] }
   0x6   :  { %430 = vmatprep.subr.mxu1 %v79_v5  ;;  %393 = vmatpush3.msra.mxu0 %v31_v6  ;;  %v77_v13 = vld [vmem:[%s794_s1 + $0x1e0] sm:$0xff]  ;;  %v76_v17 = vld [vmem:[%s794_s1 + $0x1d8] sm:$0xff]  ;;  %v75_v21 = vld [vmem:[%s794_s1 + $0x1d0] sm:$0xff] }
   0x7   :  { %431 = vmatpush3.msra.mxu1 %v63_v7  ;;  %394 = vmatprep.subr.mxu0 %v46_v8  ;;  %v29_v14 = vld [vmem:[%s794_s1 + $0x60] sm:$0xff]  ;;  %v28_v18 = vld [vmem:[%s794_s1 + $0x58] sm:$0xff]  ;;  %v27_v22 = vld [vmem:[%s794_s1 + $0x50] sm:$0xff] }
   0x8   :  { %432 = vmatprep.subr.mxu1 %v78_v9  ;;  %v61_v15 = vld [vmem:[%s794_s1 + $0x160] sm:$0xff]  ;;  %395 = vmatpush3.msra.mxu0 %v30_v10  ;;  %v60_v19 = vld [vmem:[%s794_s1 + $0x158] sm:$0xff]  ;;  %v59_v23 = vld [vmem:[%s794_s1 + $0x150] sm:$0xff] }
   0x9   :  { %433 = vmatpush3.msra.mxu1 %v62_v11  ;;  %396 = vmatprep.subr.mxu0 %v45_v12  ;;  %v42_v24 = vld [vmem:[%s794_s1 + $0xc8] sm:$0xff]  ;;  %v41_v28 = vld [vmem:[%s794_s1 + $0xc0] sm:$0xff]  ;;  %v40_v32 = vld [vmem:[%s794_s1 + $0xb8] sm:$0xff] }
   0xa   :  { %434 = vmatprep.subr.mxu1 %v77_v13  ;;  %397 = vmatpush3.msra.mxu0 %v29_v14  ;;  %v74_v25 = vld [vmem:[%s794_s1 + $0x1c8] sm:$0xff]  ;;  %v73_v29 = vld [vmem:[%s794_s1 + $0x1c0] sm:$0xff]  ;;  %v72_v33 = vld [vmem:[%s794_s1 + $0x1b8] sm:$0xff] }
   0xb   :  { %435 = vmatpush3.msra.mxu1 %v61_v15  ;;  %398 = vmatprep.subr.mxu0 %v44_v16  ;;  %v26_v26 = vld [vmem:[%s794_s1 + $0x48] sm:$0xff]  ;;  %v25_v30 = vld [vmem:[%s794_s1 + $0x40] sm:$0xff]  ;;  %v24_v34 = vld [vmem:[%s794_s1 + $0x38] sm:$0xff] }
   0xc   :  { %436 = vmatprep.subr.mxu1 %v76_v17  ;;  %399 = vmatpush3.msra.mxu0 %v28_v18  ;;  %v58_v27 = vld [vmem:[%s794_s1 + $0x148] sm:$0xff]  ;;  %v57_v31 = vld [vmem:[%s794_s1 + $0x140] sm:$0xff]  ;;  %v56_v35 = vld [vmem:[%s794_s1 + $0x138] sm:$0xff] }
   0xd   :  { %437 = vmatpush3.msra.mxu1 %v60_v19  ;;  %400 = vmatprep.subr.mxu0 %v43_v20  ;;  %v39_v36 = vld [vmem:[%s794_s1 + $0xb0] sm:$0xff]  ;;  %v38_v40 = vld [vmem:[%s794_s1 + $0xa8] sm:$0xff]  ;;  %v37_v44 = vld [vmem:[%s794_s1 + $0xa0] sm:$0xff] }
   0xe   :  { %438 = vmatprep.subr.mxu1 %v75_v21  ;;  %401 = vmatpush3.msra.mxu0 %v27_v22  ;;  %v71_v37 = vld [vmem:[%s794_s1 + $0x1b0] sm:$0xff]  ;;  %v70_v41 = vld [vmem:[%s794_s1 + $0x1a8] sm:$0xff]  ;;  %v69_v45 = vld [vmem:[%s794_s1 + $0x1a0] sm:$0xff] }
   0xf   :  { %439 = vmatpush3.msra.mxu1 %v59_v23  ;;  %402 = vmatprep.subr.mxu0 %v42_v24  ;;  %v23_v38 = vld [vmem:[%s794_s1 + $0x30] sm:$0xff]  ;;  %v22_v42 = vld [vmem:[%s794_s1 + $0x28] sm:$0xff]  ;;  %v21_v46 = vld [vmem:[%s794_s1 + $0x20] sm:$0xff] }
  0x10   :  { %440 = vmatprep.subr.mxu1 %v74_v25  ;;  %403 = vmatpush3.msra.mxu0 %v26_v26  ;;  %v55_v39 = vld [vmem:[%s794_s1 + $0x130] sm:$0xff]  ;;  %v54_v43 = vld [vmem:[%s794_s1 + $0x128] sm:$0xff]  ;;  %v53_v47 = vld [vmem:[%s794_s1 + $0x120] sm:$0xff] }
  0x11   :  { %441 = vmatpush3.msra.mxu1 %v58_v27  ;;  %404 = vmatprep.subr.mxu0 %v41_v28  ;;  %v36_v48 = vld [vmem:[%s794_s1 + $0x98] sm:$0xff]  ;;  %v35_v52 = vld [vmem:[%s794_s1 + $0x90] sm:$0xff]  ;;  %v34_v56 = vld [vmem:[%s794_s1 + $0x88] sm:$0xff] }
  0x12   :  { %442 = vmatprep.subr.mxu1 %v73_v29  ;;  %405 = vmatpush3.msra.mxu0 %v25_v30  ;;  %v68_v49 = vld [vmem:[%s794_s1 + $0x198] sm:$0xff]  ;;  %v67_v53 = vld [vmem:[%s794_s1 + $0x190] sm:$0xff]  ;;  %v66_v57 = vld [vmem:[%s794_s1 + $0x188] sm:$0xff] }
  0x13   :  { %443 = vmatpush3.msra.mxu1 %v57_v31  ;;  %406 = vmatprep.subr.mxu0 %v40_v32  ;;  %v20_v50 = vld [vmem:[%s794_s1 + $0x18] sm:$0xff]  ;;  %v19_v54 = vld [vmem:[%s794_s1 + $0x10] sm:$0xff]  ;;  %v18_v58 = vld [vmem:[%s794_s1 + $0x8] sm:$0xff] }
  0x14   :  { %444 = vmatprep.subr.mxu1 %v72_v33  ;;  %407 = vmatpush3.msra.mxu0 %v24_v34  ;;  %v52_v51 = vld [vmem:[%s794_s1 + $0x118] sm:$0xff]  ;;  %v51_v55 = vld [vmem:[%s794_s1 + $0x110] sm:$0xff]  ;;  %v50_v59 = vld [vmem:[%s794_s1 + $0x108] sm:$0xff] }
  0x15   :  { %445 = vmatpush3.msra.mxu1 %v56_v35  ;;  %408 = vmatprep.subr.mxu0 %v39_v36  ;;  %v33_v60 = vld [vmem:[%s794_s1 + $0x80] sm:$0xff]  ;;  %v90_v63 = vld [vmem:[%s795_s0 + $0x8] sm:$0xff]  ;;  %v92_v1 = vld [vmem:[%s795_s0 + $0x18] sm:$0xff] }
  0x16   :  { %446 = vmatprep.subr.mxu1 %v71_v37  ;;  %409 = vmatpush3.msra.mxu0 %v23_v38  ;;  %v65_v61 = vld [vmem:[%s794_s1 + $0x180] sm:$0xff]  ;;  %v91_v3 = vld [vmem:[%s795_s0 + $0x10] sm:$0xff]  ;;  %v88_v4 = vld [vmem:[%s794_s1 + $0x238] sm:$0xff] }
  0x17   :  { %447 = vmatpush3.msra.mxu1 %v55_v39  ;;  %410 = vmatprep.subr.mxu0 %v38_v40  ;;  %v17_v62 = vld [vmem:[%s794_s1] sm:$0xff]  ;;  %v95_v5 = vld [vmem:[%s795_s0 + $0x30] sm:$0xff]  ;;  %v96_v8 = vld [vmem:[%s795_s0 + $0x38] sm:$0xff] }
  0x18   :  { %448 = vmatprep.subr.mxu1 %v70_v41  ;;  %411 = vmatpush3.msra.mxu0 %v22_v42  ;;  %v49_v0 = vld [vmem:[%s794_s1 + $0x100] sm:$0xff]  ;;  %v87_v7 = vld [vmem:[%s794_s1 + $0x230] sm:$0xff]  ;;  %v86_v9 = vld [vmem:[%s794_s1 + $0x228] sm:$0xff] }
  0x19   :  { %449 = vmatpush3.msra.mxu1 %v54_v43  ;;  %412 = vmatprep.subr.mxu0 %v37_v44  ;;  %v89_v2 = vld [vmem:[%s795_s0] sm:$0xff]  ;;  %v94_v10 = vld [vmem:[%s795_s0 + $0x28] sm:$0xff]  ;;  %v84_v13 = vld [vmem:[%s794_s1 + $0x218] sm:$0xff]  ;;  %v502_v44 = vmov 0  }
  0x1a   :  { %450 = vmatprep.subr.mxu1 %v69_v45  ;;  %413 = vmatpush3.msra.mxu0 %v21_v46  ;;  %v97_v6 = vld [vmem:[%s795_s0 + $0x40] sm:$0xff]  ;;  %v83_v14 = vld [vmem:[%s794_s1 + $0x210] sm:$0xff]  ;;  %v82_v15 = vld [vmem:[%s794_s1 + $0x208] sm:$0xff] }
  0x1b   :  { %451 = vmatpush3.msra.mxu1 %v53_v47  ;;  %414 = vmatprep.subr.mxu0 %v36_v48  ;;  %v93_v11 = vld [vmem:[%s795_s0 + $0x20] sm:$0xff]  ;;  %v98_v17 = vld [vmem:[%s795_s0 + $0x48] sm:$0xff] }
  0x1c   :  { %452 = vmatprep.subr.mxu1 %v68_v49  ;;  %415 = vmatpush3.msra.mxu0 %v20_v50  ;;  %v85_v12 = vld [vmem:[%s794_s1 + $0x220] sm:$0xff] }
  0x1d   :  { %453 = vmatpush3.msra.mxu1 %v52_v51  ;;  %416 = vmatprep.subr.mxu0 %v35_v52  ;;  %v81_v16 = vld [vmem:[%s794_s1 + $0x200] sm:$0xff] }
  0x1e   :  { %454 = vmatprep.subr.mxu1 %v67_v53  ;;  %417 = vmatpush3.msra.mxu0 %v19_v54  ;;  %v352_v51 = vld [vmem:[%s796_s2] sm:$0xff]  ;;  %v353_v54 = vld [vmem:[%s796_s2 + $0x8] sm:$0xff] }
  0x1f   :  { %455 = vmatpush3.msra.mxu1 %v51_v55  ;;  %418 = vmatprep.subr.mxu0 %v34_v56 }
  0x20   :  { %456 = vmatprep.subr.mxu1 %v66_v57  ;;  %419 = vmatpush3.msra.mxu0 %v18_v58  ;;  %v368_v57 = vld [vmem:[%s797_s3] sm:$0xff]  ;;  %v369_v58 = vld [vmem:[%s797_s3 + $0x8] sm:$0xff] }
  0x21   :  { %457 = vmatpush3.msra.mxu1 %v50_v59  ;;  %420 = vmatprep.subr.mxu0 %v33_v60 }
  0x22   :  { %458 = vmatprep.subr.mxu1 %v65_v61  ;;  %421 = vmatpush3.msra.mxu0 %v17_v62 }
  0x23   :  { %170 = vmatprep.mubr.f32.mxu0 %v90_v63  ;;  %459 = vmatpush3.msra.mxu1 %v49_v0 }
  0x24   :  { %245 = vmatprep.mubr.f32.mxu1 %v92_v1  ;;  %171 = vmatmul.mubr.f32.vlgmr.msra.gmra.mxu0 %v89_v2 }
  0x25   :  { %246 = vmatmul.mubr.f32.vlgmr.msra.gmra.mxu1 %v91_v3  ;;  %476 = vmatprep.subr.mxu0 %v88_v4 }
  0x26   :  { %175 = vmatprep.mubr.f32.mxu0 %v95_v5  ;;  %477 = vmatpush3.msra.mxu0 %v88_v4 }
  0x27   :  { %250 = vmatprep.mubr.f32.mxu1 %v97_v6  ;;  %478 = vmatprep.subr.mxu0 %v87_v7 }
  0x28   :  { %479 = vmatpush3.msra.mxu0 %v87_v7  ;;  %496 = vset.pattern.permute.xlu0 %v502_v44 }
  0x29   :  { %251 = vmatmul.mubr.f32.gmra.mxu1 %v96_v8  ;;  %480 = vmatprep.subr.mxu0 %v86_v9 }
  0x2a   :  { %176 = vmatmul.mubr.f32.gmra.mxu0 %v94_v10  ;;  %497 = vset.pattern.permute.xlu1 %v502_v44 }
  0x2b   :  { %481 = vmatpush3.msra.mxu0 %v86_v9  ;;  %492 = vmatprep.mubr.msk.f32.mxu0 %vm99_vm0, %v93_v11 }
  0x2c   :  { %482 = vmatprep.subr.mxu0 %v85_v12 }
  0x2d   :  { %483 = vmatpush3.msra.mxu0 %v85_v12 }
  0x2e   :  { %484 = vmatprep.subr.mxu0 %v84_v13 }
  0x2f   :  { %485 = vmatpush3.msra.mxu0 %v84_v13 }
  0x30   :  { %486 = vmatprep.subr.mxu0 %v83_v14 }
  0x31   :  { %487 = vmatpush3.msra.mxu0 %v83_v14 }
  0x32   :  { %488 = vmatprep.subr.mxu0 %v82_v15 }
  0x33   :  { %489 = vmatpush3.msra.mxu0 %v82_v15 }
  0x34   :  { %490 = vmatprep.subr.mxu0 %v81_v16 }
  0x35   :  { %491 = vmatpush3.msra.mxu0 %v81_v16 }
  0x36   :  { %493 = vmatmul.mubr.msk.f32.vlgmr.msra.gmra.mxu0 %vm99_vm0, %v98_v17 }
  0xe4   :  { %v422_v18 = vpop.f32.mrf.mxu0 }
  0xe5   :  { %v460_v19 = vpop.f32.mrf.mxu1 }
  0xe6   :  { %v423_v20 = vpop.f32.mrf.mxu0 }
  0xe7   :  { %v461_v21 = vpop.f32.mrf.mxu1  ;;  %v424_v26 = vadd.f32 %v423_v20, %v422_v18 }
  0xe8   :  { %v462_v27 = vadd.f32 %v461_v21, %v460_v19 }
  0xe9   :  { %v463_v23 = vpop.f32.mrf.mxu1 }
  0xea   :  { %v425_v22 = vpop.f32.mrf.mxu0  ;;  %v248_v31 = vadd.f32 %v462_v27, %v424_v26 }
  0xeb   :  { %v464_v25 = vpop.f32.mrf.mxu1 }
  0xec   :  { %v426_v24 = vpop.f32.mrf.mxu0  ;;  %v465_v29 = vadd.f32 %v464_v25, %v463_v23 }
  0xed   :  { %v427_v28 = vadd.f32 %v426_v24, %v425_v22 }
  0xef   :  { %v253_v33 = vadd.f32 %v465_v29, %v427_v28 }
  0xf6   :  { %v494_v30 = vpop.f32.mrf.mxu0 }
  0xf7   :  { %v328_v35 = vadd.f32 %v494_v30, %v253_v33 }
  0xf8   :  { %v322_v32 = vpop.f32.mrf.mxu0 }
  0xf9   :  { %v323_v34 = vadd.f32 %v322_v32, %v248_v31 }
  0xfb   :  { %331 = vadd.xlane.f32.xlu0 %v323_v34 }
  0xff   :  { %333 = vadd.xlane.f32.xlu0 %v328_v35 }
 0x184   :  { %v332_v36 = vpop.xlane.xlu0 %331 }
 0x185   :  { %v336_v37 = vmul.f32 0.0078125, %v332_v36 }
 0x187   :  { %v338_v38 = vsub.f32 %v323_v34, %v336_v37 }
 0x188   :  { %v334_v39 = vpop.xlane.xlu0 %333 }
 0x189   :  { %v337_v40 = vmul.f32 0.0078125, %v334_v39  ;;  %v340_v41 = vmul.f32 %v338_v38, %v338_v38 }
 0x18b   :  { %v339_v42 = vsub.f32 %v328_v35, %v337_v40  ;;  %342 = vadd.xlane.f32.xlu1 %v340_v41 }
 0x18d   :  { %v341_v43 = vmul.f32 %v339_v42, %v339_v42 }
 0x18f   :  { %344 = vadd.xlane.f32.xlu1 %v341_v43 }
 0x214   :  { %v343_v45 = vpop.xlane.xlu1 %342 }
 0x215   :  { %v346_v46 = vmul.f32 0.0078125, %v343_v45 }
 0x217   :  { %v348_v47 = vadd.f32 1e-05, %v346_v46 }
 0x218   :  { %v345_v48 = vpop.xlane.xlu1 %344 }
 0x219   :  { %498 = vrsqrt.f32 %v348_v47  ;;  %v347_v49 = vmul.f32 0.0078125, %v345_v48 }
 0x21b   :  { %v349_v50 = vadd.f32 1e-05, %v347_v49 }
 0x21d   :  { %500 = vrsqrt.f32 %v349_v50 }
 0x226   :  { %v499_v52 = vpop.eup %498 }
 0x227   :  { %v354_v53 = vmul.f32 %v499_v52, %v352_v51 }
 0x229   :  { %358 = vperm.xlu0 %496, %v354_v53  }
 0x22a   :  { %v501_v55 = vpop.eup %500 }
 0x22b   :  { %v355_v56 = vmul.f32 %v501_v55, %v353_v54 }
 0x22d   :  { %363 = vperm.xlu1 %497, %v355_v56  }
 0x231   :  { %372 = vperm.xlu1 %497, %v368_v57  }
 0x235   :  { %377 = vperm.xlu1 %497, %v369_v58  }
 0x2a4   :  { %v359_v59 = vpop.permute.xlu0 %358 }
 0x2a5   :  { %v366_v61 = vmul.f32 %v359_v59, %v338_v38 }
 0x2a8   :  { %v364_v60 = vpop.permute.xlu1 %363 }
 0x2a9   :  { %v367_v0 = vmul.f32 %v364_v60, %v339_v42 }
 0x2ac   :  { %v373_v62 = vpop.permute.xlu1 %372 }
 0x2ad   :  { %v380_v63 = vadd.f32 %v373_v62, %v366_v61 }
 0x2af   :  { %382 = vst [vmem:[%s798_s4] sm:$0xff] %v380_v63 }
 0x2b0   :  { %v378_v1 = vpop.permute.xlu1 %377 }
 0x2b1   :  { %v381_v2 = vadd.f32 %v378_v1, %v367_v0 }
 0x2b3   :  { %383 = vst [vmem:[%s798_s4 + $0x8] sm:$0xff] %v381_v2 }

// kernel: unet_forward.17
= control target key start
LH: loop header
LB: loop body
LE: loop exit
PB: predicated region body
PF: predicated region fallthrough
CT: control target
= control target key end

     0   :  { %v512_v3 = vmov 0.0   ;;  %vm164_vm0 = vcmask 261120   ;;  %s1006_s1 = inlined_call_operand.vmem [shape: f32[288,512], index: 1, kind: input, shape index: {}]   ;;  %s1007_s0 = inlined_call_operand.vmem [shape: f32[8,288], index: 0, kind: input, shape index: {}]   ;;  %s1008_s2 = inlined_call_operand.vmem [shape: f32[8,1], index: 2, kind: input, shape index: {}]   ;;  %s1009_s3 = inlined_call_operand.vmem [shape: f32[8,1], index: 3, kind: input, shape index: {}]   ;;  %s1010_s4 = inlined_call_operand.vmem [shape: f32[8,512], index: 4, kind: output, shape index: {}]  }
   0x1   :  { %v78_v0 = vld [vmem:[%s1006_s1 + $0x1e8] sm:$0xff]  ;;  %v77_v2 = vld [vmem:[%s1006_s1 + $0x1e0] sm:$0xff]  ;;  %303 = vmatprep.mubr.f32.mxu1 %v512_v3  ;;  %v594_v18 = vld [vmem:[%s1007_s0 + $0x10] sm:$0xff] }
   0x2   :  { %v158_v1 = vld [vmem:[%s1006_s1 + $0x468] sm:$0xff]  ;;  %168 = vmatprep.subr.mxu0 %v78_v0  ;;  %v157_v4 = vld [vmem:[%s1006_s1 + $0x460] sm:$0xff]  ;;  %v80_v19 = vld [vmem:[%s1006_s1 + $0x1f8] sm:$0xff] }
   0x3   :  { %263 = vmatprep.subr.mxu1 %v158_v1  ;;  %v74_v5 = vld [vmem:[%s1006_s1 + $0x1c8] sm:$0xff]  ;;  %169 = vmatpush1.msra.mxu0 %v77_v2  ;;  %v73_v7 = vld [vmem:[%s1006_s1 + $0x1c0] sm:$0xff]  ;;  %v79_v21 = vld [vmem:[%s1006_s1 + $0x1f0] sm:$0xff] }
   0x4   :  { %v154_v6 = vld [vmem:[%s1006_s1 + $0x448] sm:$0xff]  ;;  %264 = vmatpush1.msra.mxu1 %v157_v4  ;;  %v153_v8 = vld [vmem:[%s1006_s1 + $0x440] sm:$0xff]  ;;  %170 = vmatprep.subr.mxu0 %v74_v5  ;;  %v76_v23 = vld [vmem:[%s1006_s1 + $0x1d8] sm:$0xff] }
   0x5   :  { %v70_v9 = vld [vmem:[%s1006_s1 + $0x1a8] sm:$0xff]  ;;  %265 = vmatprep.subr.mxu1 %v154_v6  ;;  %v69_v11 = vld [vmem:[%s1006_s1 + $0x1a0] sm:$0xff]  ;;  %171 = vmatpush1.msra.mxu0 %v73_v7  ;;  %v75_v25 = vld [vmem:[%s1006_s1 + $0x1d0] sm:$0xff] }
   0x6   :  { %v150_v10 = vld [vmem:[%s1006_s1 + $0x428] sm:$0xff]  ;;  %v149_v12 = vld [vmem:[%s1006_s1 + $0x420] sm:$0xff]  ;;  %266 = vmatpush1.msra.mxu1 %v153_v8  ;;  %172 = vmatprep.subr.mxu0 %v70_v9  ;;  %v72_v27 = vld [vmem:[%s1006_s1 + $0x1b8] sm:$0xff] }
   0x7   :  { %v66_v13 = vld [vmem:[%s1006_s1 + $0x188] sm:$0xff]  ;;  %267 = vmatprep.subr.mxu1 %v150_v10  ;;  %v65_v15 = vld [vmem:[%s1006_s1 + $0x180] sm:$0xff]  ;;  %173 = vmatpush1.msra.mxu0 %v69_v11  ;;  %v71_v29 = vld [vmem:[%s1006_s1 + $0x1b0] sm:$0xff] }
   0x8   :  { %v146_v14 = vld [vmem:[%s1006_s1 + $0x408] sm:$0xff]  ;;  %v145_v16 = vld [vmem:[%s1006_s1 + $0x400] sm:$0xff]  ;;  %268 = vmatpush1.msra.mxu1 %v149_v12  ;;  %174 = vmatprep.subr.mxu0 %v66_v13  ;;  %v68_v31 = vld [vmem:[%s1006_s1 + $0x198] sm:$0xff] }
   0x9   :  { %v62_v17 = vld [vmem:[%s1006_s1 + $0x168] sm:$0xff]  ;;  %269 = vmatprep.subr.mxu1 %v146_v14  ;;  %v61_v20 = vld [vmem:[%s1006_s1 + $0x160] sm:$0xff]  ;;  %175 = vmatpush1.msra.mxu0 %v65_v15  ;;  %v67_v33 = vld [vmem:[%s1006_s1 + $0x190] sm:$0xff] }
   0xa   :  { %270 = vmatpush1.msra.mxu1 %v145_v16  ;;  %v58_v22 = vld [vmem:[%s1006_s1 + $0x148] sm:$0xff]  ;;  %176 = vmatprep.subr.mxu0 %v62_v17  ;;  %v57_v24 = vld [vmem:[%s1006_s1 + $0x140] sm:$0xff]  ;;  %v64_v35 = vld [vmem:[%s1006_s1 + $0x178] sm:$0xff] }
   0xb   :  { %504 = vmatmul.mubr.msk.f32.vlgmr.msra.gmra.mxu1 %vm164_vm0, %v594_v18  ;;  %310 = vmatprep.subr.mxu1 %v80_v19  ;;  %v54_v26 = vld [vmem:[%s1006_s1 + $0x128] sm:$0xff]  ;;  %v53_v28 = vld [vmem:[%s1006_s1 + $0x120] sm:$0xff]  ;;  %v63_v37 = vld [vmem:[%s1006_s1 + $0x170] sm:$0xff] }
   0xc   :  { %177 = vmatpush1.msra.mxu0 %v61_v20  ;;  %311 = vmatpush1.msra.mxu1 %v79_v21  ;;  %v50_v30 = vld [vmem:[%s1006_s1 + $0x108] sm:$0xff]  ;;  %v49_v32 = vld [vmem:[%s1006_s1 + $0x100] sm:$0xff]  ;;  %v60_v39 = vld [vmem:[%s1006_s1 + $0x158] sm:$0xff] }
   0xd   :  { %178 = vmatprep.subr.mxu0 %v58_v22  ;;  %312 = vmatprep.subr.mxu1 %v76_v23  ;;  %v46_v34 = vld [vmem:[%s1006_s1 + $0xe8] sm:$0xff]  ;;  %v45_v36 = vld [vmem:[%s1006_s1 + $0xe0] sm:$0xff]  ;;  %v59_v41 = vld [vmem:[%s1006_s1 + $0x150] sm:$0xff] }
   0xe   :  { %179 = vmatpush1.msra.mxu0 %v57_v24  ;;  %313 = vmatpush1.msra.mxu1 %v75_v25  ;;  %v42_v38 = vld [vmem:[%s1006_s1 + $0xc8] sm:$0xff]  ;;  %v41_v40 = vld [vmem:[%s1006_s1 + $0xc0] sm:$0xff]  ;;  %v56_v43 = vld [vmem:[%s1006_s1 + $0x138] sm:$0xff] }
   0xf   :  { %180 = vmatprep.subr.mxu0 %v54_v26  ;;  %314 = vmatprep.subr.mxu1 %v72_v27  ;;  %v38_v42 = vld [vmem:[%s1006_s1 + $0xa8] sm:$0xff]  ;;  %v37_v44 = vld [vmem:[%s1006_s1 + $0xa0] sm:$0xff]  ;;  %v55_v45 = vld [vmem:[%s1006_s1 + $0x130] sm:$0xff] }
  0x10   :  { %181 = vmatpush1.msra.mxu0 %v53_v28  ;;  %315 = vmatpush1.msra.mxu1 %v71_v29  ;;  %v34_v46 = vld [vmem:[%s1006_s1 + $0x88] sm:$0xff]  ;;  %v52_v47 = vld [vmem:[%s1006_s1 + $0x118] sm:$0xff]  ;;  %v33_v48 = vld [vmem:[%s1006_s1 + $0x80] sm:$0xff] }
  0x11   :  { %182 = vmatprep.subr.mxu0 %v50_v30  ;;  %316 = vmatprep.subr.mxu1 %v68_v31  ;;  %v51_v49 = vld [vmem:[%s1006_s1 + $0x110] sm:$0xff]  ;;  %v30_v50 = vld [vmem:[%s1006_s1 + $0x68] sm:$0xff]  ;;  %v48_v51 = vld [vmem:[%s1006_s1 + $0xf8] sm:$0xff] }
  0x12   :  { %183 = vmatpush1.msra.mxu0 %v49_v32  ;;  %317 = vmatpush1.msra.mxu1 %v67_v33  ;;  %v29_v52 = vld [vmem:[%s1006_s1 + $0x60] sm:$0xff]  ;;  %v47_v53 = vld [vmem:[%s1006_s1 + $0xf0] sm:$0xff]  ;;  %v26_v54 = vld [vmem:[%s1006_s1 + $0x48] sm:$0xff] }
  0x13   :  { %184 = vmatprep.subr.mxu0 %v46_v34  ;;  %318 = vmatprep.subr.mxu1 %v64_v35  ;;  %v44_v55 = vld [vmem:[%s1006_s1 + $0xd8] sm:$0xff]  ;;  %v25_v56 = vld [vmem:[%s1006_s1 + $0x40] sm:$0xff]  ;;  %v43_v57 = vld [vmem:[%s1006_s1 + $0xd0] sm:$0xff] }
  0x14   :  { %185 = vmatpush1.msra.mxu0 %v45_v36  ;;  %319 = vmatpush1.msra.mxu1 %v63_v37  ;;  %v22_v58 = vld [vmem:[%s1006_s1 + $0x28] sm:$0xff]  ;;  %v40_v59 = vld [vmem:[%s1006_s1 + $0xb8] sm:$0xff]  ;;  %v21_v60 = vld [vmem:[%s1006_s1 + $0x20] sm:$0xff] }
  0x15   :  { %186 = vmatprep.subr.mxu0 %v42_v38  ;;  %320 = vmatprep.subr.mxu1 %v60_v39  ;;  %v39_v61 = vld [vmem:[%s1006_s1 + $0xb0] sm:$0xff]  ;;  %v18_v62 = vld [vmem:[%s1006_s1 + $0x8] sm:$0xff]  ;;  %v36_v63 = vld [vmem:[%s1006_s1 + $0x98] sm:$0xff] }
  0x16   :  { %187 = vmatpush1.msra.mxu0 %v41_v40  ;;  %321 = vmatpush1.msra.mxu1 %v59_v41  ;;  %v17_v0 = vld [vmem:[%s1006_s1] sm:$0xff]  ;;  %v35_v1 = vld [vmem:[%s1006_s1 + $0x90] sm:$0xff]  ;;  %v142_v2 = vld [vmem:[%s1006_s1 + $0x3e8] sm:$0xff] }
  0x17   :  { %188 = vmatprep.subr.mxu0 %v38_v42  ;;  %322 = vmatprep.subr.mxu1 %v56_v43  ;;  %v32_v4 = vld [vmem:[%s1006_s1 + $0x78] sm:$0xff]  ;;  %v141_v5 = vld [vmem:[%s1006_s1 + $0x3e0] sm:$0xff]  ;;  %v31_v6 = vld [vmem:[%s1006_s1 + $0x70] sm:$0xff] }
  0x18   :  { %189 = vmatpush1.msra.mxu0 %v37_v44  ;;  %323 = vmatpush1.msra.mxu1 %v55_v45  ;;  %v138_v7 = vld [vmem:[%s1006_s1 + $0x3c8] sm:$0xff]  ;;  %v28_v8 = vld [vmem:[%s1006_s1 + $0x58] sm:$0xff]  ;;  %v137_v9 = vld [vmem:[%s1006_s1 + $0x3c0] sm:$0xff] }
  0x19   :  { %190 = vmatprep.subr.mxu0 %v34_v46  ;;  %324 = vmatprep.subr.mxu1 %v52_v47  ;;  %v27_v10 = vld [vmem:[%s1006_s1 + $0x50] sm:$0xff]  ;;  %v134_v11 = vld [vmem:[%s1006_s1 + $0x3a8] sm:$0xff]  ;;  %v24_v12 = vld [vmem:[%s1006_s1 + $0x38] sm:$0xff] }
  0x1a   :  { %191 = vmatpush1.msra.mxu0 %v33_v48  ;;  %325 = vmatpush1.msra.mxu1 %v51_v49  ;;  %v133_v13 = vld [vmem:[%s1006_s1 + $0x3a0] sm:$0xff]  ;;  %v23_v14 = vld [vmem:[%s1006_s1 + $0x30] sm:$0xff]  ;;  %v130_v15 = vld [vmem:[%s1006_s1 + $0x388] sm:$0xff] }
  0x1b   :  { %192 = vmatprep.subr.mxu0 %v30_v50  ;;  %326 = vmatprep.subr.mxu1 %v48_v51  ;;  %v20_v16 = vld [vmem:[%s1006_s1 + $0x18] sm:$0xff]  ;;  %v129_v17 = vld [vmem:[%s1006_s1 + $0x380] sm:$0xff]  ;;  %v19_v19 = vld [vmem:[%s1006_s1 + $0x10] sm:$0xff] }
  0x1c   :  { %193 = vmatpush1.msra.mxu0 %v29_v52  ;;  %327 = vmatpush1.msra.mxu1 %v47_v53  ;;  %v126_v20 = vld [vmem:[%s1006_s1 + $0x368] sm:$0xff]  ;;  %v144_v21 = vld [vmem:[%s1006_s1 + $0x3f8] sm:$0xff]  ;;  %v125_v22 = vld [vmem:[%s1006_s1 + $0x360] sm:$0xff] }
  0x1d   :  { %194 = vmatprep.subr.mxu0 %v26_v54  ;;  %328 = vmatprep.subr.mxu1 %v44_v55  ;;  %v143_v23 = vld [vmem:[%s1006_s1 + $0x3f0] sm:$0xff]  ;;  %v122_v24 = vld [vmem:[%s1006_s1 + $0x348] sm:$0xff]  ;;  %v140_v25 = vld [vmem:[%s1006_s1 + $0x3d8] sm:$0xff] }
  0x1e   :  { %195 = vmatpush1.msra.mxu0 %v25_v56  ;;  %329 = vmatpush1.msra.mxu1 %v43_v57  ;;  %v121_v26 = vld [vmem:[%s1006_s1 + $0x340] sm:$0xff]  ;;  %v139_v27 = vld [vmem:[%s1006_s1 + $0x3d0] sm:$0xff]  ;;  %v118_v28 = vld [vmem:[%s1006_s1 + $0x328] sm:$0xff] }
  0x1f   :  { %196 = vmatprep.subr.mxu0 %v22_v58  ;;  %330 = vmatprep.subr.mxu1 %v40_v59  ;;  %v136_v29 = vld [vmem:[%s1006_s1 + $0x3b8] sm:$0xff]  ;;  %v117_v30 = vld [vmem:[%s1006_s1 + $0x320] sm:$0xff]  ;;  %v135_v31 = vld [vmem:[%s1006_s1 + $0x3b0] sm:$0xff] }
  0x20   :  { %197 = vmatpush1.msra.mxu0 %v21_v60  ;;  %331 = vmatpush1.msra.mxu1 %v39_v61  ;;  %v114_v32 = vld [vmem:[%s1006_s1 + $0x308] sm:$0xff]  ;;  %v132_v33 = vld [vmem:[%s1006_s1 + $0x398] sm:$0xff]  ;;  %v113_v34 = vld [vmem:[%s1006_s1 + $0x300] sm:$0xff] }
  0x21   :  { %198 = vmatprep.subr.mxu0 %v18_v62  ;;  %332 = vmatprep.subr.mxu1 %v36_v63  ;;  %v131_v35 = vld [vmem:[%s1006_s1 + $0x390] sm:$0xff]  ;;  %v110_v36 = vld [vmem:[%s1006_s1 + $0x2e8] sm:$0xff]  ;;  %v128_v37 = vld [vmem:[%s1006_s1 + $0x378] sm:$0xff] }
  0x22   :  { %199 = vmatpush1.msra.mxu0 %v17_v0  ;;  %333 = vmatpush1.msra.mxu1 %v35_v1  ;;  %v109_v38 = vld [vmem:[%s1006_s1 + $0x2e0] sm:$0xff]  ;;  %v127_v39 = vld [vmem:[%s1006_s1 + $0x370] sm:$0xff]  ;;  %v106_v40 = vld [vmem:[%s1006_s1 + $0x2c8] sm:$0xff] }
  0x23   :  { %200 = vmatprep.subr.mxu0 %v142_v2  ;;  %334 = vmatprep.subr.mxu1 %v32_v4  ;;  %v124_v41 = vld [vmem:[%s1006_s1 + $0x358] sm:$0xff]  ;;  %v105_v42 = vld [vmem:[%s1006_s1 + $0x2c0] sm:$0xff]  ;;  %v123_v43 = vld [vmem:[%s1006_s1 + $0x350] sm:$0xff] }
  0x24   :  { %201 = vmatpush2.msra.mxu0 %v141_v5  ;;  %335 = vmatpush1.msra.mxu1 %v31_v6  ;;  %v102_v44 = vld [vmem:[%s1006_s1 + $0x2a8] sm:$0xff]  ;;  %v120_v45 = vld [vmem:[%s1006_s1 + $0x338] sm:$0xff]  ;;  %v101_v46 = vld [vmem:[%s1006_s1 + $0x2a0] sm:$0xff] }
  0x25   :  { %202 = vmatprep.subr.mxu0 %v138_v7  ;;  %336 = vmatprep.subr.mxu1 %v28_v8  ;;  %v119_v47 = vld [vmem:[%s1006_s1 + $0x330] sm:$0xff]  ;;  %v98_v48 = vld [vmem:[%s1006_s1 + $0x288] sm:$0xff]  ;;  %v116_v49 = vld [vmem:[%s1006_s1 + $0x318] sm:$0xff] }
  0x26   :  { %203 = vmatpush2.msra.mxu0 %v137_v9  ;;  %337 = vmatpush1.msra.mxu1 %v27_v10  ;;  %v97_v50 = vld [vmem:[%s1006_s1 + $0x280] sm:$0xff]  ;;  %v115_v51 = vld [vmem:[%s1006_s1 + $0x310] sm:$0xff]  ;;  %v94_v52 = vld [vmem:[%s1006_s1 + $0x268] sm:$0xff] }
  0x27   :  { %204 = vmatprep.subr.mxu0 %v134_v11  ;;  %338 = vmatprep.subr.mxu1 %v24_v12  ;;  %v112_v53 = vld [vmem:[%s1006_s1 + $0x2f8] sm:$0xff]  ;;  %v93_v54 = vld [vmem:[%s1006_s1 + $0x260] sm:$0xff]  ;;  %v111_v55 = vld [vmem:[%s1006_s1 + $0x2f0] sm:$0xff] }
  0x28   :  { %205 = vmatpush2.msra.mxu0 %v133_v13  ;;  %339 = vmatpush1.msra.mxu1 %v23_v14  ;;  %v90_v56 = vld [vmem:[%s1006_s1 + $0x248] sm:$0xff]  ;;  %v108_v57 = vld [vmem:[%s1006_s1 + $0x2d8] sm:$0xff]  ;;  %v89_v58 = vld [vmem:[%s1006_s1 + $0x240] sm:$0xff] }
  0x29   :  { %206 = vmatprep.subr.mxu0 %v130_v15  ;;  %340 = vmatprep.subr.mxu1 %v20_v16  ;;  %v107_v59 = vld [vmem:[%s1006_s1 + $0x2d0] sm:$0xff]  ;;  %v86_v60 = vld [vmem:[%s1006_s1 + $0x228] sm:$0xff]  ;;  %v104_v61 = vld [vmem:[%s1006_s1 + $0x2b8] sm:$0xff] }
  0x2a   :  { %207 = vmatpush2.msra.mxu0 %v129_v17  ;;  %341 = vmatpush1.msra.mxu1 %v19_v19  ;;  %v85_v62 = vld [vmem:[%s1006_s1 + $0x220] sm:$0xff]  ;;  %v103_v63 = vld [vmem:[%s1006_s1 + $0x2b0] sm:$0xff]  ;;  %v82_v0 = vld [vmem:[%s1006_s1 + $0x208] sm:$0xff] }
  0x2b   :  { %208 = vmatprep.subr.mxu0 %v126_v20  ;;  %342 = vmatprep.subr.mxu1 %v144_v21  ;;  %v100_v1 = vld [vmem:[%s1006_s1 + $0x298] sm:$0xff]  ;;  %v81_v2 = vld [vmem:[%s1006_s1 + $0x200] sm:$0xff]  ;;  %v162_v4 = vld [vmem:[%s1007_s0 + $0x8] sm:$0xff] }
  0x2c   :  { %209 = vmatpush2.msra.mxu0 %v125_v22  ;;  %343 = vmatpush2.msra.mxu1 %v143_v23  ;;  %v99_v5 = vld [vmem:[%s1006_s1 + $0x290] sm:$0xff]  ;;  %v161_v6 = vld [vmem:[%s1007_s0] sm:$0xff]  ;;  %v96_v7 = vld [vmem:[%s1006_s1 + $0x278] sm:$0xff] }
  0x2d   :  { %210 = vmatprep.subr.mxu0 %v122_v24  ;;  %344 = vmatprep.subr.mxu1 %v140_v25  ;;  %v160_v8 = vld [vmem:[%s1006_s1 + $0x478] sm:$0xff]  ;;  %v95_v9 = vld [vmem:[%s1006_s1 + $0x270] sm:$0xff] }
  0x2e   :  { %211 = vmatpush2.msra.mxu0 %v121_v26  ;;  %345 = vmatpush2.msra.mxu1 %v139_v27  ;;  %v159_v10 = vld [vmem:[%s1006_s1 + $0x470] sm:$0xff]  ;;  %v92_v11 = vld [vmem:[%s1006_s1 + $0x258] sm:$0xff] }
  0x2f   :  { %212 = vmatprep.subr.mxu0 %v118_v28  ;;  %346 = vmatprep.subr.mxu1 %v136_v29  ;;  %v156_v12 = vld [vmem:[%s1006_s1 + $0x458] sm:$0xff]  ;;  %v91_v13 = vld [vmem:[%s1006_s1 + $0x250] sm:$0xff] }
  0x30   :  { %213 = vmatpush2.msra.mxu0 %v117_v30  ;;  %347 = vmatpush2.msra.mxu1 %v135_v31  ;;  %v155_v14 = vld [vmem:[%s1006_s1 + $0x450] sm:$0xff]  ;;  %v88_v15 = vld [vmem:[%s1006_s1 + $0x238] sm:$0xff] }
  0x31   :  { %214 = vmatprep.subr.mxu0 %v114_v32  ;;  %348 = vmatprep.subr.mxu1 %v132_v33  ;;  %v152_v16 = vld [vmem:[%s1006_s1 + $0x438] sm:$0xff]  ;;  %v87_v17 = vld [vmem:[%s1006_s1 + $0x230] sm:$0xff] }
  0x32   :  { %215 = vmatpush2.msra.mxu0 %v113_v34  ;;  %349 = vmatpush2.msra.mxu1 %v131_v35  ;;  %v151_v19 = vld [vmem:[%s1006_s1 + $0x430] sm:$0xff]  ;;  %v84_v20 = vld [vmem:[%s1006_s1 + $0x218] sm:$0xff] }
  0x33   :  { %216 = vmatprep.subr.mxu0 %v110_v36  ;;  %350 = vmatprep.subr.mxu1 %v128_v37  ;;  %v148_v21 = vld [vmem:[%s1006_s1 + $0x418] sm:$0xff]  ;;  %v83_v22 = vld [vmem:[%s1006_s1 + $0x210] sm:$0xff] }
  0x34   :  { %217 = vmatpush2.msra.mxu0 %v109_v38  ;;  %351 = vmatpush2.msra.mxu1 %v127_v39  ;;  %v147_v23 = vld [vmem:[%s1006_s1 + $0x410] sm:$0xff] }
  0x35   :  { %218 = vmatprep.subr.mxu0 %v106_v40  ;;  %352 = vmatprep.subr.mxu1 %v124_v41 }
  0x36   :  { %219 = vmatpush2.msra.mxu0 %v105_v42  ;;  %353 = vmatpush2.msra.mxu1 %v123_v43 }
  0x37   :  { %220 = vmatprep.subr.mxu0 %v102_v44  ;;  %354 = vmatprep.subr.mxu1 %v120_v45 }
  0x38   :  { %221 = vmatpush2.msra.mxu0 %v101_v46  ;;  %355 = vmatpush2.msra.mxu1 %v119_v47 }
  0x39   :  { %222 = vmatprep.subr.mxu0 %v98_v48  ;;  %356 = vmatprep.subr.mxu1 %v116_v49 }
  0x3a   :  { %223 = vmatpush2.msra.mxu0 %v97_v50  ;;  %357 = vmatpush2.msra.mxu1 %v115_v51  ;;  %v513_v50 = vmov 0  }
  0x3b   :  { %224 = vmatprep.subr.mxu0 %v94_v52  ;;  %358 = vmatprep.subr.mxu1 %v112_v53 }
  0x3c   :  { %225 = vmatpush2.msra.mxu0 %v93_v54  ;;  %359 = vmatpush2.msra.mxu1 %v111_v55  ;;  %v475_v54 = vld [vmem:[%s1008_s2] sm:$0xff] }
  0x3d   :  { %226 = vmatprep.subr.mxu0 %v90_v56  ;;  %360 = vmatprep.subr.mxu1 %v108_v57  ;;  %v486_v57 = vld [vmem:[%s1009_s3] sm:$0xff] }
  0x3e   :  { %227 = vmatpush2.msra.mxu0 %v89_v58  ;;  %361 = vmatpush2.msra.mxu1 %v107_v59 }
  0x3f   :  { %228 = vmatprep.subr.mxu0 %v86_v60  ;;  %362 = vmatprep.subr.mxu1 %v104_v61 }
  0x40   :  { %229 = vmatpush2.msra.mxu0 %v85_v62  ;;  %363 = vmatpush2.msra.mxu1 %v103_v63 }
  0x41   :  { %230 = vmatprep.subr.mxu0 %v82_v0  ;;  %364 = vmatprep.subr.mxu1 %v100_v1 }
  0x42   :  { %231 = vmatpush2.msra.mxu0 %v81_v2  ;;  %232 = vmatprep.mubr.f32.mxu0 %v162_v4 }
  0x43   :  { %365 = vmatpush2.msra.mxu1 %v99_v5  ;;  %233 = vmatmul.mubr.f32.vlgmr.msra.gmra.mxu0 %v161_v6 }
  0x44   :  { %366 = vmatprep.subr.mxu1 %v96_v7  ;;  %405 = vmatprep.subr.mxu0 %v160_v8 }
  0x45   :  { %367 = vmatpush2.msra.mxu1 %v95_v9  ;;  %406 = vmatpush1.msra.mxu0 %v159_v10 }
  0x46   :  { %368 = vmatprep.subr.mxu1 %v92_v11  ;;  %407 = vmatprep.subr.mxu0 %v156_v12 }
  0x47   :  { %369 = vmatpush2.msra.mxu1 %v91_v13  ;;  %408 = vmatpush1.msra.mxu0 %v155_v14 }
  0x48   :  { %370 = vmatprep.subr.mxu1 %v88_v15  ;;  %409 = vmatprep.subr.mxu0 %v152_v16 }
  0x49   :  { %371 = vmatpush2.msra.mxu1 %v87_v17  ;;  %410 = vmatpush1.msra.mxu0 %v151_v19 }
  0x4a   :  { %372 = vmatprep.subr.mxu1 %v84_v20  ;;  %411 = vmatprep.subr.mxu0 %v148_v21 }
  0x4b   :  { %373 = vmatpush2.msra.mxu1 %v83_v22  ;;  %374 = vmatprep.mubr.f32.mxu1 %v162_v4 }
  0x4c   :  { %412 = vmatpush1.msra.mxu0 %v147_v23  ;;  %445 = vmatprep.mubr.f32.mxu0 %v512_v3 }
  0x4d   :  { %375 = vmatmul.mubr.f32.vlgmr.msra.gmra.mxu1 %v161_v6  ;;  %505 = vmatmul.mubr.msk.f32.vlgmr.msra.gmra.mxu0 %vm164_vm0, %v594_v18 }
  0x4e   :  { %508 = vset.pattern.permute.xlu1 %v513_v50  ;;  %509 = vset.pattern.permute.xlu0 %v513_v50 }
  0xcb   :  { %v305_v25 = vpop.f32.mrf.mxu1 }
  0xcd   :  { %v307_v27 = vpop.f32.mrf.mxu1 }
 0x103   :  { %v234_v24 = vpop.f32.mrf.mxu0 }
 0x104   :  { %v306_v29 = vadd.f32 %v305_v25, %v234_v24 }
 0x105   :  { %v236_v26 = vpop.f32.mrf.mxu0 }
 0x106   :  { %v308_v28 = vadd.f32 %v307_v27, %v236_v26 }
 0x108   :  { %v452_v32 = vadd.f32 %v308_v28, %v306_v29 }
 0x10d   :  { %v376_v30 = vpop.f32.mrf.mxu1  ;;  %v447_v31 = vpop.f32.mrf.mxu0 }
 0x10e   :  { %v448_v33 = vadd.f32 %v447_v31, %v376_v30 }
 0x10f   :  { %v378_v34 = vpop.f32.mrf.mxu1  ;;  %v449_v35 = vpop.f32.mrf.mxu0 }
 0x110   :  { %v450_v36 = vadd.f32 %v449_v35, %v378_v34  ;;  %v453_v37 = vadd.f32 %v452_v32, %v448_v33 }
 0x112   :  { %v454_v38 = vadd.f32 %v453_v37, %v450_v36 }
 0x114   :  { %455 = vadd.xlane.f32.xlu0 %v454_v38 }
 0x19d   :  { %v456_v3 = vpop.xlane.xlu0 %455 }
 0x19e   :  { %v458_v39 = vmul.f32 0.001953125, %v456_v3 }
 0x1a0   :  { %v459_v40 = vsub.f32 %v306_v29, %v458_v39  ;;  %v460_v18 = vsub.f32 %v308_v28, %v458_v39  ;;  %v461_v41 = vsub.f32 %v448_v33, %v458_v39  ;;  %v462_v42 = vsub.f32 %v450_v36, %v458_v39 }
 0x1a2   :  { %v463_v43 = vmul.f32 %v459_v40, %v459_v40  ;;  %v464_v44 = vmul.f32 %v460_v18, %v460_v18  ;;  %v465_v45 = vmul.f32 %v461_v41, %v461_v41  ;;  %v466_v47 = vmul.f32 %v462_v42, %v462_v42 }
 0x1a4   :  { %v467_v46 = vadd.f32 %v464_v44, %v463_v43 }
 0x1a6   :  { %v468_v48 = vadd.f32 %v467_v46, %v465_v45 }
 0x1a8   :  { %v469_v49 = vadd.f32 %v468_v48, %v466_v47 }
 0x1aa   :  { %470 = vadd.xlane.f32.xlu0 %v469_v49 }
 0x233   :  { %v471_v51 = vpop.xlane.xlu0 %470 }
 0x234   :  { %v472_v52 = vmul.f32 0.001953125, %v471_v51 }
 0x236   :  { %v473_v53 = vadd.f32 1e-05, %v472_v52 }
 0x238   :  { %510 = vrsqrt.f32 %v473_v53 }
 0x245   :  { %v511_v55 = vpop.eup %510 }
 0x246   :  { %v476_v56 = vmul.f32 %v511_v55, %v475_v54 }
 0x248   :  { %479 = vperm.xlu1 %508, %v476_v56  }
 0x24c   :  { %489 = vperm.xlu1 %508, %v486_v57  }
 0x2c3   :  { %v480_v58 = vpop.permute.xlu1 %479 }
 0x2c4   :  { %v482_v59 = vmul.f32 %v480_v58, %v459_v40  ;;  %v483_v60 = vmul.f32 %v480_v58, %v460_v18  ;;  %v484_v61 = vmul.f32 %v480_v58, %v461_v41  ;;  %v485_v62 = vmul.f32 %v480_v58, %v462_v42 }
 0x2c7   :  { %v490_v63 = vpop.permute.xlu1 %489 }
 0x2c8   :  { %v492_v0 = vadd.f32 %v490_v63, %v482_v59  ;;  %v493_v1 = vadd.f32 %v490_v63, %v483_v60  ;;  %v494_v2 = vadd.f32 %v490_v63, %v484_v61  ;;  %v495_v4 = vadd.f32 %v490_v63, %v485_v62 }
 0x2ca   :  { %496 = vst [vmem:[%s1010_s4] sm:$0xff] %v492_v0  ;;  %497 = vst [vmem:[%s1010_s4 + $0x8] sm:$0xff] %v493_v1 }
 0x2cb   :  { %498 = vst [vmem:[%s1010_s4 + $0x10] sm:$0xff] %v494_v2  ;;  %499 = vst [vmem:[%s1010_s4 + $0x18] sm:$0xff] %v495_v4 }

// kernel: unet_forward.18
= control target key start
LH: loop header
LB: loop body
LE: loop exit
PB: predicated region body
PF: predicated region fallthrough
CT: control target
= control target key end

     0   :  { %vm308_vm0 = vcmask 130048   ;;  %vm879_vm1 = vcmask 1043456   ;;  %s2121_s1 = inlined_call_operand.vmem [shape: f32[144,2048], index: 1, kind: input, shape index: {}]   ;;  %s2122_s0 = inlined_call_operand.vmem [shape: f32[4,144], index: 0, kind: input, shape index: {}]   ;;  %s2123_s2 = inlined_call_operand.vmem [shape: f32[4,1], index: 2, kind: input, shape index: {}]   ;;  %s2124_s3 = inlined_call_operand.vmem [shape: f32[4,1], index: 3, kind: input, shape index: {}]   ;;  %s2125_s4 = inlined_call_operand.vmem [shape: f32[4,2048], index: 4, kind: output, shape index: {}]  }
   0x1   :  { %v258_v0 = vld [vmem:[%s2121_s1 + $0x788] sm:$0xff]  ;;  %v257_v1 = vld [vmem:[%s2121_s1 + $0x780] sm:$0xff]  ;;  %v260_v3 = vld [vmem:[%s2121_s1 + $0x798] sm:$0xff] }
   0x2   :  { %v242_v2 = vld [vmem:[%s2121_s1 + $0x708] sm:$0xff]  ;;  %311 = vmatprep.subr.mxu0 %v258_v0  ;;  %v241_v4 = vld [vmem:[%s2121_s1 + $0x700] sm:$0xff]  ;;  %v259_v5 = vld [vmem:[%s2121_s1 + $0x790] sm:$0xff]  ;;  %382 = vmatprep.subr.mxu1 %v260_v3 }
   0x3   :  { %312 = vmatpush1.msra.mxu0 %v257_v1  ;;  %v226_v6 = vld [vmem:[%s2121_s1 + $0x688] sm:$0xff]  ;;  %v244_v7 = vld [vmem:[%s2121_s1 + $0x718] sm:$0xff]  ;;  %383 = vmatpush1.msra.mxu1 %v259_v5  ;;  %v225_v8 = vld [vmem:[%s2121_s1 + $0x680] sm:$0xff] }
   0x4   :  { %313 = vmatprep.subr.mxu0 %v242_v2  ;;  %v243_v9 = vld [vmem:[%s2121_s1 + $0x710] sm:$0xff]  ;;  %v228_v10 = vld [vmem:[%s2121_s1 + $0x698] sm:$0xff]  ;;  %384 = vmatprep.subr.mxu1 %v244_v7  ;;  %v210_v11 = vld [vmem:[%s2121_s1 + $0x608] sm:$0xff] }
   0x5   :  { %314 = vmatpush1.msra.mxu0 %v241_v4  ;;  %v227_v12 = vld [vmem:[%s2121_s1 + $0x690] sm:$0xff]  ;;  %385 = vmatpush1.msra.mxu1 %v243_v9  ;;  %v209_v13 = vld [vmem:[%s2121_s1 + $0x600] sm:$0xff]  ;;  %v212_v14 = vld [vmem:[%s2121_s1 + $0x618] sm:$0xff] }
   0x6   :  { %315 = vmatprep.subr.mxu0 %v226_v6  ;;  %386 = vmatprep.subr.mxu1 %v228_v10  ;;  %v194_v15 = vld [vmem:[%s2121_s1 + $0x588] sm:$0xff]  ;;  %v211_v16 = vld [vmem:[%s2121_s1 + $0x610] sm:$0xff]  ;;  %v193_v17 = vld [vmem:[%s2121_s1 + $0x580] sm:$0xff] }
   0x7   :  { %316 = vmatpush1.msra.mxu0 %v225_v8  ;;  %387 = vmatpush1.msra.mxu1 %v227_v12  ;;  %v196_v18 = vld [vmem:[%s2121_s1 + $0x598] sm:$0xff]  ;;  %v178_v19 = vld [vmem:[%s2121_s1 + $0x508] sm:$0xff]  ;;  %v195_v20 = vld [vmem:[%s2121_s1 + $0x590] sm:$0xff] }
   0x8   :  { %317 = vmatprep.subr.mxu0 %v210_v11  ;;  %388 = vmatprep.subr.mxu1 %v212_v14  ;;  %v177_v21 = vld [vmem:[%s2121_s1 + $0x500] sm:$0xff]  ;;  %v180_v22 = vld [vmem:[%s2121_s1 + $0x518] sm:$0xff]  ;;  %v162_v23 = vld [vmem:[%s2121_s1 + $0x488] sm:$0xff] }
   0x9   :  { %318 = vmatpush1.msra.mxu0 %v209_v13  ;;  %389 = vmatpush1.msra.mxu1 %v211_v16  ;;  %v179_v24 = vld [vmem:[%s2121_s1 + $0x510] sm:$0xff]  ;;  %v161_v25 = vld [vmem:[%s2121_s1 + $0x480] sm:$0xff]  ;;  %v164_v26 = vld [vmem:[%s2121_s1 + $0x498] sm:$0xff] }
   0xa   :  { %319 = vmatprep.subr.mxu0 %v194_v15  ;;  %390 = vmatprep.subr.mxu1 %v196_v18  ;;  %v146_v27 = vld [vmem:[%s2121_s1 + $0x408] sm:$0xff]  ;;  %v163_v28 = vld [vmem:[%s2121_s1 + $0x490] sm:$0xff]  ;;  %v145_v29 = vld [vmem:[%s2121_s1 + $0x400] sm:$0xff] }
   0xb   :  { %320 = vmatpush1.msra.mxu0 %v193_v17  ;;  %391 = vmatpush1.msra.mxu1 %v195_v20  ;;  %v148_v30 = vld [vmem:[%s2121_s1 + $0x418] sm:$0xff]  ;;  %v130_v31 = vld [vmem:[%s2121_s1 + $0x388] sm:$0xff]  ;;  %v147_v32 = vld [vmem:[%s2121_s1 + $0x410] sm:$0xff] }
   0xc   :  { %321 = vmatprep.subr.mxu0 %v178_v19  ;;  %392 = vmatprep.subr.mxu1 %v180_v22  ;;  %v129_v33 = vld [vmem:[%s2121_s1 + $0x380] sm:$0xff]  ;;  %v132_v34 = vld [vmem:[%s2121_s1 + $0x398] sm:$0xff]  ;;  %v114_v35 = vld [vmem:[%s2121_s1 + $0x308] sm:$0xff] }
   0xd   :  { %322 = vmatpush1.msra.mxu0 %v177_v21  ;;  %393 = vmatpush1.msra.mxu1 %v179_v24  ;;  %v131_v36 = vld [vmem:[%s2121_s1 + $0x390] sm:$0xff]  ;;  %v113_v37 = vld [vmem:[%s2121_s1 + $0x300] sm:$0xff]  ;;  %v116_v38 = vld [vmem:[%s2121_s1 + $0x318] sm:$0xff] }
   0xe   :  { %323 = vmatprep.subr.mxu0 %v162_v23  ;;  %394 = vmatprep.subr.mxu1 %v164_v26  ;;  %v98_v39 = vld [vmem:[%s2121_s1 + $0x288] sm:$0xff]  ;;  %v115_v40 = vld [vmem:[%s2121_s1 + $0x310] sm:$0xff]  ;;  %v97_v41 = vld [vmem:[%s2121_s1 + $0x280] sm:$0xff] }
   0xf   :  { %324 = vmatpush1.msra.mxu0 %v161_v25  ;;  %395 = vmatpush1.msra.mxu1 %v163_v28  ;;  %v100_v42 = vld [vmem:[%s2121_s1 + $0x298] sm:$0xff]  ;;  %v82_v43 = vld [vmem:[%s2121_s1 + $0x208] sm:$0xff]  ;;  %v99_v44 = vld [vmem:[%s2121_s1 + $0x290] sm:$0xff] }
  0x10   :  { %325 = vmatprep.subr.mxu0 %v146_v27  ;;  %396 = vmatprep.subr.mxu1 %v148_v30  ;;  %v81_v45 = vld [vmem:[%s2121_s1 + $0x200] sm:$0xff]  ;;  %v84_v46 = vld [vmem:[%s2121_s1 + $0x218] sm:$0xff]  ;;  %v66_v47 = vld [vmem:[%s2121_s1 + $0x188] sm:$0xff] }
  0x11   :  { %326 = vmatpush1.msra.mxu0 %v145_v29  ;;  %397 = vmatpush1.msra.mxu1 %v147_v32  ;;  %v83_v48 = vld [vmem:[%s2121_s1 + $0x210] sm:$0xff]  ;;  %v65_v49 = vld [vmem:[%s2121_s1 + $0x180] sm:$0xff]  ;;  %v68_v50 = vld [vmem:[%s2121_s1 + $0x198] sm:$0xff] }
  0x12   :  { %327 = vmatprep.subr.mxu0 %v130_v31  ;;  %398 = vmatprep.subr.mxu1 %v132_v34  ;;  %v50_v51 = vld [vmem:[%s2121_s1 + $0x108] sm:$0xff]  ;;  %v67_v52 = vld [vmem:[%s2121_s1 + $0x190] sm:$0xff]  ;;  %v49_v53 = vld [vmem:[%s2121_s1 + $0x100] sm:$0xff] }
  0x13   :  { %328 = vmatpush1.msra.mxu0 %v129_v33  ;;  %399 = vmatpush1.msra.mxu1 %v131_v36  ;;  %v52_v54 = vld [vmem:[%s2121_s1 + $0x118] sm:$0xff]  ;;  %v34_v55 = vld [vmem:[%s2121_s1 + $0x88] sm:$0xff]  ;;  %v51_v56 = vld [vmem:[%s2121_s1 + $0x110] sm:$0xff] }
  0x14   :  { %329 = vmatprep.subr.mxu0 %v114_v35  ;;  %400 = vmatprep.subr.mxu1 %v116_v38  ;;  %v33_v57 = vld [vmem:[%s2121_s1 + $0x80] sm:$0xff]  ;;  %v36_v58 = vld [vmem:[%s2121_s1 + $0x98] sm:$0xff]  ;;  %v18_v59 = vld [vmem:[%s2121_s1 + $0x8] sm:$0xff] }
  0x15   :  { %330 = vmatpush1.msra.mxu0 %v113_v37  ;;  %401 = vmatpush1.msra.mxu1 %v115_v40  ;;  %v35_v60 = vld [vmem:[%s2121_s1 + $0x90] sm:$0xff]  ;;  %v1298_v61 = vld [vmem:[%s2122_s0] sm:$0xff]  ;;  %v20_v63 = vld [vmem:[%s2121_s1 + $0x18] sm:$0xff] }
  0x16   :  { %331 = vmatprep.subr.mxu0 %v98_v39  ;;  %402 = vmatprep.subr.mxu1 %v100_v42  ;;  %v17_v62 = vld [vmem:[%s2121_s1] sm:$0xff]  ;;  %v290_v0 = vld [vmem:[%s2121_s1 + $0x888] sm:$0xff]  ;;  %v19_v1 = vld [vmem:[%s2121_s1 + $0x10] sm:$0xff]  ;;  %v1320_v4 = vcombine.high %v1298_v61, %v1298_v61 }
  0x17   :  { %332 = vmatpush1.msra.mxu0 %v97_v41  ;;  %403 = vmatpush1.msra.mxu1 %v99_v44  ;;  %v289_v2 = vld [vmem:[%s2121_s1 + $0x880] sm:$0xff]  ;;  %v292_v3 = vld [vmem:[%s2121_s1 + $0x898] sm:$0xff]  ;;  %v274_v5 = vld [vmem:[%s2121_s1 + $0x808] sm:$0xff] }
  0x18   :  { %333 = vmatprep.subr.mxu0 %v82_v43  ;;  %404 = vmatprep.subr.mxu1 %v84_v46  ;;  %v273_v6 = vld [vmem:[%s2121_s1 + $0x800] sm:$0xff]  ;;  %v291_v7 = vld [vmem:[%s2121_s1 + $0x890] sm:$0xff]  ;;  %v276_v8 = vld [vmem:[%s2121_s1 + $0x818] sm:$0xff] }
  0x19   :  { %334 = vmatpush1.msra.mxu0 %v81_v45  ;;  %405 = vmatpush1.msra.mxu1 %v83_v48  ;;  %v262_v9 = vld [vmem:[%s2121_s1 + $0x7a8] sm:$0xff]  ;;  %v275_v10 = vld [vmem:[%s2121_s1 + $0x810] sm:$0xff]  ;;  %v261_v11 = vld [vmem:[%s2121_s1 + $0x7a0] sm:$0xff] }
  0x1a   :  { %335 = vmatprep.subr.mxu0 %v66_v47  ;;  %406 = vmatprep.subr.mxu1 %v68_v50  ;;  %v246_v12 = vld [vmem:[%s2121_s1 + $0x728] sm:$0xff]  ;;  %v264_v13 = vld [vmem:[%s2121_s1 + $0x7b8] sm:$0xff]  ;;  %v245_v14 = vld [vmem:[%s2121_s1 + $0x720] sm:$0xff] }
  0x1b   :  { %336 = vmatpush1.msra.mxu0 %v65_v49  ;;  %407 = vmatpush1.msra.mxu1 %v67_v52  ;;  %v263_v15 = vld [vmem:[%s2121_s1 + $0x7b0] sm:$0xff]  ;;  %v230_v16 = vld [vmem:[%s2121_s1 + $0x6a8] sm:$0xff]  ;;  %v248_v17 = vld [vmem:[%s2121_s1 + $0x738] sm:$0xff] }
  0x1c   :  { %337 = vmatprep.subr.mxu0 %v50_v51  ;;  %408 = vmatprep.subr.mxu1 %v52_v54  ;;  %v229_v18 = vld [vmem:[%s2121_s1 + $0x6a0] sm:$0xff]  ;;  %v247_v19 = vld [vmem:[%s2121_s1 + $0x730] sm:$0xff]  ;;  %v214_v20 = vld [vmem:[%s2121_s1 + $0x628] sm:$0xff] }
  0x1d   :  { %338 = vmatpush1.msra.mxu0 %v49_v53  ;;  %409 = vmatpush1.msra.mxu1 %v51_v56  ;;  %v232_v21 = vld [vmem:[%s2121_s1 + $0x6b8] sm:$0xff]  ;;  %v213_v22 = vld [vmem:[%s2121_s1 + $0x620] sm:$0xff]  ;;  %v231_v23 = vld [vmem:[%s2121_s1 + $0x6b0] sm:$0xff] }
  0x1e   :  { %339 = vmatprep.subr.mxu0 %v34_v55  ;;  %410 = vmatprep.subr.mxu1 %v36_v58  ;;  %v198_v24 = vld [vmem:[%s2121_s1 + $0x5a8] sm:$0xff]  ;;  %v216_v25 = vld [vmem:[%s2121_s1 + $0x638] sm:$0xff]  ;;  %v197_v26 = vld [vmem:[%s2121_s1 + $0x5a0] sm:$0xff] }
  0x1f   :  { %340 = vmatpush1.msra.mxu0 %v33_v57  ;;  %411 = vmatpush1.msra.mxu1 %v35_v60  ;;  %v215_v27 = vld [vmem:[%s2121_s1 + $0x630] sm:$0xff]  ;;  %v182_v28 = vld [vmem:[%s2121_s1 + $0x528] sm:$0xff]  ;;  %v200_v29 = vld [vmem:[%s2121_s1 + $0x5b8] sm:$0xff] }
  0x20   :  { %341 = vmatprep.subr.mxu0 %v18_v59  ;;  %412 = vmatprep.subr.mxu1 %v20_v63  ;;  %v181_v30 = vld [vmem:[%s2121_s1 + $0x520] sm:$0xff]  ;;  %v199_v31 = vld [vmem:[%s2121_s1 + $0x5b0] sm:$0xff]  ;;  %v166_v32 = vld [vmem:[%s2121_s1 + $0x4a8] sm:$0xff] }
  0x21   :  { %342 = vmatpush1.msra.mxu0 %v17_v62  ;;  %413 = vmatpush1.msra.mxu1 %v19_v1  ;;  %v184_v33 = vld [vmem:[%s2121_s1 + $0x538] sm:$0xff]  ;;  %v165_v34 = vld [vmem:[%s2121_s1 + $0x4a0] sm:$0xff]  ;;  %v183_v35 = vld [vmem:[%s2121_s1 + $0x530] sm:$0xff] }
  0x22   :  { %371 = vmatprep.subr.mxu0 %v290_v0  ;;  %442 = vmatprep.subr.mxu1 %v292_v3  ;;  %v150_v36 = vld [vmem:[%s2121_s1 + $0x428] sm:$0xff]  ;;  %v168_v37 = vld [vmem:[%s2121_s1 + $0x4b8] sm:$0xff]  ;;  %v149_v38 = vld [vmem:[%s2121_s1 + $0x420] sm:$0xff] }
  0x23   :  { %372 = vmatpush2.msra.mxu0 %v289_v2  ;;  %1072 = vmatprep.mubr.msk.f32.mxu0 %vm308_vm0, %v1320_v4  ;;  %v167_v39 = vld [vmem:[%s2121_s1 + $0x4b0] sm:$0xff]  ;;  %v134_v40 = vld [vmem:[%s2121_s1 + $0x3a8] sm:$0xff]  ;;  %v152_v41 = vld [vmem:[%s2121_s1 + $0x438] sm:$0xff] }
  0x24   :  { %373 = vmatprep.subr.mxu0 %v274_v5  ;;  %443 = vmatpush2.msra.mxu1 %v291_v7  ;;  %v133_v42 = vld [vmem:[%s2121_s1 + $0x3a0] sm:$0xff]  ;;  %v151_v43 = vld [vmem:[%s2121_s1 + $0x430] sm:$0xff]  ;;  %v118_v44 = vld [vmem:[%s2121_s1 + $0x328] sm:$0xff] }
  0x25   :  { %374 = vmatpush2.msra.mxu0 %v273_v6  ;;  %444 = vmatprep.subr.mxu1 %v276_v8  ;;  %v136_v45 = vld [vmem:[%s2121_s1 + $0x3b8] sm:$0xff]  ;;  %v117_v46 = vld [vmem:[%s2121_s1 + $0x320] sm:$0xff]  ;;  %v135_v47 = vld [vmem:[%s2121_s1 + $0x3b0] sm:$0xff] }
  0x26   :  { %376 = vmatmul.mubr.f32.vlgmr.msra.gmra.mxu0 %v1298_v61  ;;  %453 = vmatprep.subr.mxu0 %v262_v9  ;;  %v102_v48 = vld [vmem:[%s2121_s1 + $0x2a8] sm:$0xff]  ;;  %v120_v49 = vld [vmem:[%s2121_s1 + $0x338] sm:$0xff]  ;;  %v101_v50 = vld [vmem:[%s2121_s1 + $0x2a0] sm:$0xff] }
  0x27   :  { %445 = vmatpush2.msra.mxu1 %v275_v10  ;;  %454 = vmatpush1.msra.mxu0 %v261_v11  ;;  %v119_v51 = vld [vmem:[%s2121_s1 + $0x330] sm:$0xff]  ;;  %v86_v52 = vld [vmem:[%s2121_s1 + $0x228] sm:$0xff]  ;;  %v104_v53 = vld [vmem:[%s2121_s1 + $0x2b8] sm:$0xff] }
  0x28   :  { %1073 = vmatprep.mubr.msk.f32.mxu1 %vm308_vm0, %v1320_v4  ;;  %455 = vmatprep.subr.mxu0 %v246_v12  ;;  %v85_v54 = vld [vmem:[%s2121_s1 + $0x220] sm:$0xff]  ;;  %v103_v55 = vld [vmem:[%s2121_s1 + $0x2b0] sm:$0xff]  ;;  %v70_v56 = vld [vmem:[%s2121_s1 + $0x1a8] sm:$0xff] }
  0x29   :  { %524 = vmatprep.subr.mxu1 %v264_v13  ;;  %447 = vmatmul.mubr.f32.vlgmr.msra.gmra.mxu1 %v1298_v61  ;;  %v88_v57 = vld [vmem:[%s2121_s1 + $0x238] sm:$0xff]  ;;  %v69_v58 = vld [vmem:[%s2121_s1 + $0x1a0] sm:$0xff]  ;;  %v87_v59 = vld [vmem:[%s2121_s1 + $0x230] sm:$0xff] }
  0x2a   :  { %456 = vmatpush1.msra.mxu0 %v245_v14  ;;  %525 = vmatpush1.msra.mxu1 %v263_v15  ;;  %v54_v60 = vld [vmem:[%s2121_s1 + $0x128] sm:$0xff]  ;;  %v72_v62 = vld [vmem:[%s2121_s1 + $0x1b8] sm:$0xff]  ;;  %v53_v63 = vld [vmem:[%s2121_s1 + $0x120] sm:$0xff] }
  0x2b   :  { %457 = vmatprep.subr.mxu0 %v230_v16  ;;  %526 = vmatprep.subr.mxu1 %v248_v17  ;;  %v71_v0 = vld [vmem:[%s2121_s1 + $0x1b0] sm:$0xff]  ;;  %v38_v1 = vld [vmem:[%s2121_s1 + $0xa8] sm:$0xff]  ;;  %v56_v2 = vld [vmem:[%s2121_s1 + $0x138] sm:$0xff] }
  0x2c   :  { %458 = vmatpush1.msra.mxu0 %v229_v18  ;;  %527 = vmatpush1.msra.mxu1 %v247_v19  ;;  %v37_v3 = vld [vmem:[%s2121_s1 + $0xa0] sm:$0xff]  ;;  %v55_v5 = vld [vmem:[%s2121_s1 + $0x130] sm:$0xff]  ;;  %v22_v6 = vld [vmem:[%s2121_s1 + $0x28] sm:$0xff] }
  0x2d   :  { %459 = vmatprep.subr.mxu0 %v214_v20  ;;  %528 = vmatprep.subr.mxu1 %v232_v21  ;;  %v40_v7 = vld [vmem:[%s2121_s1 + $0xb8] sm:$0xff]  ;;  %v21_v8 = vld [vmem:[%s2121_s1 + $0x20] sm:$0xff]  ;;  %v39_v9 = vld [vmem:[%s2121_s1 + $0xb0] sm:$0xff] }
  0x2e   :  { %460 = vmatpush1.msra.mxu0 %v213_v22  ;;  %529 = vmatpush1.msra.mxu1 %v231_v23  ;;  %v294_v10 = vld [vmem:[%s2121_s1 + $0x8a8] sm:$0xff]  ;;  %v24_v11 = vld [vmem:[%s2121_s1 + $0x38] sm:$0xff]  ;;  %v293_v12 = vld [vmem:[%s2121_s1 + $0x8a0] sm:$0xff] }
  0x2f   :  { %461 = vmatprep.subr.mxu0 %v198_v24  ;;  %530 = vmatprep.subr.mxu1 %v216_v25  ;;  %v23_v13 = vld [vmem:[%s2121_s1 + $0x30] sm:$0xff]  ;;  %v278_v14 = vld [vmem:[%s2121_s1 + $0x828] sm:$0xff]  ;;  %v296_v15 = vld [vmem:[%s2121_s1 + $0x8b8] sm:$0xff] }
  0x30   :  { %462 = vmatpush1.msra.mxu0 %v197_v26  ;;  %531 = vmatpush1.msra.mxu1 %v215_v27  ;;  %v277_v16 = vld [vmem:[%s2121_s1 + $0x820] sm:$0xff]  ;;  %v295_v17 = vld [vmem:[%s2121_s1 + $0x8b0] sm:$0xff]  ;;  %v280_v18 = vld [vmem:[%s2121_s1 + $0x838] sm:$0xff] }
  0x31   :  { %463 = vmatprep.subr.mxu0 %v182_v28  ;;  %532 = vmatprep.subr.mxu1 %v200_v29  ;;  %v266_v19 = vld [vmem:[%s2121_s1 + $0x7c8] sm:$0xff]  ;;  %v279_v20 = vld [vmem:[%s2121_s1 + $0x830] sm:$0xff]  ;;  %v265_v21 = vld [vmem:[%s2121_s1 + $0x7c0] sm:$0xff] }
  0x32   :  { %464 = vmatpush1.msra.mxu0 %v181_v30  ;;  %533 = vmatpush1.msra.mxu1 %v199_v31  ;;  %v250_v22 = vld [vmem:[%s2121_s1 + $0x748] sm:$0xff]  ;;  %v268_v23 = vld [vmem:[%s2121_s1 + $0x7d8] sm:$0xff]  ;;  %v249_v24 = vld [vmem:[%s2121_s1 + $0x740] sm:$0xff] }
  0x33   :  { %465 = vmatprep.subr.mxu0 %v166_v32  ;;  %534 = vmatprep.subr.mxu1 %v184_v33  ;;  %v267_v25 = vld [vmem:[%s2121_s1 + $0x7d0] sm:$0xff]  ;;  %v234_v26 = vld [vmem:[%s2121_s1 + $0x6c8] sm:$0xff]  ;;  %v252_v27 = vld [vmem:[%s2121_s1 + $0x758] sm:$0xff] }
  0x34   :  { %466 = vmatpush1.msra.mxu0 %v165_v34  ;;  %535 = vmatpush1.msra.mxu1 %v183_v35  ;;  %v233_v28 = vld [vmem:[%s2121_s1 + $0x6c0] sm:$0xff]  ;;  %v251_v29 = vld [vmem:[%s2121_s1 + $0x750] sm:$0xff]  ;;  %v218_v30 = vld [vmem:[%s2121_s1 + $0x648] sm:$0xff] }
  0x35   :  { %467 = vmatprep.subr.mxu0 %v150_v36  ;;  %536 = vmatprep.subr.mxu1 %v168_v37  ;;  %v236_v31 = vld [vmem:[%s2121_s1 + $0x6d8] sm:$0xff]  ;;  %v217_v32 = vld [vmem:[%s2121_s1 + $0x640] sm:$0xff]  ;;  %v235_v33 = vld [vmem:[%s2121_s1 + $0x6d0] sm:$0xff] }
  0x36   :  { %468 = vmatpush1.msra.mxu0 %v149_v38  ;;  %537 = vmatpush1.msra.mxu1 %v167_v39  ;;  %v202_v34 = vld [vmem:[%s2121_s1 + $0x5c8] sm:$0xff]  ;;  %v220_v35 = vld [vmem:[%s2121_s1 + $0x658] sm:$0xff]  ;;  %v201_v36 = vld [vmem:[%s2121_s1 + $0x5c0] sm:$0xff] }
  0x37   :  { %469 = vmatprep.subr.mxu0 %v134_v40  ;;  %538 = vmatprep.subr.mxu1 %v152_v41  ;;  %v219_v37 = vld [vmem:[%s2121_s1 + $0x650] sm:$0xff]  ;;  %v186_v38 = vld [vmem:[%s2121_s1 + $0x548] sm:$0xff]  ;;  %v204_v39 = vld [vmem:[%s2121_s1 + $0x5d8] sm:$0xff] }
  0x38   :  { %470 = vmatpush1.msra.mxu0 %v133_v42  ;;  %539 = vmatpush1.msra.mxu1 %v151_v43  ;;  %v185_v40 = vld [vmem:[%s2121_s1 + $0x540] sm:$0xff]  ;;  %v203_v41 = vld [vmem:[%s2121_s1 + $0x5d0] sm:$0xff]  ;;  %v170_v42 = vld [vmem:[%s2121_s1 + $0x4c8] sm:$0xff] }
  0x39   :  { %471 = vmatprep.subr.mxu0 %v118_v44  ;;  %540 = vmatprep.subr.mxu1 %v136_v45  ;;  %v188_v43 = vld [vmem:[%s2121_s1 + $0x558] sm:$0xff]  ;;  %v169_v44 = vld [vmem:[%s2121_s1 + $0x4c0] sm:$0xff]  ;;  %v187_v45 = vld [vmem:[%s2121_s1 + $0x550] sm:$0xff] }
  0x3a   :  { %472 = vmatpush1.msra.mxu0 %v117_v46  ;;  %541 = vmatpush1.msra.mxu1 %v135_v47  ;;  %v154_v46 = vld [vmem:[%s2121_s1 + $0x448] sm:$0xff]  ;;  %v172_v47 = vld [vmem:[%s2121_s1 + $0x4d8] sm:$0xff] }
  0x3b   :  { %473 = vmatprep.subr.mxu0 %v102_v48  ;;  %542 = vmatprep.subr.mxu1 %v120_v49  ;;  %v153_v48 = vld [vmem:[%s2121_s1 + $0x440] sm:$0xff]  ;;  %v171_v49 = vld [vmem:[%s2121_s1 + $0x4d0] sm:$0xff] }
  0x3c   :  { %474 = vmatpush1.msra.mxu0 %v101_v50  ;;  %543 = vmatpush1.msra.mxu1 %v119_v51  ;;  %v138_v50 = vld [vmem:[%s2121_s1 + $0x3c8] sm:$0xff]  ;;  %v156_v51 = vld [vmem:[%s2121_s1 + $0x458] sm:$0xff] }
  0x3d   :  { %475 = vmatprep.subr.mxu0 %v86_v52  ;;  %544 = vmatprep.subr.mxu1 %v104_v53  ;;  %v137_v52 = vld [vmem:[%s2121_s1 + $0x3c0] sm:$0xff]  ;;  %v155_v53 = vld [vmem:[%s2121_s1 + $0x450] sm:$0xff] }
  0x3e   :  { %476 = vmatpush1.msra.mxu0 %v85_v54  ;;  %545 = vmatpush1.msra.mxu1 %v103_v55  ;;  %v122_v54 = vld [vmem:[%s2121_s1 + $0x348] sm:$0xff]  ;;  %v140_v55 = vld [vmem:[%s2121_s1 + $0x3d8] sm:$0xff] }
  0x3f   :  { %477 = vmatprep.subr.mxu0 %v70_v56  ;;  %546 = vmatprep.subr.mxu1 %v88_v57  ;;  %v121_v56 = vld [vmem:[%s2121_s1 + $0x340] sm:$0xff]  ;;  %v139_v57 = vld [vmem:[%s2121_s1 + $0x3d0] sm:$0xff] }
  0x40   :  { %478 = vmatpush1.msra.mxu0 %v69_v58  ;;  %547 = vmatpush1.msra.mxu1 %v87_v59  ;;  %v106_v58 = vld [vmem:[%s2121_s1 + $0x2c8] sm:$0xff]  ;;  %v124_v59 = vld [vmem:[%s2121_s1 + $0x358] sm:$0xff] }
  0x41   :  { %479 = vmatprep.subr.mxu0 %v54_v60  ;;  %548 = vmatprep.subr.mxu1 %v72_v62  ;;  %v105_v60 = vld [vmem:[%s2121_s1 + $0x2c0] sm:$0xff]  ;;  %v123_v62 = vld [vmem:[%s2121_s1 + $0x350] sm:$0xff] }
  0x42   :  { %480 = vmatpush1.msra.mxu0 %v53_v63  ;;  %549 = vmatpush1.msra.mxu1 %v71_v0  ;;  %v90_v63 = vld [vmem:[%s2121_s1 + $0x248] sm:$0xff]  ;;  %v108_v0 = vld [vmem:[%s2121_s1 + $0x2d8] sm:$0xff] }
  0x43   :  { %481 = vmatprep.subr.mxu0 %v38_v1  ;;  %550 = vmatprep.subr.mxu1 %v56_v2  ;;  %v89_v1 = vld [vmem:[%s2121_s1 + $0x240] sm:$0xff]  ;;  %v107_v2 = vld [vmem:[%s2121_s1 + $0x2d0] sm:$0xff] }
  0x44   :  { %482 = vmatpush1.msra.mxu0 %v37_v3  ;;  %551 = vmatpush1.msra.mxu1 %v55_v5  ;;  %v74_v3 = vld [vmem:[%s2121_s1 + $0x1c8] sm:$0xff]  ;;  %v92_v5 = vld [vmem:[%s2121_s1 + $0x258] sm:$0xff] }
  0x45   :  { %483 = vmatprep.subr.mxu0 %v22_v6  ;;  %552 = vmatprep.subr.mxu1 %v40_v7  ;;  %v73_v6 = vld [vmem:[%s2121_s1 + $0x1c0] sm:$0xff]  ;;  %v91_v7 = vld [vmem:[%s2121_s1 + $0x250] sm:$0xff] }
  0x46   :  { %484 = vmatpush1.msra.mxu0 %v21_v8  ;;  %553 = vmatpush1.msra.mxu1 %v39_v9  ;;  %v58_v8 = vld [vmem:[%s2121_s1 + $0x148] sm:$0xff]  ;;  %v76_v9 = vld [vmem:[%s2121_s1 + $0x1d8] sm:$0xff] }
  0x47   :  { %513 = vmatprep.subr.mxu0 %v294_v10  ;;  %554 = vmatprep.subr.mxu1 %v24_v11  ;;  %v57_v10 = vld [vmem:[%s2121_s1 + $0x140] sm:$0xff]  ;;  %v75_v11 = vld [vmem:[%s2121_s1 + $0x1d0] sm:$0xff] }
  0x48   :  { %514 = vmatpush2.msra.mxu0 %v293_v12  ;;  %555 = vmatpush1.msra.mxu1 %v23_v13  ;;  %v42_v12 = vld [vmem:[%s2121_s1 + $0xc8] sm:$0xff]  ;;  %v60_v13 = vld [vmem:[%s2121_s1 + $0x158] sm:$0xff] }
  0x49   :  { %515 = vmatprep.subr.mxu0 %v278_v14  ;;  %584 = vmatprep.subr.mxu1 %v296_v15  ;;  %v41_v14 = vld [vmem:[%s2121_s1 + $0xc0] sm:$0xff]  ;;  %v59_v15 = vld [vmem:[%s2121_s1 + $0x150] sm:$0xff] }
  0x4a   :  { %516 = vmatpush2.msra.mxu0 %v277_v16  ;;  %1074 = vmatprep.mubr.msk.f32.mxu0 %vm308_vm0, %v1320_v4  ;;  %v26_v16 = vld [vmem:[%s2121_s1 + $0x48] sm:$0xff] }
  0x4b   :  { %585 = vmatpush2.msra.mxu1 %v295_v17  ;;  %518 = vmatmul.mubr.f32.vlgmr.msra.gmra.mxu0 %v1298_v61  ;;  %v44_v17 = vld [vmem:[%s2121_s1 + $0xd8] sm:$0xff] }
  0x4c   :  { %586 = vmatprep.subr.mxu1 %v280_v18  ;;  %595 = vmatprep.subr.mxu0 %v266_v19  ;;  %v25_v18 = vld [vmem:[%s2121_s1 + $0x40] sm:$0xff]  ;;  %v43_v19 = vld [vmem:[%s2121_s1 + $0xd0] sm:$0xff] }
  0x4d   :  { %587 = vmatpush2.msra.mxu1 %v279_v20  ;;  %596 = vmatpush1.msra.mxu0 %v265_v21  ;;  %v298_v20 = vld [vmem:[%s2121_s1 + $0x8c8] sm:$0xff]  ;;  %v28_v21 = vld [vmem:[%s2121_s1 + $0x58] sm:$0xff] }
  0x4e   :  { %1075 = vmatprep.mubr.msk.f32.mxu1 %vm308_vm0, %v1320_v4  ;;  %597 = vmatprep.subr.mxu0 %v250_v22  ;;  %v297_v22 = vld [vmem:[%s2121_s1 + $0x8c0] sm:$0xff] }
  0x4f   :  { %666 = vmatprep.subr.mxu1 %v268_v23  ;;  %589 = vmatmul.mubr.f32.vlgmr.msra.gmra.mxu1 %v1298_v61  ;;  %v27_v23 = vld [vmem:[%s2121_s1 + $0x50] sm:$0xff] }
  0x50   :  { %598 = vmatpush1.msra.mxu0 %v249_v24  ;;  %667 = vmatpush1.msra.mxu1 %v267_v25  ;;  %v282_v24 = vld [vmem:[%s2121_s1 + $0x848] sm:$0xff]  ;;  %v300_v25 = vld [vmem:[%s2121_s1 + $0x8d8] sm:$0xff] }
  0x51   :  { %599 = vmatprep.subr.mxu0 %v234_v26  ;;  %668 = vmatprep.subr.mxu1 %v252_v27  ;;  %v281_v26 = vld [vmem:[%s2121_s1 + $0x840] sm:$0xff]  ;;  %v299_v27 = vld [vmem:[%s2121_s1 + $0x8d0] sm:$0xff] }
  0x52   :  { %600 = vmatpush1.msra.mxu0 %v233_v28  ;;  %669 = vmatpush1.msra.mxu1 %v251_v29  ;;  %v284_v28 = vld [vmem:[%s2121_s1 + $0x858] sm:$0xff]  ;;  %v270_v29 = vld [vmem:[%s2121_s1 + $0x7e8] sm:$0xff] }
  0x53   :  { %601 = vmatprep.subr.mxu0 %v218_v30  ;;  %670 = vmatprep.subr.mxu1 %v236_v31  ;;  %v283_v30 = vld [vmem:[%s2121_s1 + $0x850] sm:$0xff]  ;;  %v269_v31 = vld [vmem:[%s2121_s1 + $0x7e0] sm:$0xff] }
  0x54   :  { %602 = vmatpush1.msra.mxu0 %v217_v32  ;;  %671 = vmatpush1.msra.mxu1 %v235_v33  ;;  %v254_v32 = vld [vmem:[%s2121_s1 + $0x768] sm:$0xff]  ;;  %v272_v33 = vld [vmem:[%s2121_s1 + $0x7f8] sm:$0xff] }
  0x55   :  { %603 = vmatprep.subr.mxu0 %v202_v34  ;;  %672 = vmatprep.subr.mxu1 %v220_v35  ;;  %v253_v34 = vld [vmem:[%s2121_s1 + $0x760] sm:$0xff]  ;;  %v271_v35 = vld [vmem:[%s2121_s1 + $0x7f0] sm:$0xff] }
  0x56   :  { %604 = vmatpush1.msra.mxu0 %v201_v36  ;;  %673 = vmatpush1.msra.mxu1 %v219_v37  ;;  %v238_v36 = vld [vmem:[%s2121_s1 + $0x6e8] sm:$0xff]  ;;  %v256_v37 = vld [vmem:[%s2121_s1 + $0x778] sm:$0xff] }
  0x57   :  { %605 = vmatprep.subr.mxu0 %v186_v38  ;;  %674 = vmatprep.subr.mxu1 %v204_v39  ;;  %v237_v38 = vld [vmem:[%s2121_s1 + $0x6e0] sm:$0xff]  ;;  %v255_v39 = vld [vmem:[%s2121_s1 + $0x770] sm:$0xff] }
  0x58   :  { %606 = vmatpush1.msra.mxu0 %v185_v40  ;;  %675 = vmatpush1.msra.mxu1 %v203_v41  ;;  %v222_v40 = vld [vmem:[%s2121_s1 + $0x668] sm:$0xff]  ;;  %v240_v41 = vld [vmem:[%s2121_s1 + $0x6f8] sm:$0xff] }
  0x59   :  { %607 = vmatprep.subr.mxu0 %v170_v42  ;;  %676 = vmatprep.subr.mxu1 %v188_v43  ;;  %v221_v42 = vld [vmem:[%s2121_s1 + $0x660] sm:$0xff]  ;;  %v239_v43 = vld [vmem:[%s2121_s1 + $0x6f0] sm:$0xff] }
  0x5a   :  { %608 = vmatpush1.msra.mxu0 %v169_v44  ;;  %677 = vmatpush1.msra.mxu1 %v187_v45  ;;  %v206_v44 = vld [vmem:[%s2121_s1 + $0x5e8] sm:$0xff]  ;;  %v224_v45 = vld [vmem:[%s2121_s1 + $0x678] sm:$0xff] }
  0x5b   :  { %609 = vmatprep.subr.mxu0 %v154_v46  ;;  %678 = vmatprep.subr.mxu1 %v172_v47  ;;  %v205_v46 = vld [vmem:[%s2121_s1 + $0x5e0] sm:$0xff]  ;;  %v223_v47 = vld [vmem:[%s2121_s1 + $0x670] sm:$0xff] }
  0x5c   :  { %610 = vmatpush1.msra.mxu0 %v153_v48  ;;  %679 = vmatpush1.msra.mxu1 %v171_v49  ;;  %v190_v48 = vld [vmem:[%s2121_s1 + $0x568] sm:$0xff]  ;;  %v208_v49 = vld [vmem:[%s2121_s1 + $0x5f8] sm:$0xff] }
  0x5d   :  { %611 = vmatprep.subr.mxu0 %v138_v50  ;;  %680 = vmatprep.subr.mxu1 %v156_v51  ;;  %v189_v50 = vld [vmem:[%s2121_s1 + $0x560] sm:$0xff]  ;;  %v207_v51 = vld [vmem:[%s2121_s1 + $0x5f0] sm:$0xff] }
  0x5e   :  { %612 = vmatpush1.msra.mxu0 %v137_v52  ;;  %681 = vmatpush1.msra.mxu1 %v155_v53  ;;  %v174_v52 = vld [vmem:[%s2121_s1 + $0x4e8] sm:$0xff]  ;;  %v192_v53 = vld [vmem:[%s2121_s1 + $0x578] sm:$0xff] }
  0x5f   :  { %613 = vmatprep.subr.mxu0 %v122_v54  ;;  %682 = vmatprep.subr.mxu1 %v140_v55  ;;  %v173_v54 = vld [vmem:[%s2121_s1 + $0x4e0] sm:$0xff]  ;;  %v191_v55 = vld [vmem:[%s2121_s1 + $0x570] sm:$0xff] }
  0x60   :  { %614 = vmatpush1.msra.mxu0 %v121_v56  ;;  %683 = vmatpush1.msra.mxu1 %v139_v57  ;;  %v158_v56 = vld [vmem:[%s2121_s1 + $0x468] sm:$0xff]  ;;  %v176_v57 = vld [vmem:[%s2121_s1 + $0x4f8] sm:$0xff] }
  0x61   :  { %615 = vmatprep.subr.mxu0 %v106_v58  ;;  %684 = vmatprep.subr.mxu1 %v124_v59  ;;  %v157_v58 = vld [vmem:[%s2121_s1 + $0x460] sm:$0xff]  ;;  %v175_v59 = vld [vmem:[%s2121_s1 + $0x4f0] sm:$0xff] }
  0x62   :  { %616 = vmatpush1.msra.mxu0 %v105_v60  ;;  %685 = vmatpush1.msra.mxu1 %v123_v62  ;;  %v142_v60 = vld [vmem:[%s2121_s1 + $0x3e8] sm:$0xff]  ;;  %v160_v62 = vld [vmem:[%s2121_s1 + $0x478] sm:$0xff] }
  0x63   :  { %617 = vmatprep.subr.mxu0 %v90_v63  ;;  %686 = vmatprep.subr.mxu1 %v108_v0  ;;  %v141_v63 = vld [vmem:[%s2121_s1 + $0x3e0] sm:$0xff]  ;;  %v159_v0 = vld [vmem:[%s2121_s1 + $0x470] sm:$0xff] }
  0x64   :  { %618 = vmatpush1.msra.mxu0 %v89_v1  ;;  %687 = vmatpush1.msra.mxu1 %v107_v2  ;;  %v126_v1 = vld [vmem:[%s2121_s1 + $0x368] sm:$0xff]  ;;  %v144_v2 = vld [vmem:[%s2121_s1 + $0x3f8] sm:$0xff] }
  0x65   :  { %619 = vmatprep.subr.mxu0 %v74_v3  ;;  %688 = vmatprep.subr.mxu1 %v92_v5  ;;  %v125_v3 = vld [vmem:[%s2121_s1 + $0x360] sm:$0xff]  ;;  %v143_v5 = vld [vmem:[%s2121_s1 + $0x3f0] sm:$0xff] }
  0x66   :  { %620 = vmatpush1.msra.mxu0 %v73_v6  ;;  %689 = vmatpush1.msra.mxu1 %v91_v7  ;;  %v110_v6 = vld [vmem:[%s2121_s1 + $0x2e8] sm:$0xff]  ;;  %v128_v7 = vld [vmem:[%s2121_s1 + $0x378] sm:$0xff] }
  0x67   :  { %621 = vmatprep.subr.mxu0 %v58_v8  ;;  %690 = vmatprep.subr.mxu1 %v76_v9  ;;  %v109_v8 = vld [vmem:[%s2121_s1 + $0x2e0] sm:$0xff]  ;;  %v127_v9 = vld [vmem:[%s2121_s1 + $0x370] sm:$0xff] }
  0x68   :  { %622 = vmatpush1.msra.mxu0 %v57_v10  ;;  %691 = vmatpush1.msra.mxu1 %v75_v11  ;;  %v94_v10 = vld [vmem:[%s2121_s1 + $0x268] sm:$0xff]  ;;  %v112_v11 = vld [vmem:[%s2121_s1 + $0x2f8] sm:$0xff] }
  0x69   :  { %623 = vmatprep.subr.mxu0 %v42_v12  ;;  %692 = vmatprep.subr.mxu1 %v60_v13  ;;  %v93_v12 = vld [vmem:[%s2121_s1 + $0x260] sm:$0xff]  ;;  %v111_v13 = vld [vmem:[%s2121_s1 + $0x2f0] sm:$0xff] }
  0x6a   :  { %624 = vmatpush1.msra.mxu0 %v41_v14  ;;  %693 = vmatpush1.msra.mxu1 %v59_v15  ;;  %v78_v14 = vld [vmem:[%s2121_s1 + $0x1e8] sm:$0xff]  ;;  %v96_v15 = vld [vmem:[%s2121_s1 + $0x278] sm:$0xff] }
  0x6b   :  { %625 = vmatprep.subr.mxu0 %v26_v16  ;;  %694 = vmatprep.subr.mxu1 %v44_v17  ;;  %v77_v16 = vld [vmem:[%s2121_s1 + $0x1e0] sm:$0xff]  ;;  %v95_v17 = vld [vmem:[%s2121_s1 + $0x270] sm:$0xff] }
  0x6c   :  { %626 = vmatpush1.msra.mxu0 %v25_v18  ;;  %695 = vmatpush1.msra.mxu1 %v43_v19  ;;  %v62_v18 = vld [vmem:[%s2121_s1 + $0x168] sm:$0xff]  ;;  %v80_v19 = vld [vmem:[%s2121_s1 + $0x1f8] sm:$0xff] }
  0x6d   :  { %655 = vmatprep.subr.mxu0 %v298_v20  ;;  %696 = vmatprep.subr.mxu1 %v28_v21  ;;  %v61_v20 = vld [vmem:[%s2121_s1 + $0x160] sm:$0xff]  ;;  %v79_v21 = vld [vmem:[%s2121_s1 + $0x1f0] sm:$0xff] }
  0x6e   :  { %656 = vmatpush2.msra.mxu0 %v297_v22  ;;  %697 = vmatpush1.msra.mxu1 %v27_v23  ;;  %v46_v22 = vld [vmem:[%s2121_s1 + $0xe8] sm:$0xff]  ;;  %v64_v23 = vld [vmem:[%s2121_s1 + $0x178] sm:$0xff] }
  0x6f   :  { %657 = vmatprep.subr.mxu0 %v282_v24  ;;  %726 = vmatprep.subr.mxu1 %v300_v25  ;;  %v45_v24 = vld [vmem:[%s2121_s1 + $0xe0] sm:$0xff]  ;;  %v63_v25 = vld [vmem:[%s2121_s1 + $0x170] sm:$0xff] }
  0x70   :  { %658 = vmatpush2.msra.mxu0 %v281_v26  ;;  %1076 = vmatprep.mubr.msk.f32.mxu0 %vm308_vm0, %v1320_v4  ;;  %v30_v26 = vld [vmem:[%s2121_s1 + $0x68] sm:$0xff] }
  0x71   :  { %727 = vmatpush2.msra.mxu1 %v299_v27  ;;  %660 = vmatmul.mubr.f32.vlgmr.msra.gmra.mxu0 %v1298_v61  ;;  %v48_v27 = vld [vmem:[%s2121_s1 + $0xf8] sm:$0xff] }
  0x72   :  { %728 = vmatprep.subr.mxu1 %v284_v28  ;;  %737 = vmatprep.subr.mxu0 %v270_v29  ;;  %v29_v28 = vld [vmem:[%s2121_s1 + $0x60] sm:$0xff]  ;;  %v47_v29 = vld [vmem:[%s2121_s1 + $0xf0] sm:$0xff] }
  0x73   :  { %729 = vmatpush2.msra.mxu1 %v283_v30  ;;  %738 = vmatpush1.msra.mxu0 %v269_v31  ;;  %v302_v30 = vld [vmem:[%s2121_s1 + $0x8e8] sm:$0xff]  ;;  %v32_v31 = vld [vmem:[%s2121_s1 + $0x78] sm:$0xff] }
  0x74   :  { %1077 = vmatprep.mubr.msk.f32.mxu1 %vm308_vm0, %v1320_v4  ;;  %739 = vmatprep.subr.mxu0 %v254_v32  ;;  %v301_v32 = vld [vmem:[%s2121_s1 + $0x8e0] sm:$0xff] }
  0x75   :  { %808 = vmatprep.subr.mxu1 %v272_v33  ;;  %731 = vmatmul.mubr.f32.vlgmr.msra.gmra.mxu1 %v1298_v61  ;;  %v31_v33 = vld [vmem:[%s2121_s1 + $0x70] sm:$0xff] }
  0x76   :  { %740 = vmatpush1.msra.mxu0 %v253_v34  ;;  %809 = vmatpush1.msra.mxu1 %v271_v35  ;;  %v286_v34 = vld [vmem:[%s2121_s1 + $0x868] sm:$0xff]  ;;  %v304_v35 = vld [vmem:[%s2121_s1 + $0x8f8] sm:$0xff] }
  0x77   :  { %741 = vmatprep.subr.mxu0 %v238_v36  ;;  %810 = vmatprep.subr.mxu1 %v256_v37  ;;  %v285_v36 = vld [vmem:[%s2121_s1 + $0x860] sm:$0xff]  ;;  %v303_v37 = vld [vmem:[%s2121_s1 + $0x8f0] sm:$0xff] }
  0x78   :  { %742 = vmatpush1.msra.mxu0 %v237_v38  ;;  %811 = vmatpush1.msra.mxu1 %v255_v39  ;;  %v288_v38 = vld [vmem:[%s2121_s1 + $0x878] sm:$0xff]  ;;  %v287_v39 = vld [vmem:[%s2121_s1 + $0x870] sm:$0xff] }
  0x79   :  { %743 = vmatprep.subr.mxu0 %v222_v40  ;;  %812 = vmatprep.subr.mxu1 %v240_v41 }
  0x7a   :  { %744 = vmatpush1.msra.mxu0 %v221_v42  ;;  %813 = vmatpush1.msra.mxu1 %v239_v43 }
  0x7b   :  { %745 = vmatprep.subr.mxu0 %v206_v44  ;;  %814 = vmatprep.subr.mxu1 %v224_v45 }
  0x7c   :  { %746 = vmatpush1.msra.mxu0 %v205_v46  ;;  %815 = vmatpush1.msra.mxu1 %v223_v47 }
  0x7d   :  { %747 = vmatprep.subr.mxu0 %v190_v48  ;;  %816 = vmatprep.subr.mxu1 %v208_v49 }
  0x7e   :  { %748 = vmatpush1.msra.mxu0 %v189_v50  ;;  %817 = vmatpush1.msra.mxu1 %v207_v51 }
  0x7f   :  { %749 = vmatprep.subr.mxu0 %v174_v52  ;;  %818 = vmatprep.subr.mxu1 %v192_v53 }
  0x80   :  { %750 = vmatpush1.msra.mxu0 %v173_v54  ;;  %819 = vmatpush1.msra.mxu1 %v191_v55 }
  0x81   :  { %751 = vmatprep.subr.mxu0 %v158_v56  ;;  %820 = vmatprep.subr.mxu1 %v176_v57 }
  0x82   :  { %752 = vmatpush1.msra.mxu0 %v157_v58  ;;  %821 = vmatpush1.msra.mxu1 %v175_v59 }
  0x83   :  { %753 = vmatprep.subr.mxu0 %v142_v60  ;;  %822 = vmatprep.subr.mxu1 %v160_v62 }
  0x84   :  { %754 = vmatpush1.msra.mxu0 %v141_v63  ;;  %823 = vmatpush1.msra.mxu1 %v159_v0 }
  0x85   :  { %755 = vmatprep.subr.mxu0 %v126_v1  ;;  %824 = vmatprep.subr.mxu1 %v144_v2 }
  0x86   :  { %756 = vmatpush1.msra.mxu0 %v125_v3  ;;  %825 = vmatpush1.msra.mxu1 %v143_v5 }
  0x87   :  { %757 = vmatprep.subr.mxu0 %v110_v6  ;;  %826 = vmatprep.subr.mxu1 %v128_v7 }
  0x88   :  { %758 = vmatpush1.msra.mxu0 %v109_v8  ;;  %827 = vmatpush1.msra.mxu1 %v127_v9 }
  0x89   :  { %759 = vmatprep.subr.mxu0 %v94_v10  ;;  %828 = vmatprep.subr.mxu1 %v112_v11 }
  0x8a   :  { %760 = vmatpush1.msra.mxu0 %v93_v12  ;;  %829 = vmatpush1.msra.mxu1 %v111_v13 }
  0x8b   :  { %761 = vmatprep.subr.mxu0 %v78_v14  ;;  %830 = vmatprep.subr.mxu1 %v96_v15 }
  0x8c   :  { %762 = vmatpush1.msra.mxu0 %v77_v16  ;;  %831 = vmatpush1.msra.mxu1 %v95_v17 }
  0x8d   :  { %763 = vmatprep.subr.mxu0 %v62_v18  ;;  %832 = vmatprep.subr.mxu1 %v80_v19 }
  0x8e   :  { %764 = vmatpush1.msra.mxu0 %v61_v20  ;;  %833 = vmatpush1.msra.mxu1 %v79_v21 }
  0x8f   :  { %765 = vmatprep.subr.mxu0 %v46_v22  ;;  %834 = vmatprep.subr.mxu1 %v64_v23 }
  0x90   :  { %766 = vmatpush1.msra.mxu0 %v45_v24  ;;  %835 = vmatpush1.msra.mxu1 %v63_v25 }
  0x91   :  { %767 = vmatprep.subr.mxu0 %v30_v26  ;;  %836 = vmatprep.subr.mxu1 %v48_v27 }
  0x92   :  { %768 = vmatpush1.msra.mxu0 %v29_v28  ;;  %837 = vmatpush1.msra.mxu1 %v47_v29 }
  0x93   :  { %797 = vmatprep.subr.mxu0 %v302_v30  ;;  %838 = vmatprep.subr.mxu1 %v32_v31 }
  0x94   :  { %798 = vmatpush2.msra.mxu0 %v301_v32  ;;  %839 = vmatpush1.msra.mxu1 %v31_v33 }
  0x95   :  { %799 = vmatprep.subr.mxu0 %v286_v34  ;;  %868 = vmatprep.subr.mxu1 %v304_v35 }
  0x96   :  { %800 = vmatpush2.msra.mxu0 %v285_v36  ;;  %1078 = vmatprep.mubr.msk.f32.mxu0 %vm308_vm0, %v1320_v4 }
  0x97   :  { %869 = vmatpush2.msra.mxu1 %v303_v37  ;;  %802 = vmatmul.mubr.f32.vlgmr.msra.gmra.mxu0 %v1298_v61 }
  0x98   :  { %870 = vmatprep.subr.mxu1 %v288_v38  ;;  %1079 = vmatprep.mubr.msk.f32.mxu1 %vm308_vm0, %v1320_v4 }
  0x99   :  { %871 = vmatpush2.msra.mxu1 %v287_v39 }
  0x9a   :  { %873 = vmatmul.mubr.f32.vlgmr.msra.gmra.mxu1 %v1298_v61 }
  0xe6   :  { %v377_v40 = vpop.f32.mrf.mxu0 }
  0xe7   :  { %v880_v42 = vsel %vm879_vm1, %v377_v40, 0.0 }
  0xe8   :  { %v379_v41 = vpop.f32.mrf.mxu0 }
  0xe9   :  { %v881_v43 = vsel %vm879_vm1, %v379_v41, 0.0  ;;  %v448_v44 = vpop.f32.mrf.mxu1 }
  0xea   :  { %v882_v45 = vadd.f32 %v881_v43, %v880_v42  ;;  %v883_v46 = vsel %vm879_vm1, %v448_v44, 0.0 }
  0xeb   :  { %v450_v47 = vpop.f32.mrf.mxu1 }
  0xec   :  { %v884_v48 = vadd.f32 %v883_v46, %v882_v45  ;;  %v885_v50 = vsel %vm879_vm1, %v450_v47, 0.0 }
  0xee   :  { %v886_v51 = vadd.f32 %v885_v50, %v884_v48 }
 0x10b   :  { %v519_v49 = vpop.f32.mrf.mxu0 }
 0x10c   :  { %v887_v4 = vsel %vm879_vm1, %v519_v49, 0.0 }
 0x10d   :  { %v521_v61 = vpop.f32.mrf.mxu0  ;;  %v888_v52 = vadd.f32 %v887_v4, %v886_v51 }
 0x10e   :  { %v889_v53 = vsel %vm879_vm1, %v521_v61, 0.0 }
 0x10f   :  { %v590_v54 = vpop.f32.mrf.mxu1  ;;  %v890_v55 = vadd.f32 %v889_v53, %v888_v52 }
 0x110   :  { %v891_v56 = vsel %vm879_vm1, %v590_v54, 0.0 }
 0x111   :  { %v592_v57 = vpop.f32.mrf.mxu1  ;;  %v892_v58 = vadd.f32 %v891_v56, %v890_v55 }
 0x112   :  { %v893_v60 = vsel %vm879_vm1, %v592_v57, 0.0 }
 0x113   :  { %v894_v63 = vadd.f32 %v893_v60, %v892_v58 }
 0x131   :  { %v661_v59 = vpop.f32.mrf.mxu0 }
 0x132   :  { %v895_v62 = vsel %vm879_vm1, %v661_v59, 0.0 }
 0x133   :  { %v663_v0 = vpop.f32.mrf.mxu0  ;;  %v896_v1 = vadd.f32 %v895_v62, %v894_v63 }
 0x134   :  { %v897_v2 = vsel %vm879_vm1, %v663_v0, 0.0 }
 0x135   :  { %v732_v3 = vpop.f32.mrf.mxu1  ;;  %v898_v5 = vadd.f32 %v897_v2, %v896_v1 }
 0x136   :  { %v899_v6 = vsel %vm879_vm1, %v732_v3, 0.0 }
 0x137   :  { %v734_v7 = vpop.f32.mrf.mxu1  ;;  %v900_v8 = vadd.f32 %v899_v6, %v898_v5 }
 0x138   :  { %v901_v9 = vsel %vm879_vm1, %v734_v7, 0.0 }
 0x139   :  { %v902_v10 = vadd.f32 %v901_v9, %v900_v8 }
 0x157   :  { %v803_v11 = vpop.f32.mrf.mxu0 }
 0x158   :  { %v903_v12 = vsel %vm879_vm1, %v803_v11, 0.0 }
 0x159   :  { %v904_v13 = vadd.f32 %v903_v12, %v902_v10  ;;  %v805_v14 = vpop.f32.mrf.mxu0 }
 0x15a   :  { %v874_v15 = vpop.f32.mrf.mxu1  ;;  %v905_v16 = vsel %vm879_vm1, %v805_v14, 0.0 }
 0x15b   :  { %v907_v17 = vsel %vm879_vm1, %v874_v15, 0.0  ;;  %v906_v18 = vadd.f32 %v905_v16, %v904_v13 }
 0x15c   :  { %v876_v19 = vpop.f32.mrf.mxu1 }
 0x15d   :  { %v908_v20 = vadd.f32 %v907_v17, %v906_v18  ;;  %v909_v21 = vsel %vm879_vm1, %v876_v19, 0.0 }
 0x15f   :  { %v910_v22 = vadd.f32 %v909_v21, %v908_v20 }
 0x161   :  { %911 = vadd.xlane.f32.xlu0 %v910_v22 }
 0x1ea   :  { %v912_v23 = vpop.xlane.xlu0 %911 }
 0x1eb   :  { %v914_v24 = vmul.f32 0.00048828125, %v912_v23 }
 0x1ed   :  { %v2025_v25 = vsub.f32 %v377_v40, %v914_v24  ;;  %v2027_v26 = vsub.f32 %v379_v41, %v914_v24  ;;  %v2029_v27 = vsub.f32 %v448_v44, %v914_v24  ;;  %v2031_v28 = vsub.f32 %v450_v47, %v914_v24 }
 0x1ee   :  { %v2037_v31 = vsub.f32 %v519_v49, %v914_v24  ;;  %v2041_v33 = vsub.f32 %v521_v61, %v914_v24  ;;  %v2047_v38 = vsub.f32 %v590_v54, %v914_v24  ;;  %v2052_v42 = vsub.f32 %v592_v57, %v914_v24 }
 0x1ef   :  { %v931_v29 = vmul.f32 %v2025_v25, %v2025_v25  ;;  %v932_v30 = vmul.f32 %v2027_v26, %v2027_v26  ;;  %v933_v32 = vmul.f32 %v2029_v27, %v2029_v27  ;;  %v934_v34 = vmul.f32 %v2031_v28, %v2031_v28 }
 0x1f0   :  { %v935_v39 = vmul.f32 %v2037_v31, %v2037_v31  ;;  %v936_v43 = vmul.f32 %v2041_v33, %v2041_v33  ;;  %v2057_v46 = vsub.f32 %v661_v59, %v914_v24  ;;  %v937_v47 = vmul.f32 %v2047_v38, %v2047_v38 }
 0x1f1   :  { %v947_v35 = vsel %vm879_vm1, %v931_v29, 0.0  ;;  %v948_v36 = vsel %vm879_vm1, %v932_v30, 0.0  ;;  %v950_v40 = vsel %vm879_vm1, %v933_v32, 0.0  ;;  %v952_v44 = vsel %vm879_vm1, %v934_v34, 0.0  ;;  %v983_v34 = vld [vmem:[%s2123_s2] sm:$0xf] }
 0x1f2   :  { %v949_v37 = vadd.f32 %v948_v36, %v947_v35  ;;  %v954_v48 = vsel %vm879_vm1, %v935_v39, 0.0  ;;  %v2062_v50 = vsub.f32 %v663_v0, %v914_v24  ;;  %v938_v4 = vmul.f32 %v2052_v42, %v2052_v42 }
 0x1f3   :  { %v956_v51 = vsel %vm879_vm1, %v936_v43, 0.0  ;;  %v925_v52 = vsub.f32 %v732_v3, %v914_v24  ;;  %v939_v53 = vmul.f32 %v2057_v46, %v2057_v46  ;;  %v958_v54 = vsel %vm879_vm1, %v937_v47, 0.0 }
 0x1f4   :  { %v951_v41 = vadd.f32 %v950_v40, %v949_v37  ;;  %v926_v56 = vsub.f32 %v734_v7, %v914_v24  ;;  %v940_v57 = vmul.f32 %v2062_v50, %v2062_v50  ;;  %v960_v58 = vsel %vm879_vm1, %v938_v4, 0.0  ;;  %v1006_v37 = vld [vmem:[%s2124_s3] sm:$0xf] }
 0x1f5   :  { %v927_v60 = vsub.f32 %v803_v11, %v914_v24  ;;  %v941_v62 = vmul.f32 %v925_v52, %v925_v52  ;;  %v962_v63 = vsel %vm879_vm1, %v939_v53, 0.0  ;;  %v928_v1 = vsub.f32 %v805_v14, %v914_v24 }
 0x1f6   :  { %v953_v45 = vadd.f32 %v952_v44, %v951_v41  ;;  %v942_v2 = vmul.f32 %v926_v56, %v926_v56  ;;  %v964_v3 = vsel %vm879_vm1, %v940_v57, 0.0  ;;  %v929_v6 = vsub.f32 %v874_v15, %v914_v24 }
 0x1f7   :  { %v943_v8 = vmul.f32 %v927_v60, %v927_v60  ;;  %v966_v7 = vsel %vm879_vm1, %v941_v62, 0.0  ;;  %v930_v10 = vsub.f32 %v876_v19, %v914_v24  ;;  %v944_v12 = vmul.f32 %v928_v1, %v928_v1 }
 0x1f8   :  { %v955_v49 = vadd.f32 %v954_v48, %v953_v45  ;;  %v968_v13 = vsel %vm879_vm1, %v942_v2, 0.0  ;;  %v945_v11 = vmul.f32 %v929_v6, %v929_v6  ;;  %v1086_v19 = vmov 0  }
 0x1f9   :  { %v970_v17 = vsel %vm879_vm1, %v943_v8, 0.0  ;;  %v946_v20 = vmul.f32 %v930_v10, %v930_v10  ;;  %v972_v14 = vsel %vm879_vm1, %v944_v12, 0.0  ;;  %1081 = vset.pattern.permute.xlu1 %v1086_v19  ;;  %1082 = vset.pattern.permute.xlu0 %v1086_v19 }
 0x1fa   :  { %v957_v61 = vadd.f32 %v956_v51, %v955_v49  ;;  %v974_v22 = vsel %vm879_vm1, %v945_v11, 0.0 }
 0x1fb   :  { %v976_v23 = vsel %vm879_vm1, %v946_v20, 0.0 }
 0x1fc   :  { %v959_v55 = vadd.f32 %v958_v54, %v957_v61 }
 0x1fe   :  { %v961_v59 = vadd.f32 %v960_v58, %v959_v55 }
 0x200   :  { %v963_v0 = vadd.f32 %v962_v63, %v961_v59 }
 0x202   :  { %v965_v5 = vadd.f32 %v964_v3, %v963_v0 }
 0x204   :  { %v967_v9 = vadd.f32 %v966_v7, %v965_v5 }
 0x206   :  { %v969_v16 = vadd.f32 %v968_v13, %v967_v9 }
 0x208   :  { %v971_v18 = vadd.f32 %v970_v17, %v969_v16 }
 0x20a   :  { %v973_v21 = vadd.f32 %v972_v14, %v971_v18 }
 0x20c   :  { %v975_v15 = vadd.f32 %v974_v22, %v973_v21 }
 0x20e   :  { %v977_v29 = vadd.f32 %v976_v23, %v975_v15 }
 0x210   :  { %978 = vadd.xlane.f32.xlu0 %v977_v29 }
 0x299   :  { %v979_v24 = vpop.xlane.xlu0 %978 }
 0x29a   :  { %v980_v30 = vmul.f32 0.00048828125, %v979_v24 }
 0x29c   :  { %v981_v32 = vadd.f32 1e-05, %v980_v30 }
 0x29e   :  { %1084 = vrsqrt.f32 %v981_v32 }
 0x2ab   :  { %v1085_v35 = vpop.eup %1084 }
 0x2ac   :  { %v984_v36 = vmul.f32 %v1085_v35, %v983_v34 }
 0x2ae   :  { %987 = vperm.xlu1 %1081, %v984_v36  }
 0x2b2   :  { %1009 = vperm.xlu1 %1081, %v1006_v37  }
 0x329   :  { %v988_v39 = vpop.permute.xlu1 %987 }
 0x32a   :  { %v990_v40 = vmul.f32 %v988_v39, %v2025_v25  ;;  %v991_v41 = vmul.f32 %v988_v39, %v2027_v26  ;;  %v992_v43 = vmul.f32 %v988_v39, %v2029_v27  ;;  %v993_v44 = vmul.f32 %v988_v39, %v2031_v28 }
 0x32b   :  { %v994_v45 = vmul.f32 %v988_v39, %v2037_v31  ;;  %v995_v47 = vmul.f32 %v988_v39, %v2041_v33  ;;  %v996_v48 = vmul.f32 %v988_v39, %v2047_v38  ;;  %v997_v49 = vmul.f32 %v988_v39, %v2052_v42 }
 0x32c   :  { %v998_v4 = vmul.f32 %v988_v39, %v2057_v46  ;;  %v999_v51 = vmul.f32 %v988_v39, %v2062_v50  ;;  %v1000_v61 = vmul.f32 %v988_v39, %v925_v52  ;;  %v1001_v25 = vmul.f32 %v988_v39, %v926_v56 }
 0x32d   :  { %v1002_v53 = vmul.f32 %v988_v39, %v927_v60  ;;  %v1003_v26 = vmul.f32 %v988_v39, %v928_v1  ;;  %v1004_v54 = vmul.f32 %v988_v39, %v929_v6  ;;  %v1005_v27 = vmul.f32 %v988_v39, %v930_v10  ;;  %v1010_v55 = vpop.permute.xlu1 %1009 }
 0x32e   :  { %v1012_v28 = vadd.f32 %v1010_v55, %v990_v40  ;;  %v1013_v57 = vadd.f32 %v1010_v55, %v991_v41  ;;  %v1014_v31 = vadd.f32 %v1010_v55, %v992_v43  ;;  %v1015_v58 = vadd.f32 %v1010_v55, %v993_v44 }
 0x32f   :  { %v1016_v33 = vadd.f32 %v1010_v55, %v994_v45  ;;  %v1017_v59 = vadd.f32 %v1010_v55, %v995_v47  ;;  %v1018_v38 = vadd.f32 %v1010_v55, %v996_v48  ;;  %v1019_v62 = vadd.f32 %v1010_v55, %v997_v49 }
 0x330   :  { %v1020_v42 = vadd.f32 %v1010_v55, %v998_v4  ;;  %v1021_v63 = vadd.f32 %v1010_v55, %v999_v51  ;;  %v1022_v46 = vadd.f32 %v1010_v55, %v1000_v61  ;;  %v1023_v0 = vadd.f32 %v1010_v55, %v1001_v25 }
 0x331   :  { %v1024_v50 = vadd.f32 %v1010_v55, %v1002_v53  ;;  %v1025_v52 = vadd.f32 %v1010_v55, %v1003_v26  ;;  %v1026_v56 = vadd.f32 %v1010_v55, %v1004_v54  ;;  %v1027_v60 = vadd.f32 %v1010_v55, %v1005_v27 }
 0x332   :  { %v1044_v1 = vcombine.low %v1012_v28, %v1013_v57  ;;  %v1045_v2 = vcombine.low %v1014_v31, %v1015_v58  ;;  %v1046_v3 = vcombine.low %v1016_v33, %v1017_v59  ;;  %v1047_v5 = vcombine.low %v1018_v38, %v1019_v62 }
 0x333   :  { %v1048_v6 = vcombine.low %v1020_v42, %v1021_v63  ;;  %v1049_v8 = vcombine.low %v1022_v46, %v1023_v0  ;;  %v1050_v7 = vcombine.low %v1024_v50, %v1025_v52  ;;  %v1051_v9 = vcombine.low %v1026_v56, %v1027_v60 }
 0x334   :  { %1060 = vst [vmem:[%s2125_s4] sm:$0xff] %v1044_v1  ;;  %1061 = vst [vmem:[%s2125_s4 + $0x8] sm:$0xff] %v1045_v2 }
 0x335   :  { %1062 = vst [vmem:[%s2125_s4 + $0x10] sm:$0xff] %v1046_v3  ;;  %1063 = vst [vmem:[%s2125_s4 + $0x18] sm:$0xff] %v1047_v5 }
 0x336   :  { %1064 = vst [vmem:[%s2125_s4 + $0x20] sm:$0xff] %v1048_v6  ;;  %1065 = vst [vmem:[%s2125_s4 + $0x28] sm:$0xff] %v1049_v8 }
 0x337   :  { %1066 = vst [vmem:[%s2125_s4 + $0x30] sm:$0xff] %v1050_v7  ;;  %1067 = vst [vmem:[%s2125_s4 + $0x38] sm:$0xff] %v1051_v9 }

// kernel: tile.8
= control target key start
LH: loop header
LB: loop body
LE: loop exit
PB: predicated region body
PF: predicated region fallthrough
CT: control target
= control target key end

     0   :  { %s22_s0 = inlined_call_operand.vmem [shape: f32[2], index: 0, kind: input, shape index: {}]   ;;  %s23_s1 = inlined_call_operand.vmem [shape: f32[4,2], index: 1, kind: output, shape index: {}]  }
   0x1   :  { %v4_v0 = vld [vmem:[%s22_s0] ss:$0 sm:$0xff] }
   0x2   :  { %5 = vst [vmem:[%s23_s1] sm:$0xf] %v4_v0 }

// kernel: tile.0
= control target key start
LH: loop header
LB: loop body
LE: loop exit
PB: predicated region body
PF: predicated region fallthrough
CT: control target
= control target key end

     0   :  { %vm8_vm0 = vcmask 7168   ;;  %s38_s0 = inlined_call_operand.vmem [shape: f32[4,2], index: 0, kind: input, shape index: {}]   ;;  %s39_s1 = inlined_call_operand.vmem [shape: f32[8,1], index: 1, kind: output, shape index: {}]  }
   0x1   :  { %v5_v0 = vld [vmem:[%s38_s0] sm:$0xf]  ;;  %s18_s0 = smov 127  }
   0x2   :  { %6 = vst [vmem:[#allocation0] sm:$0xf] %v5_v0 }
   0x9   :  { %v10_v1 = vld [vmem:[#allocation0] sm:$0xf]  }
   0xa   :  { %v7_v2 = vld [vmem:[#allocation0] sm:$0xf]   ;;  %11 = vrot.lane.b32.xlu0 %v10_v1, %s18_s0 }
   0xb   :  { %9 = vst.msk [vmem:[%s39_s1] ss:$2 sm:$0xf] %vm8_vm0, %v7_v2  }
  0x7c   :  { %v12_v3 = vpop.permute.xlu0 %11  }
  0x7d   :  { %16 = vst.msk [vmem:[%s39_s1 + $0x1] ss:$2 sm:$0xf] %vm8_vm0, %v12_v3  }

// kernel: unet_forward.19
= control target key start
LH: loop header
LB: loop body
LE: loop exit
PB: predicated region body
PF: predicated region fallthrough
CT: control target
= control target key end

     0   :  { %v912_v3 = vmov 0.0   ;;  %v913_v10 = vmov 0   ;;  %vm309_vm0 = vcmask 588800   ;;  %s1446_s1 = inlined_call_operand.vmem [shape: f32[72,2048], index: 1, kind: input, shape index: {}]   ;;  %s1447_s0 = inlined_call_operand.vmem [shape: f32[8,72], index: 0, kind: input, shape index: {}]   ;;  %s1448_s2 = inlined_call_operand.vmem [shape: f32[8,1], index: 2, kind: input, shape index: {}]   ;;  %s1449_s3 = inlined_call_operand.vmem [shape: f32[8,2048], index: 3, kind: output, shape index: {}]  }
   0x1   :  { %v143_v0 = vld [vmem:[%s1446_s1 + $0x408] sm:$0xff]  ;;  %v145_v1 = vld [vmem:[%s1446_s1 + $0x418] sm:$0xff]  ;;  %v142_v2 = vld [vmem:[%s1446_s1 + $0x400] sm:$0xff]  ;;  %377 = vmatprep.mubr.f32.mxu0 %v912_v3  ;;  %448 = vmatprep.mubr.f32.mxu1 %v912_v3 }
   0x2   :  { %v287_v4 = vmax.f32 %v143_v0, 0.0  ;;  %v289_v5 = vmax.f32 %v145_v1, 0.0  ;;  %v286_v6 = vmax.f32 %v142_v2, 0.0  ;;  %v144_v7 = vld [vmem:[%s1446_s1 + $0x410] sm:$0xff]  ;;  %v127_v8 = vld [vmem:[%s1446_s1 + $0x388] sm:$0xff]  ;;  %v129_v9 = vld [vmem:[%s1446_s1 + $0x398] sm:$0xff]  ;;  %911 = vset.pattern.permute.xlu0 %v913_v10 }
   0x3   :  { %v288_v11 = vmax.f32 %v144_v7, 0.0  ;;  %v271_v12 = vmax.f32 %v127_v8, 0.0  ;;  %v273_v13 = vmax.f32 %v129_v9, 0.0  ;;  %v126_v14 = vld [vmem:[%s1446_s1 + $0x380] sm:$0xff]  ;;  %v128_v15 = vld [vmem:[%s1446_s1 + $0x390] sm:$0xff]  ;;  %v111_v16 = vld [vmem:[%s1446_s1 + $0x308] sm:$0xff] }
   0x4   :  { %327 = vmatprep.subr.mxu0 %v287_v4  ;;  %398 = vmatprep.subr.mxu1 %v289_v5  ;;  %v270_v17 = vmax.f32 %v126_v14, 0.0  ;;  %v272_v18 = vmax.f32 %v128_v15, 0.0  ;;  %v255_v19 = vmax.f32 %v111_v16, 0.0  ;;  %v113_v20 = vld [vmem:[%s1446_s1 + $0x318] sm:$0xff]  ;;  %v110_v21 = vld [vmem:[%s1446_s1 + $0x300] sm:$0xff]  ;;  %v112_v22 = vld [vmem:[%s1446_s1 + $0x310] sm:$0xff] }
   0x5   :  { %328 = vmatpush1.msra.mxu0 %v286_v6  ;;  %399 = vmatpush1.msra.mxu1 %v288_v11  ;;  %v257_v23 = vmax.f32 %v113_v20, 0.0  ;;  %v254_v24 = vmax.f32 %v110_v21, 0.0  ;;  %v256_v25 = vmax.f32 %v112_v22, 0.0  ;;  %v95_v26 = vld [vmem:[%s1446_s1 + $0x288] sm:$0xff]  ;;  %v97_v27 = vld [vmem:[%s1446_s1 + $0x298] sm:$0xff]  ;;  %v94_v28 = vld [vmem:[%s1446_s1 + $0x280] sm:$0xff] }
   0x6   :  { %329 = vmatprep.subr.mxu0 %v271_v12  ;;  %400 = vmatprep.subr.mxu1 %v273_v13  ;;  %v239_v29 = vmax.f32 %v95_v26, 0.0  ;;  %v241_v30 = vmax.f32 %v97_v27, 0.0  ;;  %v96_v31 = vld [vmem:[%s1446_s1 + $0x290] sm:$0xff]  ;;  %v79_v32 = vld [vmem:[%s1446_s1 + $0x208] sm:$0xff]  ;;  %v81_v33 = vld [vmem:[%s1446_s1 + $0x218] sm:$0xff]  ;;  %v238_v34 = vmax.f32 %v94_v28, 0.0 }
   0x7   :  { %330 = vmatpush1.msra.mxu0 %v270_v17  ;;  %401 = vmatpush1.msra.mxu1 %v272_v18  ;;  %v240_v35 = vmax.f32 %v96_v31, 0.0  ;;  %v78_v36 = vld [vmem:[%s1446_s1 + $0x200] sm:$0xff]  ;;  %v80_v37 = vld [vmem:[%s1446_s1 + $0x210] sm:$0xff]  ;;  %v63_v38 = vld [vmem:[%s1446_s1 + $0x188] sm:$0xff]  ;;  %v223_v39 = vmax.f32 %v79_v32, 0.0  ;;  %v225_v40 = vmax.f32 %v81_v33, 0.0 }
   0x8   :  { %331 = vmatprep.subr.mxu0 %v255_v19  ;;  %402 = vmatprep.subr.mxu1 %v257_v23  ;;  %v65_v41 = vld [vmem:[%s1446_s1 + $0x198] sm:$0xff]  ;;  %v62_v42 = vld [vmem:[%s1446_s1 + $0x180] sm:$0xff]  ;;  %v64_v43 = vld [vmem:[%s1446_s1 + $0x190] sm:$0xff]  ;;  %v222_v44 = vmax.f32 %v78_v36, 0.0  ;;  %v224_v45 = vmax.f32 %v80_v37, 0.0  ;;  %v207_v48 = vmax.f32 %v63_v38, 0.0 }
   0x9   :  { %332 = vmatpush1.msra.mxu0 %v254_v24  ;;  %403 = vmatpush1.msra.mxu1 %v256_v25  ;;  %v47_v46 = vld [vmem:[%s1446_s1 + $0x108] sm:$0xff]  ;;  %v49_v47 = vld [vmem:[%s1446_s1 + $0x118] sm:$0xff]  ;;  %v209_v49 = vmax.f32 %v65_v41, 0.0  ;;  %v46_v50 = vld [vmem:[%s1446_s1 + $0x100] sm:$0xff]  ;;  %v206_v52 = vmax.f32 %v62_v42, 0.0  ;;  %v208_v53 = vmax.f32 %v64_v43, 0.0 }
   0xa   :  { %333 = vmatprep.subr.mxu0 %v239_v29  ;;  %404 = vmatprep.subr.mxu1 %v241_v30  ;;  %v48_v51 = vld [vmem:[%s1446_s1 + $0x110] sm:$0xff]  ;;  %v31_v54 = vld [vmem:[%s1446_s1 + $0x88] sm:$0xff]  ;;  %v33_v55 = vld [vmem:[%s1446_s1 + $0x98] sm:$0xff]  ;;  %v191_v56 = vmax.f32 %v47_v46, 0.0  ;;  %v193_v57 = vmax.f32 %v49_v47, 0.0  ;;  %v190_v60 = vmax.f32 %v46_v50, 0.0 }
   0xb   :  { %334 = vmatpush1.msra.mxu0 %v238_v34  ;;  %405 = vmatpush1.msra.mxu1 %v240_v35  ;;  %v30_v58 = vld [vmem:[%s1446_s1 + $0x80] sm:$0xff]  ;;  %v32_v59 = vld [vmem:[%s1446_s1 + $0x90] sm:$0xff]  ;;  %v192_v61 = vmax.f32 %v48_v51, 0.0  ;;  %v15_v62 = vld [vmem:[%s1446_s1 + $0x8] sm:$0xff]  ;;  %v175_v0 = vmax.f32 %v31_v54, 0.0  ;;  %v177_v1 = vmax.f32 %v33_v55, 0.0 }
   0xc   :  { %335 = vmatprep.subr.mxu0 %v223_v39  ;;  %406 = vmatprep.subr.mxu1 %v225_v40  ;;  %v17_v63 = vld [vmem:[%s1446_s1 + $0x18] sm:$0xff]  ;;  %v14_v2 = vld [vmem:[%s1446_s1] sm:$0xff]  ;;  %v16_v4 = vld [vmem:[%s1446_s1 + $0x10] sm:$0xff]  ;;  %v174_v5 = vmax.f32 %v30_v58, 0.0  ;;  %v176_v6 = vmax.f32 %v32_v59, 0.0  ;;  %v159_v7 = vmax.f32 %v15_v62, 0.0 }
   0xd   :  { %336 = vmatpush1.msra.mxu0 %v222_v44  ;;  %407 = vmatpush1.msra.mxu1 %v224_v45  ;;  %v161_v8 = vmax.f32 %v17_v63, 0.0  ;;  %v147_v9 = vld [vmem:[%s1446_s1 + $0x428] sm:$0xff]  ;;  %v149_v10 = vld [vmem:[%s1446_s1 + $0x438] sm:$0xff]  ;;  %v158_v11 = vmax.f32 %v14_v2, 0.0  ;;  %v160_v12 = vmax.f32 %v16_v4, 0.0  ;;  %v146_v13 = vld [vmem:[%s1446_s1 + $0x420] sm:$0xff] }
   0xe   :  { %337 = vmatprep.subr.mxu0 %v207_v48  ;;  %408 = vmatprep.subr.mxu1 %v209_v49  ;;  %v148_v14 = vld [vmem:[%s1446_s1 + $0x430] sm:$0xff]  ;;  %v131_v15 = vld [vmem:[%s1446_s1 + $0x3a8] sm:$0xff]  ;;  %v133_v16 = vld [vmem:[%s1446_s1 + $0x3b8] sm:$0xff]  ;;  %v291_v18 = vmax.f32 %v147_v9, 0.0  ;;  %v293_v19 = vmax.f32 %v149_v10, 0.0  ;;  %v290_v22 = vmax.f32 %v146_v13, 0.0 }
   0xf   :  { %338 = vmatpush1.msra.mxu0 %v206_v52  ;;  %409 = vmatpush1.msra.mxu1 %v208_v53  ;;  %v1065_v17 = vld [vmem:[%s1447_s0] sm:$0xff]  ;;  %v132_v21 = vld [vmem:[%s1446_s1 + $0x3b0] sm:$0xff]  ;;  %v292_v23 = vmax.f32 %v148_v14, 0.0  ;;  %v115_v24 = vld [vmem:[%s1446_s1 + $0x328] sm:$0xff]  ;;  %v275_v26 = vmax.f32 %v131_v15, 0.0  ;;  %v277_v27 = vmax.f32 %v133_v16, 0.0 }
  0x10   :  { %339 = vmatprep.subr.mxu0 %v191_v56  ;;  %410 = vmatprep.subr.mxu1 %v193_v57  ;;  %v130_v20 = vld [vmem:[%s1446_s1 + $0x3a0] sm:$0xff]  ;;  %v117_v25 = vld [vmem:[%s1446_s1 + $0x338] sm:$0xff]  ;;  %v116_v29 = vld [vmem:[%s1446_s1 + $0x330] sm:$0xff]  ;;  %v276_v31 = vmax.f32 %v132_v21, 0.0  ;;  %v259_v34 = vmax.f32 %v115_v24, 0.0 }
  0x11   :  { %340 = vmatpush1.msra.mxu0 %v190_v60  ;;  %411 = vmatpush1.msra.mxu1 %v192_v61  ;;  %v114_v28 = vld [vmem:[%s1446_s1 + $0x320] sm:$0xff]  ;;  %v274_v30 = vmax.f32 %v130_v20, 0.0  ;;  %v99_v32 = vld [vmem:[%s1446_s1 + $0x2a8] sm:$0xff]  ;;  %v101_v33 = vld [vmem:[%s1446_s1 + $0x2b8] sm:$0xff]  ;;  %v261_v35 = vmax.f32 %v117_v25, 0.0  ;;  %v260_v39 = vmax.f32 %v116_v29, 0.0 }
  0x12   :  { %341 = vmatprep.subr.mxu0 %v175_v0  ;;  %412 = vmatprep.subr.mxu1 %v177_v1  ;;  %v98_v36 = vld [vmem:[%s1446_s1 + $0x2a0] sm:$0xff]  ;;  %v100_v37 = vld [vmem:[%s1446_s1 + $0x2b0] sm:$0xff]  ;;  %v258_v38 = vmax.f32 %v114_v28, 0.0  ;;  %v83_v40 = vld [vmem:[%s1446_s1 + $0x228] sm:$0xff]  ;;  %v243_v42 = vmax.f32 %v99_v32, 0.0  ;;  %v245_v43 = vmax.f32 %v101_v33, 0.0 }
  0x13   :  { %342 = vmatpush1.msra.mxu0 %v174_v5  ;;  %413 = vmatpush1.msra.mxu1 %v176_v6  ;;  %v85_v41 = vld [vmem:[%s1446_s1 + $0x238] sm:$0xff]  ;;  %v82_v44 = vld [vmem:[%s1446_s1 + $0x220] sm:$0xff]  ;;  %v84_v45 = vld [vmem:[%s1446_s1 + $0x230] sm:$0xff]  ;;  %v242_v46 = vmax.f32 %v98_v36, 0.0  ;;  %v244_v47 = vmax.f32 %v100_v37, 0.0  ;;  %v227_v50 = vmax.f32 %v83_v40, 0.0 }
  0x14   :  { %343 = vmatprep.subr.mxu0 %v159_v7  ;;  %414 = vmatprep.subr.mxu1 %v161_v8  ;;  %v67_v48 = vld [vmem:[%s1446_s1 + $0x1a8] sm:$0xff]  ;;  %v69_v49 = vld [vmem:[%s1446_s1 + $0x1b8] sm:$0xff]  ;;  %v229_v51 = vmax.f32 %v85_v41, 0.0  ;;  %v66_v52 = vld [vmem:[%s1446_s1 + $0x1a0] sm:$0xff]  ;;  %v226_v54 = vmax.f32 %v82_v44, 0.0  ;;  %v228_v55 = vmax.f32 %v84_v45, 0.0 }
  0x15   :  { %344 = vmatpush1.msra.mxu0 %v158_v11  ;;  %415 = vmatpush1.msra.mxu1 %v160_v12  ;;  %v68_v53 = vld [vmem:[%s1446_s1 + $0x1b0] sm:$0xff]  ;;  %v51_v56 = vld [vmem:[%s1446_s1 + $0x128] sm:$0xff]  ;;  %v53_v57 = vld [vmem:[%s1446_s1 + $0x138] sm:$0xff]  ;;  %v211_v58 = vmax.f32 %v67_v48, 0.0  ;;  %v213_v59 = vmax.f32 %v69_v49, 0.0  ;;  %v210_v62 = vmax.f32 %v66_v52, 0.0 }
  0x16   :  { %901 = vmatmul.mubr.msk.f32.vlgmr.msra.gmra.mxu0 %vm309_vm0, %v1065_v17  ;;  %902 = vmatmul.mubr.msk.f32.vlgmr.msra.gmra.mxu1 %vm309_vm0, %v1065_v17  ;;  %v50_v60 = vld [vmem:[%s1446_s1 + $0x120] sm:$0xff]  ;;  %v52_v61 = vld [vmem:[%s1446_s1 + $0x130] sm:$0xff]  ;;  %v212_v63 = vmax.f32 %v68_v53, 0.0  ;;  %v35_v0 = vld [vmem:[%s1446_s1 + $0xa8] sm:$0xff]  ;;  %v195_v2 = vmax.f32 %v51_v56, 0.0  ;;  %v197_v4 = vmax.f32 %v53_v57, 0.0 }
  0x17   :  { %469 = vmatprep.subr.mxu0 %v291_v18  ;;  %540 = vmatprep.subr.mxu1 %v293_v19  ;;  %v37_v1 = vld [vmem:[%s1446_s1 + $0xb8] sm:$0xff]  ;;  %v34_v5 = vld [vmem:[%s1446_s1 + $0xa0] sm:$0xff]  ;;  %v36_v6 = vld [vmem:[%s1446_s1 + $0xb0] sm:$0xff]  ;;  %v194_v7 = vmax.f32 %v50_v60, 0.0  ;;  %v196_v8 = vmax.f32 %v52_v61, 0.0  ;;  %v179_v11 = vmax.f32 %v35_v0, 0.0 }
  0x18   :  { %470 = vmatpush1.msra.mxu0 %v290_v22  ;;  %541 = vmatpush1.msra.mxu1 %v292_v23  ;;  %v19_v9 = vld [vmem:[%s1446_s1 + $0x28] sm:$0xff]  ;;  %v21_v10 = vld [vmem:[%s1446_s1 + $0x38] sm:$0xff]  ;;  %v181_v12 = vmax.f32 %v37_v1, 0.0  ;;  %v18_v13 = vld [vmem:[%s1446_s1 + $0x20] sm:$0xff]  ;;  %v178_v14 = vmax.f32 %v34_v5, 0.0  ;;  %v180_v15 = vmax.f32 %v36_v6, 0.0 }
  0x19   :  { %471 = vmatprep.subr.mxu0 %v275_v26  ;;  %542 = vmatprep.subr.mxu1 %v277_v27  ;;  %v20_v16 = vld [vmem:[%s1446_s1 + $0x30] sm:$0xff]  ;;  %v163_v18 = vmax.f32 %v19_v9, 0.0  ;;  %v165_v19 = vmax.f32 %v21_v10, 0.0  ;;  %v162_v20 = vmax.f32 %v18_v13, 0.0  ;;  %v151_v21 = vld [vmem:[%s1446_s1 + $0x448] sm:$0xff]  ;;  %v153_v22 = vld [vmem:[%s1446_s1 + $0x458] sm:$0xff] }
  0x1a   :  { %472 = vmatpush1.msra.mxu0 %v274_v30  ;;  %543 = vmatpush1.msra.mxu1 %v276_v31  ;;  %v164_v23 = vmax.f32 %v20_v16, 0.0  ;;  %v150_v24 = vld [vmem:[%s1446_s1 + $0x440] sm:$0xff]  ;;  %v152_v25 = vld [vmem:[%s1446_s1 + $0x450] sm:$0xff]  ;;  %v135_v26 = vld [vmem:[%s1446_s1 + $0x3c8] sm:$0xff]  ;;  %v295_v28 = vmax.f32 %v151_v21, 0.0  ;;  %v297_v29 = vmax.f32 %v153_v22, 0.0 }
  0x1b   :  { %473 = vmatprep.subr.mxu0 %v259_v34  ;;  %544 = vmatprep.subr.mxu1 %v261_v35  ;;  %v137_v27 = vld [vmem:[%s1446_s1 + $0x3d8] sm:$0xff]  ;;  %v134_v30 = vld [vmem:[%s1446_s1 + $0x3c0] sm:$0xff]  ;;  %v136_v31 = vld [vmem:[%s1446_s1 + $0x3d0] sm:$0xff]  ;;  %v294_v32 = vmax.f32 %v150_v24, 0.0  ;;  %v296_v33 = vmax.f32 %v152_v25, 0.0  ;;  %v279_v36 = vmax.f32 %v135_v26, 0.0 }
  0x1c   :  { %474 = vmatpush1.msra.mxu0 %v258_v38  ;;  %545 = vmatpush1.msra.mxu1 %v260_v39  ;;  %v119_v34 = vld [vmem:[%s1446_s1 + $0x348] sm:$0xff]  ;;  %v121_v35 = vld [vmem:[%s1446_s1 + $0x358] sm:$0xff]  ;;  %v281_v37 = vmax.f32 %v137_v27, 0.0  ;;  %v118_v38 = vld [vmem:[%s1446_s1 + $0x340] sm:$0xff]  ;;  %v278_v40 = vmax.f32 %v134_v30, 0.0  ;;  %v280_v41 = vmax.f32 %v136_v31, 0.0 }
  0x1d   :  { %475 = vmatprep.subr.mxu0 %v243_v42  ;;  %546 = vmatprep.subr.mxu1 %v245_v43  ;;  %v120_v39 = vld [vmem:[%s1446_s1 + $0x350] sm:$0xff]  ;;  %v103_v42 = vld [vmem:[%s1446_s1 + $0x2c8] sm:$0xff]  ;;  %v105_v43 = vld [vmem:[%s1446_s1 + $0x2d8] sm:$0xff]  ;;  %v263_v44 = vmax.f32 %v119_v34, 0.0  ;;  %v265_v45 = vmax.f32 %v121_v35, 0.0  ;;  %v262_v48 = vmax.f32 %v118_v38, 0.0 }
  0x1e   :  { %476 = vmatpush1.msra.mxu0 %v242_v46  ;;  %547 = vmatpush1.msra.mxu1 %v244_v47  ;;  %v102_v46 = vld [vmem:[%s1446_s1 + $0x2c0] sm:$0xff]  ;;  %v104_v47 = vld [vmem:[%s1446_s1 + $0x2d0] sm:$0xff]  ;;  %v264_v49 = vmax.f32 %v120_v39, 0.0  ;;  %v247_v52 = vmax.f32 %v103_v42, 0.0  ;;  %v249_v53 = vmax.f32 %v105_v43, 0.0  ;;  %v25_v21 = vld [vmem:[%s1446_s1 + $0x58] sm:$0xff] }
  0x1f   :  { %477 = vmatprep.subr.mxu0 %v227_v50  ;;  %548 = vmatprep.subr.mxu1 %v229_v51  ;;  %v87_v50 = vld [vmem:[%s1446_s1 + $0x248] sm:$0xff]  ;;  %v89_v51 = vld [vmem:[%s1446_s1 + $0x258] sm:$0xff]  ;;  %v246_v56 = vmax.f32 %v102_v46, 0.0  ;;  %v248_v57 = vmax.f32 %v104_v47, 0.0  ;;  %v40_v16 = vld [vmem:[%s1446_s1 + $0xd0] sm:$0xff] }
  0x20   :  { %478 = vmatpush1.msra.mxu0 %v226_v54  ;;  %549 = vmatpush1.msra.mxu1 %v228_v55  ;;  %v86_v54 = vld [vmem:[%s1446_s1 + $0x240] sm:$0xff]  ;;  %v88_v55 = vld [vmem:[%s1446_s1 + $0x250] sm:$0xff]  ;;  %v231_v60 = vmax.f32 %v87_v50, 0.0  ;;  %v233_v61 = vmax.f32 %v89_v51, 0.0  ;;  %v184_v26 = vmax.f32 %v40_v16, 0.0  ;;  %v155_v31 = vld [vmem:[%s1446_s1 + $0x468] sm:$0xff] }
  0x21   :  { %479 = vmatprep.subr.mxu0 %v211_v58  ;;  %550 = vmatprep.subr.mxu1 %v213_v59  ;;  %v71_v58 = vld [vmem:[%s1446_s1 + $0x1c8] sm:$0xff]  ;;  %v73_v59 = vld [vmem:[%s1446_s1 + $0x1d8] sm:$0xff]  ;;  %v230_v0 = vmax.f32 %v86_v54, 0.0  ;;  %v232_v1 = vmax.f32 %v88_v55, 0.0  ;;  %v22_v24 = vld [vmem:[%s1446_s1 + $0x40] sm:$0xff]  ;;  %v299_v38 = vmax.f32 %v155_v31, 0.0 }
  0x22   :  { %480 = vmatpush1.msra.mxu0 %v210_v62  ;;  %551 = vmatpush1.msra.mxu1 %v212_v63  ;;  %v70_v62 = vld [vmem:[%s1446_s1 + $0x1c0] sm:$0xff]  ;;  %v72_v63 = vld [vmem:[%s1446_s1 + $0x1d0] sm:$0xff]  ;;  %v215_v5 = vmax.f32 %v71_v58, 0.0  ;;  %v217_v6 = vmax.f32 %v73_v59, 0.0  ;;  %v166_v30 = vmax.f32 %v22_v24, 0.0  ;;  %v29_v31 = vld [vmem:[%s1446_s1 + $0x78] sm:$0xff] }
  0x23   :  { %481 = vmatprep.subr.mxu0 %v195_v2  ;;  %552 = vmatprep.subr.mxu1 %v197_v4  ;;  %v55_v2 = vld [vmem:[%s1446_s1 + $0x148] sm:$0xff]  ;;  %v57_v4 = vld [vmem:[%s1446_s1 + $0x158] sm:$0xff]  ;;  %v214_v9 = vmax.f32 %v70_v62, 0.0  ;;  %v216_v10 = vmax.f32 %v72_v63, 0.0  ;;  %v24_v27 = vld [vmem:[%s1446_s1 + $0x50] sm:$0xff] }
  0x24   :  { %482 = vmatpush1.msra.mxu0 %v194_v7  ;;  %553 = vmatpush1.msra.mxu1 %v196_v8  ;;  %v54_v7 = vld [vmem:[%s1446_s1 + $0x140] sm:$0xff]  ;;  %v56_v8 = vld [vmem:[%s1446_s1 + $0x150] sm:$0xff]  ;;  %v199_v13 = vmax.f32 %v55_v2, 0.0 }
  0x25   :  { %483 = vmatprep.subr.mxu0 %v179_v11  ;;  %554 = vmatprep.subr.mxu1 %v181_v12  ;;  %v39_v11 = vld [vmem:[%s1446_s1 + $0xc8] sm:$0xff]  ;;  %v41_v12 = vld [vmem:[%s1446_s1 + $0xd8] sm:$0xff]  ;;  %v154_v34 = vld [vmem:[%s1446_s1 + $0x460] sm:$0xff] }
  0x26   :  { %484 = vmatpush1.msra.mxu0 %v178_v14  ;;  %555 = vmatpush1.msra.mxu1 %v180_v15  ;;  %v201_v14 = vmax.f32 %v57_v4, 0.0  ;;  %v38_v15 = vld [vmem:[%s1446_s1 + $0xc0] sm:$0xff]  ;;  %v183_v22 = vmax.f32 %v39_v11, 0.0  ;;  %v156_v35 = vld [vmem:[%s1446_s1 + $0x470] sm:$0xff]  ;;  %v298_v42 = vmax.f32 %v154_v34, 0.0 }
  0x27   :  { %485 = vmatprep.subr.mxu0 %v163_v18  ;;  %556 = vmatprep.subr.mxu1 %v165_v19  ;;  %v198_v18 = vmax.f32 %v54_v7, 0.0  ;;  %v200_v19 = vmax.f32 %v56_v8, 0.0  ;;  %v182_v25 = vmax.f32 %v38_v15, 0.0  ;;  %v300_v43 = vmax.f32 %v156_v35, 0.0  ;;  %v26_v34 = vld [vmem:[%s1446_s1 + $0x60] sm:$0xff] }
  0x28   :  { %486 = vmatpush1.msra.mxu0 %v162_v20  ;;  %519 = vmatprep.mubr.f32.mxu0 %v912_v3  ;;  %v23_v20 = vld [vmem:[%s1446_s1 + $0x48] sm:$0xff] }
  0x29   :  { %557 = vmatpush1.msra.mxu1 %v164_v23  ;;  %590 = vmatprep.mubr.f32.mxu1 %v912_v3  ;;  %v185_v23 = vmax.f32 %v41_v12, 0.0 }
  0x2a   :  { %903 = vmatmul.mubr.msk.f32.vlgmr.msra.gmra.mxu0 %vm309_vm0, %v1065_v17  ;;  %904 = vmatmul.mubr.msk.f32.vlgmr.msra.gmra.mxu1 %vm309_vm0, %v1065_v17 }
  0x2b   :  { %611 = vmatprep.subr.mxu0 %v295_v28  ;;  %682 = vmatprep.subr.mxu1 %v297_v29  ;;  %v167_v28 = vmax.f32 %v23_v20, 0.0  ;;  %v169_v29 = vmax.f32 %v25_v21, 0.0 }
  0x2c   :  { %612 = vmatpush1.msra.mxu0 %v294_v32  ;;  %683 = vmatpush1.msra.mxu1 %v296_v33  ;;  %v157_v32 = vld [vmem:[%s1446_s1 + $0x478] sm:$0xff]  ;;  %v168_v33 = vmax.f32 %v24_v27, 0.0  ;;  %v44_v27 = vld [vmem:[%s1446_s1 + $0xf0] sm:$0xff] }
  0x2d   :  { %613 = vmatprep.subr.mxu0 %v279_v36  ;;  %684 = vmatprep.subr.mxu1 %v281_v37  ;;  %v139_v36 = vld [vmem:[%s1446_s1 + $0x3e8] sm:$0xff]  ;;  %v141_v37 = vld [vmem:[%s1446_s1 + $0x3f8] sm:$0xff]  ;;  %v301_v39 = vmax.f32 %v157_v32, 0.0 }
  0x2e   :  { %614 = vmatpush1.msra.mxu0 %v278_v40  ;;  %685 = vmatpush1.msra.mxu1 %v280_v41  ;;  %v138_v40 = vld [vmem:[%s1446_s1 + $0x3e0] sm:$0xff]  ;;  %v140_v41 = vld [vmem:[%s1446_s1 + $0x3f0] sm:$0xff]  ;;  %v283_v46 = vmax.f32 %v139_v36, 0.0  ;;  %v285_v47 = vmax.f32 %v141_v37, 0.0  ;;  %v188_v36 = vmax.f32 %v44_v27, 0.0 }
  0x2f   :  { %615 = vmatprep.subr.mxu0 %v263_v44  ;;  %686 = vmatprep.subr.mxu1 %v265_v45  ;;  %v123_v44 = vld [vmem:[%s1446_s1 + $0x368] sm:$0xff]  ;;  %v125_v45 = vld [vmem:[%s1446_s1 + $0x378] sm:$0xff]  ;;  %v282_v50 = vmax.f32 %v138_v40, 0.0  ;;  %v284_v51 = vmax.f32 %v140_v41, 0.0  ;;  %v28_v37 = vld [vmem:[%s1446_s1 + $0x70] sm:$0xff]  ;;  %v170_v40 = vmax.f32 %v26_v34, 0.0 }
  0x30   :  { %616 = vmatpush1.msra.mxu0 %v262_v48  ;;  %687 = vmatpush1.msra.mxu1 %v264_v49  ;;  %v122_v48 = vld [vmem:[%s1446_s1 + $0x360] sm:$0xff]  ;;  %v124_v49 = vld [vmem:[%s1446_s1 + $0x370] sm:$0xff]  ;;  %v267_v54 = vmax.f32 %v123_v44, 0.0  ;;  %v269_v55 = vmax.f32 %v125_v45, 0.0  ;;  %v172_v41 = vmax.f32 %v28_v37, 0.0 }
  0x31   :  { %617 = vmatprep.subr.mxu0 %v247_v52  ;;  %688 = vmatprep.subr.mxu1 %v249_v53  ;;  %v107_v52 = vld [vmem:[%s1446_s1 + $0x2e8] sm:$0xff]  ;;  %v109_v53 = vld [vmem:[%s1446_s1 + $0x2f8] sm:$0xff]  ;;  %v266_v58 = vmax.f32 %v122_v48, 0.0  ;;  %v268_v59 = vmax.f32 %v124_v49, 0.0 }
  0x32   :  { %618 = vmatpush1.msra.mxu0 %v246_v56  ;;  %689 = vmatpush1.msra.mxu1 %v248_v57  ;;  %v106_v56 = vld [vmem:[%s1446_s1 + $0x2e0] sm:$0xff]  ;;  %v108_v57 = vld [vmem:[%s1446_s1 + $0x2f0] sm:$0xff]  ;;  %v251_v62 = vmax.f32 %v107_v52, 0.0  ;;  %v253_v63 = vmax.f32 %v109_v53, 0.0 }
  0x33   :  { %619 = vmatprep.subr.mxu0 %v231_v60  ;;  %690 = vmatprep.subr.mxu1 %v233_v61  ;;  %v91_v60 = vld [vmem:[%s1446_s1 + $0x268] sm:$0xff]  ;;  %v93_v61 = vld [vmem:[%s1446_s1 + $0x278] sm:$0xff]  ;;  %v250_v2 = vmax.f32 %v106_v56, 0.0  ;;  %v252_v4 = vmax.f32 %v108_v57, 0.0 }
  0x34   :  { %620 = vmatpush1.msra.mxu0 %v230_v0  ;;  %691 = vmatpush1.msra.mxu1 %v232_v1  ;;  %v90_v0 = vld [vmem:[%s1446_s1 + $0x260] sm:$0xff]  ;;  %v92_v1 = vld [vmem:[%s1446_s1 + $0x270] sm:$0xff]  ;;  %v235_v7 = vmax.f32 %v91_v60, 0.0  ;;  %v237_v8 = vmax.f32 %v93_v61, 0.0 }
  0x35   :  { %621 = vmatprep.subr.mxu0 %v215_v5  ;;  %692 = vmatprep.subr.mxu1 %v217_v6  ;;  %v75_v5 = vld [vmem:[%s1446_s1 + $0x1e8] sm:$0xff]  ;;  %v77_v6 = vld [vmem:[%s1446_s1 + $0x1f8] sm:$0xff]  ;;  %v234_v11 = vmax.f32 %v90_v0, 0.0  ;;  %v236_v12 = vmax.f32 %v92_v1, 0.0 }
  0x36   :  { %622 = vmatpush1.msra.mxu0 %v214_v9  ;;  %693 = vmatpush1.msra.mxu1 %v216_v10  ;;  %v74_v9 = vld [vmem:[%s1446_s1 + $0x1e0] sm:$0xff]  ;;  %v76_v10 = vld [vmem:[%s1446_s1 + $0x1f0] sm:$0xff]  ;;  %v219_v15 = vmax.f32 %v75_v5, 0.0  ;;  %v221_v16 = vmax.f32 %v77_v6, 0.0 }
  0x37   :  { %623 = vmatprep.subr.mxu0 %v199_v13  ;;  %694 = vmatprep.subr.mxu1 %v201_v14  ;;  %v59_v13 = vld [vmem:[%s1446_s1 + $0x168] sm:$0xff]  ;;  %v61_v14 = vld [vmem:[%s1446_s1 + $0x178] sm:$0xff]  ;;  %v218_v20 = vmax.f32 %v74_v9, 0.0  ;;  %v220_v21 = vmax.f32 %v76_v10, 0.0 }
  0x38   :  { %624 = vmatpush1.msra.mxu0 %v198_v18  ;;  %695 = vmatpush1.msra.mxu1 %v200_v19  ;;  %v58_v18 = vld [vmem:[%s1446_s1 + $0x160] sm:$0xff]  ;;  %v60_v19 = vld [vmem:[%s1446_s1 + $0x170] sm:$0xff]  ;;  %v203_v24 = vmax.f32 %v59_v13, 0.0 }
  0x39   :  { %625 = vmatprep.subr.mxu0 %v183_v22  ;;  %696 = vmatprep.subr.mxu1 %v185_v23  ;;  %v43_v22 = vld [vmem:[%s1446_s1 + $0xe8] sm:$0xff]  ;;  %v45_v23 = vld [vmem:[%s1446_s1 + $0xf8] sm:$0xff] }
  0x3a   :  { %626 = vmatpush1.msra.mxu0 %v182_v25  ;;  %697 = vmatpush1.msra.mxu1 %v184_v26  ;;  %v205_v25 = vmax.f32 %v61_v14, 0.0  ;;  %v42_v26 = vld [vmem:[%s1446_s1 + $0xe0] sm:$0xff]  ;;  %v187_v32 = vmax.f32 %v43_v22, 0.0 }
  0x3b   :  { %627 = vmatprep.subr.mxu0 %v167_v28  ;;  %698 = vmatprep.subr.mxu1 %v169_v29  ;;  %v202_v28 = vmax.f32 %v58_v18, 0.0  ;;  %v204_v29 = vmax.f32 %v60_v19, 0.0  ;;  %v186_v35 = vmax.f32 %v42_v26, 0.0 }
  0x3c   :  { %628 = vmatpush1.msra.mxu0 %v166_v30  ;;  %661 = vmatprep.mubr.f32.mxu0 %v912_v3  ;;  %v27_v30 = vld [vmem:[%s1446_s1 + $0x68] sm:$0xff] }
  0x3d   :  { %699 = vmatpush1.msra.mxu1 %v168_v33  ;;  %732 = vmatprep.mubr.f32.mxu1 %v912_v3  ;;  %v189_v33 = vmax.f32 %v45_v23, 0.0 }
  0x3e   :  { %905 = vmatmul.mubr.msk.f32.vlgmr.msra.gmra.mxu0 %vm309_vm0, %v1065_v17  ;;  %906 = vmatmul.mubr.msk.f32.vlgmr.msra.gmra.mxu1 %vm309_vm0, %v1065_v17 }
  0x3f   :  { %753 = vmatprep.subr.mxu0 %v299_v38  ;;  %824 = vmatprep.subr.mxu1 %v301_v39  ;;  %v171_v38 = vmax.f32 %v27_v30, 0.0  ;;  %v173_v39 = vmax.f32 %v29_v31, 0.0 }
  0x40   :  { %754 = vmatpush1.msra.mxu0 %v298_v42  ;;  %825 = vmatpush1.msra.mxu1 %v300_v43  ;;  %v303_v42 = vld [vmem:[%s1448_s2] sm:$0xff] }
  0x41   :  { %755 = vmatprep.subr.mxu0 %v283_v46  ;;  %826 = vmatprep.subr.mxu1 %v285_v47 }
  0x42   :  { %756 = vmatpush1.msra.mxu0 %v282_v50  ;;  %827 = vmatpush1.msra.mxu1 %v284_v51 }
  0x43   :  { %757 = vmatprep.subr.mxu0 %v267_v54  ;;  %828 = vmatprep.subr.mxu1 %v269_v55 }
  0x44   :  { %758 = vmatpush1.msra.mxu0 %v266_v58  ;;  %829 = vmatpush1.msra.mxu1 %v268_v59 }
  0x45   :  { %759 = vmatprep.subr.mxu0 %v251_v62  ;;  %830 = vmatprep.subr.mxu1 %v253_v63 }
  0x46   :  { %760 = vmatpush1.msra.mxu0 %v250_v2  ;;  %831 = vmatpush1.msra.mxu1 %v252_v4 }
  0x47   :  { %761 = vmatprep.subr.mxu0 %v235_v7  ;;  %832 = vmatprep.subr.mxu1 %v237_v8 }
  0x48   :  { %762 = vmatpush1.msra.mxu0 %v234_v11  ;;  %833 = vmatpush1.msra.mxu1 %v236_v12 }
  0x49   :  { %763 = vmatprep.subr.mxu0 %v219_v15  ;;  %834 = vmatprep.subr.mxu1 %v221_v16 }
  0x4a   :  { %764 = vmatpush1.msra.mxu0 %v218_v20  ;;  %835 = vmatpush1.msra.mxu1 %v220_v21 }
  0x4b   :  { %765 = vmatprep.subr.mxu0 %v203_v24  ;;  %836 = vmatprep.subr.mxu1 %v205_v25 }
  0x4c   :  { %766 = vmatpush1.msra.mxu0 %v202_v28  ;;  %837 = vmatpush1.msra.mxu1 %v204_v29 }
  0x4d   :  { %767 = vmatprep.subr.mxu0 %v187_v32  ;;  %838 = vmatprep.subr.mxu1 %v189_v33 }
  0x4e   :  { %768 = vmatpush1.msra.mxu0 %v186_v35  ;;  %839 = vmatpush1.msra.mxu1 %v188_v36 }
  0x4f   :  { %769 = vmatprep.subr.mxu0 %v171_v38  ;;  %840 = vmatprep.subr.mxu1 %v173_v39 }
  0x50   :  { %770 = vmatpush1.msra.mxu0 %v170_v40  ;;  %803 = vmatprep.mubr.f32.mxu0 %v912_v3 }
  0x51   :  { %841 = vmatpush1.msra.mxu1 %v172_v41  ;;  %874 = vmatprep.mubr.f32.mxu1 %v912_v3 }
  0x52   :  { %907 = vmatmul.mubr.msk.f32.vlgmr.msra.gmra.mxu0 %vm309_vm0, %v1065_v17  ;;  %908 = vmatmul.mubr.msk.f32.vlgmr.msra.gmra.mxu1 %vm309_vm0, %v1065_v17 }
  0x53   :  { %306 = vperm.xlu0 %911, %v303_v42  }
  0xce   :  { %v307_v43 = vpop.permute.xlu0 %306 }
  0xd6   :  { %v379_v44 = vpop.f32.mrf.mxu0  ;;  %v450_v45 = vpop.f32.mrf.mxu1 }
  0xd7   :  { %v380_v46 = vadd.f32 %v379_v44, %v307_v43  ;;  %v451_v47 = vadd.f32 %v450_v45, %v307_v43 }
  0xd8   :  { %v381_v48 = vpop.f32.mrf.mxu0  ;;  %v452_v49 = vpop.f32.mrf.mxu1 }
  0xd9   :  { %881 = vst [vmem:[%s1449_s3] sm:$0xff] %v380_v46  ;;  %883 = vst [vmem:[%s1449_s3 + $0x10] sm:$0xff] %v451_v47  ;;  %v382_v3 = vadd.f32 %v381_v48, %v307_v43  ;;  %v453_v50 = vadd.f32 %v452_v49, %v307_v43 }
  0xdb   :  { %882 = vst [vmem:[%s1449_s3 + $0x8] sm:$0xff] %v382_v3  ;;  %884 = vst [vmem:[%s1449_s3 + $0x18] sm:$0xff] %v453_v50 }
  0xea   :  { %v521_v17 = vpop.f32.mrf.mxu0  ;;  %v592_v51 = vpop.f32.mrf.mxu1 }
  0xeb   :  { %v522_v52 = vadd.f32 %v521_v17, %v307_v43  ;;  %v593_v53 = vadd.f32 %v592_v51, %v307_v43 }
  0xec   :  { %v523_v54 = vpop.f32.mrf.mxu0  ;;  %v594_v55 = vpop.f32.mrf.mxu1 }
  0xed   :  { %885 = vst [vmem:[%s1449_s3 + $0x20] sm:$0xff] %v522_v52  ;;  %887 = vst [vmem:[%s1449_s3 + $0x30] sm:$0xff] %v593_v53  ;;  %v524_v56 = vadd.f32 %v523_v54, %v307_v43  ;;  %v595_v57 = vadd.f32 %v594_v55, %v307_v43 }
  0xef   :  { %886 = vst [vmem:[%s1449_s3 + $0x28] sm:$0xff] %v524_v56  ;;  %888 = vst [vmem:[%s1449_s3 + $0x38] sm:$0xff] %v595_v57 }
  0xfe   :  { %v663_v58 = vpop.f32.mrf.mxu0  ;;  %v734_v59 = vpop.f32.mrf.mxu1 }
  0xff   :  { %v664_v60 = vadd.f32 %v663_v58, %v307_v43  ;;  %v735_v61 = vadd.f32 %v734_v59, %v307_v43 }
 0x100   :  { %v665_v62 = vpop.f32.mrf.mxu0  ;;  %v736_v63 = vpop.f32.mrf.mxu1 }
 0x101   :  { %889 = vst [vmem:[%s1449_s3 + $0x40] sm:$0xff] %v664_v60  ;;  %891 = vst [vmem:[%s1449_s3 + $0x50] sm:$0xff] %v735_v61  ;;  %v666_v0 = vadd.f32 %v665_v62, %v307_v43  ;;  %v737_v1 = vadd.f32 %v736_v63, %v307_v43 }
 0x103   :  { %890 = vst [vmem:[%s1449_s3 + $0x48] sm:$0xff] %v666_v0  ;;  %892 = vst [vmem:[%s1449_s3 + $0x58] sm:$0xff] %v737_v1 }
 0x112   :  { %v805_v2 = vpop.f32.mrf.mxu0  ;;  %v876_v4 = vpop.f32.mrf.mxu1 }
 0x113   :  { %v806_v5 = vadd.f32 %v805_v2, %v307_v43  ;;  %v877_v6 = vadd.f32 %v876_v4, %v307_v43 }
 0x114   :  { %v807_v7 = vpop.f32.mrf.mxu0  ;;  %v878_v8 = vpop.f32.mrf.mxu1 }
 0x115   :  { %893 = vst [vmem:[%s1449_s3 + $0x60] sm:$0xff] %v806_v5  ;;  %895 = vst [vmem:[%s1449_s3 + $0x70] sm:$0xff] %v877_v6  ;;  %v808_v9 = vadd.f32 %v807_v7, %v307_v43  ;;  %v879_v10 = vadd.f32 %v878_v8, %v307_v43 }
 0x117   :  { %894 = vst [vmem:[%s1449_s3 + $0x68] sm:$0xff] %v808_v9  ;;  %896 = vst [vmem:[%s1449_s3 + $0x78] sm:$0xff] %v879_v10 }

</bundles_post_ra>
